<compile_context>
chip_gen: v5e
topology: v5e:2x2
jax: 0.10.0
libtpu: 0.0.40
codegen_flags: <defaults>
</compile_context>

<pallas_src>
import jax
import jax.numpy as jnp
from jax.experimental import pallas as pl
from jax.experimental.pallas import tpu as pltpu


# --------------------------------------------------------------------------- #
# Pallas kernel: conv1d + relu + LSTM + avgpool + linear, all in VMEM.
# --------------------------------------------------------------------------- #
def charnet_kernel(patches_ref, wc_ref, bc_ref, w_ref, bl_ref,
                   h0_ref, c0_ref, we_ref, be_ref,
                   out_ref, hn_ref, cn_ref, xh_ref):
    H = h0_ref.shape[0]
    N = out_ref.shape[0]
    Lout = xh_ref.shape[2] - H           # == H by construction (LSTM input_size)

    # ---- Conv1d + ReLU, computed pre-transposed (no in-kernel relayout):
    #      (H, K*H) @ (K*H, N*Lout) -> lane-dense (H, N*Lout), bf16 in / f32 accumulate.
    conv = jnp.dot(wc_ref[...], patches_ref[...], preferred_element_type=jnp.float32)
    conv = jnp.maximum(conv + bc_ref[...], 0.0).astype(jnp.bfloat16)

    # Stage the x-halves of the fused [x_t | h] operands; this sits OFF the recurrent
    # serial chain (only the h-half is written inside the loop).
    for n in range(N):
        xh_ref[n, :, :Lout] = conv[:, n * Lout:(n + 1) * Lout]

    w = w_ref[...]                       # (Lout+H, 4H) bf16: rows [wih^T; whh^T], gates [i,f,o,2*g]
    bl = bl_ref[...]                     # (1, 4H) f32
    h = h0_ref[...]                      # (H, H) f32 state
    c = c0_ref[...]                      # (H, H) f32 state
    lane_idx = jax.lax.broadcasted_iota(jnp.int32, (H, N), 1)
    pooled_t = jnp.zeros((H, N), jnp.float32)      # pooled rows, H on sublanes
    inv_h = 1.0 / H

    # ---- Recurrence: per step one MXU push ([x_t | h] @ [wih; whh]) + one sigmoid
    #      covering all four gates (tanh(g) via 2*sigmoid(2x)-1) + one tanh(c).
    for n in range(N):
        xh_ref[n, :, Lout:] = h.astype(jnp.bfloat16)
        gates = jnp.dot(xh_ref[n], w, preferred_element_type=jnp.float32) + bl   # (H, 4H)
        sg = jax.nn.sigmoid(gates)                 # single EUP push over the whole gate block
        i_g = sg[:, :H]
        f_g = sg[:, H:2 * H]
        o_g = sg[:, 2 * H:3 * H]
        g_g = 2.0 * sg[:, 3 * H:] - 1.0            # == tanh(z_g): 2x folded into weights/bias
        c = f_g * c + i_g * g_g
        h = o_g * jnp.tanh(c)
        # Stream this step's AvgPool row (mean over hidden dim); no (N, H, H) stacking.
        mean_col = jnp.sum(h, axis=-1, keepdims=True) * inv_h      # (H, 1)
        pooled_t = jnp.where(lane_idx == n, mean_col, pooled_t)

    # ---- AvgPool result -> Linear(H, O) ----
    out_ref[...] = jnp.dot(pooled_t.T, we_ref[...],
                           preferred_element_type=jnp.float32) + be_ref[...]
    # NOTE: hn/cn are written only here, after h0/c0 were fully consumed -> aliasing safe.
    hn_ref[...] = h
    cn_ref[...] = c


# --------------------------------------------------------------------------- #
# Wrapper: layout plumbing (transposed im2col, gate reorder + 2x-g fold, bf16 casts)
# --------------------------------------------------------------------------- #
@jax.jit
def character_network_forward(x_ncl, params, hidden):
    # x_ncl: (N, H, L) in PyTorch NCL layout.
    N, _, L = x_ncl.shape
    W = params["conv_w"]                                            # (Cout=H, Cin=H, K)
    H, K = W.shape[0], W.shape[2]
    Lout = L - K + 1
    O = params["embed_w"].shape[0]
    assert Lout == H, "CharacterNetwork requires conv output length == hidden size (L = K + H - 1)"

    # Pre-transposed im2col: patches_t[k*H + ci, n*Lout + t] = x[n, ci, t + k]
    slabs = jnp.stack([x_ncl[:, :, k:k + Lout] for k in range(K)], axis=0)      # (K, N, H, Lout)
    patches_t = jnp.transpose(slabs, (0, 2, 1, 3)).reshape(K * H, N * Lout).astype(jnp.bfloat16)

    # Pre-transposed conv weight: wc_t[co, k*H + ci] = W[co, ci, k]
    wc_t = jnp.transpose(W, (0, 2, 1)).reshape(H, K * H).astype(jnp.bfloat16)
    bc = params["conv_b"][:, None].astype(jnp.float32)              # (H, 1) broadcast over lanes

    # Reorder LSTM gates from torch [i, f, g, o] -> [i, f, o, g] (contiguous sigmoid lanes)
    # and scale the g block by 2 so tanh(z_g) = 2*sigmoid(2*z_g) - 1 inside the kernel.
    def reorder_scale(a):
        return jnp.concatenate([a[:2 * H], a[3 * H:4 * H], 2.0 * a[2 * H:3 * H]], axis=0)

    wih = reorder_scale(params["w_ih"])                             # (4H, Lout)
    whh = reorder_scale(params["w_hh"])                             # (4H, H)
    w_stack = jnp.concatenate([wih.T, whh.T], axis=0).astype(jnp.bfloat16)      # (Lout+H, 4H)
    bl = reorder_scale(params["b_ih"] + params["b_hh"])[None, :].astype(jnp.float32)  # (1, 4H)

    we = params["embed_w"].T.astype(jnp.float32)                    # (H, O)
    be = params["embed_b"][None, :].astype(jnp.float32)             # (1, O)

    h0, c0 = hidden                                                 # each (1, H, H)
    h0_2d = h0[0].astype(jnp.float32)
    c0_2d = c0[0].astype(jnp.float32)

    vmem = lambda: pl.BlockSpec(memory_space=pltpu.MemorySpace.VMEM)
    out, hn, cn = pl.pallas_call(
        charnet_kernel,
        out_shape=(
            jax.ShapeDtypeStruct((N, O), jnp.float32),
            jax.ShapeDtypeStruct((H, H), jnp.float32),
            jax.ShapeDtypeStruct((H, H), jnp.float32),
        ),
        in_specs=[vmem() for _ in range(9)],
        out_specs=(vmem(), vmem(), vmem()),
        scratch_shapes=[pltpu.VMEM((N, H, Lout + H), jnp.bfloat16)],   # fused [x_t | h] staging
        input_output_aliases={5: 1, 6: 2},                             # h0 -> hn, c0 -> cn
    )(patches_t, wc_t, bc, w_stack, bl, h0_2d, c0_2d, we, be)

    return out, (hn[None], cn[None])                                # hidden back to (1, H, H)


# --------------------------------------------------------------------------- #
# Pure-JAX reference (for correctness check)
# --------------------------------------------------------------------------- #
def reference_forward(x_ncl, params, hidden):
    with jax.default_matmul_precision("highest"):
        N, C, L = x_ncl.shape
        W = params["conv_w"]
        H, K = W.shape[0], W.shape[2]
        Lout = L - K + 1
        patches = jnp.stack([x_ncl[:, :, t:t + K] for t in range(Lout)], axis=2)  # (N,C,Lout,K)
        conv = jnp.einsum("nclk,ock->nol", patches, W) + params["conv_b"][None, :, None]
        conv = jnp.maximum(conv, 0.0)                              # (N, H, Lout) = (seq, batch, feat)

        h, c = hidden[0][0], hidden[1][0]
        b = params["b_ih"] + params["b_hh"]
        hs = []
        for n in range(N):
            gates = conv[n] @ params["w_ih"].T + h @ params["w_hh"].T + b
            i = jax.nn.sigmoid(gates[:, :H])
            f = jax.nn.sigmoid(gates[:, H:2 * H])
            g = jnp.tanh(gates[:, 2 * H:3 * H])
            o = jax.nn.sigmoid(gates[:, 3 * H:4 * H])
            c = f * c + i * g
            h = o * jnp.tanh(c)
            hs.append(h)
        lstm_out = jnp.stack(hs, axis=0)                           # (N, H, H)
        pooled = lstm_out.mean(-1)                                 # (N, H)
        out = pooled @ params["embed_w"].T + params["embed_b"]
        return out, (h[None], c[None])


def init_params(key, H, K, O):
    ks = jax.random.split(key, 8)
    s = 0.1
    return dict(
        conv_w=jax.random.normal(ks[0], (H, H, K), jnp.float32) * s,   # Conv1d(H, H, K)
        conv_b=jax.random.normal(ks[1], (H,), jnp.float32) * s,
        w_ih=jax.random.normal(ks[2], (4 * H, H), jnp.float32) * s,    # LSTM weight_ih_l0
        w_hh=jax.random.normal(ks[3], (4 * H, H), jnp.float32) * s,    # LSTM weight_hh_l0
        b_ih=jax.random.normal(ks[4], (4 * H,), jnp.float32) * s,
        b_hh=jax.random.normal(ks[5], (4 * H,), jnp.float32) * s,
        embed_w=jax.random.normal(ks[6], (O, H), jnp.float32) * s,     # Linear(H, O)
        embed_b=jax.random.normal(ks[7], (O,), jnp.float32) * s,
    )


if __name__ == "__main__":
    # Module hyper-params: input_shape=(H, K), hidden_shape=H, output_shape=O
    H, K, O = 32, 4, 16
    N = 8                       # conv batch == LSTM sequence length
    L = K + H - 1               # so conv output length == H (the LSTM input_size)

    key = jax.random.PRNGKey(0)
    kx, kh, kc, kp = jax.random.split(key, 4)
    x = jax.random.normal(kx, (N, H, L), jnp.float32)            # PyTorch NCL input
    h0 = jax.random.normal(kh, (1, H, H), jnp.float32) * 0.1     # (num_layers, batch=H, H)
    c0 = jax.random.normal(kc, (1, H, H), jnp.float32) * 0.1
    params = init_params(kp, H, K, O)

    out, (hn, cn) = character_network_forward(x, params, (h0, c0))
    jax.block_until_ready((out, hn, cn))

    ref_out, (ref_hn, ref_cn) = reference_forward(x, params, (h0, c0))
    assert out.shape == (N, O) and hn.shape == (1, H, H) and cn.shape == (1, H, H)
    assert jnp.allclose(out, ref_out, atol=1e-2, rtol=1e-2)
    assert jnp.allclose(hn, ref_hn, atol=1e-2, rtol=1e-2)
    assert jnp.allclose(cn, ref_cn, atol=1e-2, rtol=1e-2)
    print("KERNEL_OK")
</pallas_src>

<mosaic_0001>
module attributes {stable_mosaic.version = 11 : i64} {
  func.func @charnet_kernel(%arg0: memref<128x256xbf16, #tpu.memory_space<vmem>>, %arg1: memref<32x128xbf16, #tpu.memory_space<vmem>>, %arg2: memref<32x1xf32, #tpu.memory_space<vmem>>, %arg3: memref<64x128xbf16, #tpu.memory_space<vmem>>, %arg4: memref<1x128xf32, #tpu.memory_space<vmem>>, %arg5: memref<32x32xf32, #tpu.memory_space<vmem>>, %arg6: memref<32x32xf32, #tpu.memory_space<vmem>>, %arg7: memref<32x16xf32, #tpu.memory_space<vmem>>, %arg8: memref<1x16xf32, #tpu.memory_space<vmem>>, %arg9: memref<8x16xf32, #tpu.memory_space<vmem>>, %arg10: memref<32x32xf32, #tpu.memory_space<vmem>>, %arg11: memref<32x32xf32, #tpu.memory_space<vmem>>, %arg12: memref<8x32x64xbf16, #tpu.memory_space<vmem>>) attributes {dimension_semantics = [], scalar_prefetch = 0 : i64, scratch_operands = 1 : i64, tpu.core_type = #tpu.core_type<tc>} {
    %c0 = arith.constant 0 : index
    %c0_0 = arith.constant 0 : index
    %0 = vector.load %arg1[%c0, %c0_0] : memref<32x128xbf16, #tpu.memory_space<vmem>>, vector<32x128xbf16>
    %c0_1 = arith.constant 0 : index
    %c0_2 = arith.constant 0 : index
    %1 = vector.load %arg0[%c0_1, %c0_2] : memref<128x256xbf16, #tpu.memory_space<vmem>>, vector<128x256xbf16>
    %cst = arith.constant dense<0.000000e+00> : vector<32x256xf32>
    %2 = tpu.matmul %0, %1, %cst {dimension_numbers = #tpu.dot_dimension_numbers<[1], [0], [0], [1], [0, 0, 1, 1], [], []>} : vector<32x128xbf16>, vector<128x256xbf16>, vector<32x256xf32> -> vector<32x256xf32>
    %c0_3 = arith.constant 0 : index
    %c0_4 = arith.constant 0 : index
    %3 = vector.load %arg2[%c0_3, %c0_4] : memref<32x1xf32, #tpu.memory_space<vmem>>, vector<32x1xf32>
    %4 = vector.broadcast %3 : vector<32x1xf32> to vector<32x256xf32>
    %5 = arith.addf %2, %4 : vector<32x256xf32>
    %cst_5 = arith.constant 0.000000e+00 : f32
    %6 = vector.broadcast %cst_5 : f32 to vector<32x256xf32>
    %7 = arith.maximumf %5, %6 : vector<32x256xf32>
    %8 = arith.truncf %7 : vector<32x256xf32> to vector<32x256xbf16>
    %9 = vector.extract_strided_slice %8 {offsets = [0, 0], sizes = [32, 32], strides = [1, 1]} : vector<32x256xbf16> to vector<32x32xbf16>
    %c0_6 = arith.constant 0 : index
    %c0_7 = arith.constant 0 : index
    %c0_8 = arith.constant 0 : index
    %10 = vector.load %arg12[%c0_6, %c0_7, %c0_8] : memref<8x32x64xbf16, #tpu.memory_space<vmem>>, vector<1x32x32xbf16>
    %11 = vector.shape_cast %10 : vector<1x32x32xbf16> to vector<32x32xbf16>
    %12 = vector.shape_cast %9 : vector<32x32xbf16> to vector<1x32x32xbf16>
    tpu.vector_store %arg12[%c0_6, %c0_7, %c0_8], %12 {strides = array<i32>} : memref<8x32x64xbf16, #tpu.memory_space<vmem>>, vector<1x32x32xbf16>,
    %13 = vector.extract_strided_slice %8 {offsets = [0, 32], sizes = [32, 32], strides = [1, 1]} : vector<32x256xbf16> to vector<32x32xbf16>
    %c1 = arith.constant 1 : index
    %c0_9 = arith.constant 0 : index
    %c0_10 = arith.constant 0 : index
    %14 = vector.load %arg12[%c1, %c0_9, %c0_10] : memref<8x32x64xbf16, #tpu.memory_space<vmem>>, vector<1x32x32xbf16>
    %15 = vector.shape_cast %14 : vector<1x32x32xbf16> to vector<32x32xbf16>
    %16 = vector.shape_cast %13 : vector<32x32xbf16> to vector<1x32x32xbf16>
    tpu.vector_store %arg12[%c1, %c0_9, %c0_10], %16 {strides = array<i32>} : memref<8x32x64xbf16, #tpu.memory_space<vmem>>, vector<1x32x32xbf16>,
    %17 = vector.extract_strided_slice %8 {offsets = [0, 64], sizes = [32, 32], strides = [1, 1]} : vector<32x256xbf16> to vector<32x32xbf16>
    %c2 = arith.constant 2 : index
    %c0_11 = arith.constant 0 : index
    %c0_12 = arith.constant 0 : index
    %18 = vector.load %arg12[%c2, %c0_11, %c0_12] : memref<8x32x64xbf16, #tpu.memory_space<vmem>>, vector<1x32x32xbf16>
    %19 = vector.shape_cast %18 : vector<1x32x32xbf16> to vector<32x32xbf16>
    %20 = vector.shape_cast %17 : vector<32x32xbf16> to vector<1x32x32xbf16>
    tpu.vector_store %arg12[%c2, %c0_11, %c0_12], %20 {strides = array<i32>} : memref<8x32x64xbf16, #tpu.memory_space<vmem>>, vector<1x32x32xbf16>,
    %21 = vector.extract_strided_slice %8 {offsets = [0, 96], sizes = [32, 32], strides = [1, 1]} : vector<32x256xbf16> to vector<32x32xbf16>
    %c3 = arith.constant 3 : index
    %c0_13 = arith.constant 0 : index
    %c0_14 = arith.constant 0 : index
    %22 = vector.load %arg12[%c3, %c0_13, %c0_14] : memref<8x32x64xbf16, #tpu.memory_space<vmem>>, vector<1x32x32xbf16>
    %23 = vector.shape_cast %22 : vector<1x32x32xbf16> to vector<32x32xbf16>
    %24 = vector.shape_cast %21 : vector<32x32xbf16> to vector<1x32x32xbf16>
    tpu.vector_store %arg12[%c3, %c0_13, %c0_14], %24 {strides = array<i32>} : memref<8x32x64xbf16, #tpu.memory_space<vmem>>, vector<1x32x32xbf16>,
    %25 = vector.extract_strided_slice %8 {offsets = [0, 128], sizes = [32, 32], strides = [1, 1]} : vector<32x256xbf16> to vector<32x32xbf16>
    %c4 = arith.constant 4 : index
    %c0_15 = arith.constant 0 : index
    %c0_16 = arith.constant 0 : index
    %26 = vector.load %arg12[%c4, %c0_15, %c0_16] : memref<8x32x64xbf16, #tpu.memory_space<vmem>>, vector<1x32x32xbf16>
    %27 = vector.shape_cast %26 : vector<1x32x32xbf16> to vector<32x32xbf16>
    %28 = vector.shape_cast %25 : vector<32x32xbf16> to vector<1x32x32xbf16>
    tpu.vector_store %arg12[%c4, %c0_15, %c0_16], %28 {strides = array<i32>} : memref<8x32x64xbf16, #tpu.memory_space<vmem>>, vector<1x32x32xbf16>,
    %29 = vector.extract_strided_slice %8 {offsets = [0, 160], sizes = [32, 32], strides = [1, 1]} : vector<32x256xbf16> to vector<32x32xbf16>
    %c5 = arith.constant 5 : index
    %c0_17 = arith.constant 0 : index
    %c0_18 = arith.constant 0 : index
    %30 = vector.load %arg12[%c5, %c0_17, %c0_18] : memref<8x32x64xbf16, #tpu.memory_space<vmem>>, vector<1x32x32xbf16>
    %31 = vector.shape_cast %30 : vector<1x32x32xbf16> to vector<32x32xbf16>
    %32 = vector.shape_cast %29 : vector<32x32xbf16> to vector<1x32x32xbf16>
    tpu.vector_store %arg12[%c5, %c0_17, %c0_18], %32 {strides = array<i32>} : memref<8x32x64xbf16, #tpu.memory_space<vmem>>, vector<1x32x32xbf16>,
    %33 = vector.extract_strided_slice %8 {offsets = [0, 192], sizes = [32, 32], strides = [1, 1]} : vector<32x256xbf16> to vector<32x32xbf16>
    %c6 = arith.constant 6 : index
    %c0_19 = arith.constant 0 : index
    %c0_20 = arith.constant 0 : index
    %34 = vector.load %arg12[%c6, %c0_19, %c0_20] : memref<8x32x64xbf16, #tpu.memory_space<vmem>>, vector<1x32x32xbf16>
    %35 = vector.shape_cast %34 : vector<1x32x32xbf16> to vector<32x32xbf16>
    %36 = vector.shape_cast %33 : vector<32x32xbf16> to vector<1x32x32xbf16>
    tpu.vector_store %arg12[%c6, %c0_19, %c0_20], %36 {strides = array<i32>} : memref<8x32x64xbf16, #tpu.memory_space<vmem>>, vector<1x32x32xbf16>,
    %37 = vector.extract_strided_slice %8 {offsets = [0, 224], sizes = [32, 32], strides = [1, 1]} : vector<32x256xbf16> to vector<32x32xbf16>
    %c7 = arith.constant 7 : index
    %c0_21 = arith.constant 0 : index
    %c0_22 = arith.constant 0 : index
    %38 = vector.load %arg12[%c7, %c0_21, %c0_22] : memref<8x32x64xbf16, #tpu.memory_space<vmem>>, vector<1x32x32xbf16>
    %39 = vector.shape_cast %38 : vector<1x32x32xbf16> to vector<32x32xbf16>
    %40 = vector.shape_cast %37 : vector<32x32xbf16> to vector<1x32x32xbf16>
    tpu.vector_store %arg12[%c7, %c0_21, %c0_22], %40 {strides = array<i32>} : memref<8x32x64xbf16, #tpu.memory_space<vmem>>, vector<1x32x32xbf16>,
    %c0_23 = arith.constant 0 : index
    %c0_24 = arith.constant 0 : index
    %41 = vector.load %arg3[%c0_23, %c0_24] : memref<64x128xbf16, #tpu.memory_space<vmem>>, vector<64x128xbf16>
    %c0_25 = arith.constant 0 : index
    %c0_26 = arith.constant 0 : index
    %42 = vector.load %arg4[%c0_25, %c0_26] : memref<1x128xf32, #tpu.memory_space<vmem>>, vector<1x128xf32>
    %c0_27 = arith.constant 0 : index
    %c0_28 = arith.constant 0 : index
    %43 = vector.load %arg5[%c0_27, %c0_28] : memref<32x32xf32, #tpu.memory_space<vmem>>, vector<32x32xf32>
    %c0_29 = arith.constant 0 : index
    %c0_30 = arith.constant 0 : index
    %44 = vector.load %arg6[%c0_29, %c0_30] : memref<32x32xf32, #tpu.memory_space<vmem>>, vector<32x32xf32>
    %45 = tpu.iota {dimensions = array<i32: 1>} : vector<32x8xi32>
    %cst_31 = arith.constant 0.000000e+00 : f32
    %46 = vector.broadcast %cst_31 : f32 to vector<32x8xf32>
    %47 = arith.truncf %43 : vector<32x32xf32> to vector<32x32xbf16>
    %c0_32 = arith.constant 0 : index
    %c0_33 = arith.constant 0 : index
    %c32 = arith.constant 32 : index
    %48 = vector.load %arg12[%c0_32, %c0_33, %c32] : memref<8x32x64xbf16, #tpu.memory_space<vmem>>, vector<1x32x32xbf16>
    %49 = vector.shape_cast %48 : vector<1x32x32xbf16> to vector<32x32xbf16>
    %50 = vector.shape_cast %47 : vector<32x32xbf16> to vector<1x32x32xbf16>
    tpu.vector_store %arg12[%c0_32, %c0_33, %c32], %50 {strides = array<i32>} : memref<8x32x64xbf16, #tpu.memory_space<vmem>>, vector<1x32x32xbf16>,
    %c0_34 = arith.constant 0 : index
    %c0_35 = arith.constant 0 : index
    %c0_36 = arith.constant 0 : index
    %51 = vector.load %arg12[%c0_34, %c0_35, %c0_36] : memref<8x32x64xbf16, #tpu.memory_space<vmem>>, vector<1x32x64xbf16>
    %52 = vector.shape_cast %51 : vector<1x32x64xbf16> to vector<32x64xbf16>
    %cst_37 = arith.constant dense<0.000000e+00> : vector<32x128xf32>
    %53 = tpu.matmul %52, %41, %cst_37 {dimension_numbers = #tpu.dot_dimension_numbers<[1], [0], [0], [1], [0, 0, 1, 1], [], []>} : vector<32x64xbf16>, vector<64x128xbf16>, vector<32x128xf32> -> vector<32x128xf32>
    %54 = vector.broadcast %42 : vector<1x128xf32> to vector<32x128xf32>
    %55 = arith.addf %53, %54 : vector<32x128xf32>
    %56 = arith.negf %55 : vector<32x128xf32>
    %57 = math.exp %56 : vector<32x128xf32>
    %cst_38 = arith.constant 1.000000e+00 : f32
    %58 = vector.broadcast %cst_38 : f32 to vector<32x128xf32>
    %59 = arith.addf %58, %57 : vector<32x128xf32>
    %60 = arith.divf %58, %59 : vector<32x128xf32>
    %61 = vector.extract_strided_slice %60 {offsets = [0, 0], sizes = [32, 32], strides = [1, 1]} : vector<32x128xf32> to vector<32x32xf32>
    %62 = vector.extract_strided_slice %60 {offsets = [0, 32], sizes = [32, 32], strides = [1, 1]} : vector<32x128xf32> to vector<32x32xf32>
    %63 = vector.extract_strided_slice %60 {offsets = [0, 64], sizes = [32, 32], strides = [1, 1]} : vector<32x128xf32> to vector<32x32xf32>
    %64 = vector.extract_strided_slice %60 {offsets = [0, 96], sizes = [32, 32], strides = [1, 1]} : vector<32x128xf32> to vector<32x32xf32>
    %cst_39 = arith.constant 2.000000e+00 : f32
    %65 = vector.broadcast %cst_39 : f32 to vector<32x32xf32>
    %66 = arith.mulf %65, %64 : vector<32x32xf32>
    %cst_40 = arith.constant 1.000000e+00 : f32
    %67 = vector.broadcast %cst_40 : f32 to vector<32x32xf32>
    %68 = arith.subf %66, %67 : vector<32x32xf32>
    %69 = arith.mulf %62, %44 : vector<32x32xf32>
    %70 = arith.mulf %61, %68 : vector<32x32xf32>
    %71 = arith.addf %69, %70 : vector<32x32xf32>
    %72 = math.tanh %71 : vector<32x32xf32>
    %73 = arith.mulf %63, %72 : vector<32x32xf32>
    %cst_41 = arith.constant dense<0.000000e+00> : vector<32xf32>
    %74 = vector.multi_reduction <add>, %73, %cst_41 [1] : vector<32x32xf32> to vector<32xf32>
    %75 = vector.shape_cast %74 : vector<32xf32> to vector<32x1xf32>
    %cst_42 = arith.constant 3.125000e-02 : f32
    %76 = vector.broadcast %cst_42 : f32 to vector<32x1xf32>
    %77 = arith.mulf %75, %76 : vector<32x1xf32>
    %c0_i32 = arith.constant 0 : i32
    %78 = vector.broadcast %c0_i32 : i32 to vector<32x8xi32>
    %79 = arith.cmpi eq, %45, %78 : vector<32x8xi32>
    %80 = vector.shape_cast %77 : vector<32x1xf32> to vector<32x1xf32>
    %81 = vector.broadcast %80 : vector<32x1xf32> to vector<32x8xf32>
    %82 = arith.select %79, %81, %46 : vector<32x8xi1>, vector<32x8xf32>
    %83 = arith.truncf %73 : vector<32x32xf32> to vector<32x32xbf16>
    %c1_43 = arith.constant 1 : index
    %c0_44 = arith.constant 0 : index
    %c32_45 = arith.constant 32 : index
    %84 = vector.load %arg12[%c1_43, %c0_44, %c32_45] : memref<8x32x64xbf16, #tpu.memory_space<vmem>>, vector<1x32x32xbf16>
    %85 = vector.shape_cast %84 : vector<1x32x32xbf16> to vector<32x32xbf16>
    %86 = vector.shape_cast %83 : vector<32x32xbf16> to vector<1x32x32xbf16>
    tpu.vector_store %arg12[%c1_43, %c0_44, %c32_45], %86 {strides = array<i32>} : memref<8x32x64xbf16, #tpu.memory_space<vmem>>, vector<1x32x32xbf16>,
    %c1_46 = arith.constant 1 : index
    %c0_47 = arith.constant 0 : index
    %c0_48 = arith.constant 0 : index
    %87 = vector.load %arg12[%c1_46, %c0_47, %c0_48] : memref<8x32x64xbf16, #tpu.memory_space<vmem>>, vector<1x32x64xbf16>
    %88 = vector.shape_cast %87 : vector<1x32x64xbf16> to vector<32x64xbf16>
    %cst_49 = arith.constant dense<0.000000e+00> : vector<32x128xf32>
    %89 = tpu.matmul %88, %41, %cst_49 {dimension_numbers = #tpu.dot_dimension_numbers<[1], [0], [0], [1], [0, 0, 1, 1], [], []>} : vector<32x64xbf16>, vector<64x128xbf16>, vector<32x128xf32> -> vector<32x128xf32>
    %90 = vector.broadcast %42 : vector<1x128xf32> to vector<32x128xf32>
    %91 = arith.addf %89, %90 : vector<32x128xf32>
    %92 = arith.negf %91 : vector<32x128xf32>
    %93 = math.exp %92 : vector<32x128xf32>
    %cst_50 = arith.constant 1.000000e+00 : f32
    %94 = vector.broadcast %cst_50 : f32 to vector<32x128xf32>
    %95 = arith.addf %94, %93 : vector<32x128xf32>
    %96 = arith.divf %94, %95 : vector<32x128xf32>
    %97 = vector.extract_strided_slice %96 {offsets = [0, 0], sizes = [32, 32], strides = [1, 1]} : vector<32x128xf32> to vector<32x32xf32>
    %98 = vector.extract_strided_slice %96 {offsets = [0, 32], sizes = [32, 32], strides = [1, 1]} : vector<32x128xf32> to vector<32x32xf32>
    %99 = vector.extract_strided_slice %96 {offsets = [0, 64], sizes = [32, 32], strides = [1, 1]} : vector<32x128xf32> to vector<32x32xf32>
    %100 = vector.extract_strided_slice %96 {offsets = [0, 96], sizes = [32, 32], strides = [1, 1]} : vector<32x128xf32> to vector<32x32xf32>
    %cst_51 = arith.constant 2.000000e+00 : f32
    %101 = vector.broadcast %cst_51 : f32 to vector<32x32xf32>
    %102 = arith.mulf %101, %100 : vector<32x32xf32>
    %cst_52 = arith.constant 1.000000e+00 : f32
    %103 = vector.broadcast %cst_52 : f32 to vector<32x32xf32>
    %104 = arith.subf %102, %103 : vector<32x32xf32>
    %105 = arith.mulf %98, %71 : vector<32x32xf32>
    %106 = arith.mulf %97, %104 : vector<32x32xf32>
    %107 = arith.addf %105, %106 : vector<32x32xf32>
    %108 = math.tanh %107 : vector<32x32xf32>
    %109 = arith.mulf %99, %108 : vector<32x32xf32>
    %cst_53 = arith.constant dense<0.000000e+00> : vector<32xf32>
    %110 = vector.multi_reduction <add>, %109, %cst_53 [1] : vector<32x32xf32> to vector<32xf32>
    %111 = vector.shape_cast %110 : vector<32xf32> to vector<32x1xf32>
    %cst_54 = arith.constant 3.125000e-02 : f32
    %112 = vector.broadcast %cst_54 : f32 to vector<32x1xf32>
    %113 = arith.mulf %111, %112 : vector<32x1xf32>
    %c1_i32 = arith.constant 1 : i32
    %114 = vector.broadcast %c1_i32 : i32 to vector<32x8xi32>
    %115 = arith.cmpi eq, %45, %114 : vector<32x8xi32>
    %116 = vector.shape_cast %113 : vector<32x1xf32> to vector<32x1xf32>
    %117 = vector.broadcast %116 : vector<32x1xf32> to vector<32x8xf32>
    %118 = arith.select %115, %117, %82 : vector<32x8xi1>, vector<32x8xf32>
    %119 = arith.truncf %109 : vector<32x32xf32> to vector<32x32xbf16>
    %c2_55 = arith.constant 2 : index
    %c0_56 = arith.constant 0 : index
    %c32_57 = arith.constant 32 : index
    %120 = vector.load %arg12[%c2_55, %c0_56, %c32_57] : memref<8x32x64xbf16, #tpu.memory_space<vmem>>, vector<1x32x32xbf16>
    %121 = vector.shape_cast %120 : vector<1x32x32xbf16> to vector<32x32xbf16>
    %122 = vector.shape_cast %119 : vector<32x32xbf16> to vector<1x32x32xbf16>
    tpu.vector_store %arg12[%c2_55, %c0_56, %c32_57], %122 {strides = array<i32>} : memref<8x32x64xbf16, #tpu.memory_space<vmem>>, vector<1x32x32xbf16>,
    %c2_58 = arith.constant 2 : index
    %c0_59 = arith.constant 0 : index
    %c0_60 = arith.constant 0 : index
    %123 = vector.load %arg12[%c2_58, %c0_59, %c0_60] : memref<8x32x64xbf16, #tpu.memory_space<vmem>>, vector<1x32x64xbf16>
    %124 = vector.shape_cast %123 : vector<1x32x64xbf16> to vector<32x64xbf16>
    %cst_61 = arith.constant dense<0.000000e+00> : vector<32x128xf32>
    %125 = tpu.matmul %124, %41, %cst_61 {dimension_numbers = #tpu.dot_dimension_numbers<[1], [0], [0], [1], [0, 0, 1, 1], [], []>} : vector<32x64xbf16>, vector<64x128xbf16>, vector<32x128xf32> -> vector<32x128xf32>
    %126 = vector.broadcast %42 : vector<1x128xf32> to vector<32x128xf32>
    %127 = arith.addf %125, %126 : vector<32x128xf32>
    %128 = arith.negf %127 : vector<32x128xf32>
    %129 = math.exp %128 : vector<32x128xf32>
    %cst_62 = arith.constant 1.000000e+00 : f32
    %130 = vector.broadcast %cst_62 : f32 to vector<32x128xf32>
    %131 = arith.addf %130, %129 : vector<32x128xf32>
    %132 = arith.divf %130, %131 : vector<32x128xf32>
    %133 = vector.extract_strided_slice %132 {offsets = [0, 0], sizes = [32, 32], strides = [1, 1]} : vector<32x128xf32> to vector<32x32xf32>
    %134 = vector.extract_strided_slice %132 {offsets = [0, 32], sizes = [32, 32], strides = [1, 1]} : vector<32x128xf32> to vector<32x32xf32>
    %135 = vector.extract_strided_slice %132 {offsets = [0, 64], sizes = [32, 32], strides = [1, 1]} : vector<32x128xf32> to vector<32x32xf32>
    %136 = vector.extract_strided_slice %132 {offsets = [0, 96], sizes = [32, 32], strides = [1, 1]} : vector<32x128xf32> to vector<32x32xf32>
    %cst_63 = arith.constant 2.000000e+00 : f32
    %137 = vector.broadcast %cst_63 : f32 to vector<32x32xf32>
    %138 = arith.mulf %137, %136 : vector<32x32xf32>
    %cst_64 = arith.constant 1.000000e+00 : f32
    %139 = vector.broadcast %cst_64 : f32 to vector<32x32xf32>
    %140 = arith.subf %138, %139 : vector<32x32xf32>
    %141 = arith.mulf %134, %107 : vector<32x32xf32>
    %142 = arith.mulf %133, %140 : vector<32x32xf32>
    %143 = arith.addf %141, %142 : vector<32x32xf32>
    %144 = math.tanh %143 : vector<32x32xf32>
    %145 = arith.mulf %135, %144 : vector<32x32xf32>
    %cst_65 = arith.constant dense<0.000000e+00> : vector<32xf32>
    %146 = vector.multi_reduction <add>, %145, %cst_65 [1] : vector<32x32xf32> to vector<32xf32>
    %147 = vector.shape_cast %146 : vector<32xf32> to vector<32x1xf32>
    %cst_66 = arith.constant 3.125000e-02 : f32
    %148 = vector.broadcast %cst_66 : f32 to vector<32x1xf32>
    %149 = arith.mulf %147, %148 : vector<32x1xf32>
    %c2_i32 = arith.constant 2 : i32
    %150 = vector.broadcast %c2_i32 : i32 to vector<32x8xi32>
    %151 = arith.cmpi eq, %45, %150 : vector<32x8xi32>
    %152 = vector.shape_cast %149 : vector<32x1xf32> to vector<32x1xf32>
    %153 = vector.broadcast %152 : vector<32x1xf32> to vector<32x8xf32>
    %154 = arith.select %151, %153, %118 : vector<32x8xi1>, vector<32x8xf32>
    %155 = arith.truncf %145 : vector<32x32xf32> to vector<32x32xbf16>
    %c3_67 = arith.constant 3 : index
    %c0_68 = arith.constant 0 : index
    %c32_69 = arith.constant 32 : index
    %156 = vector.load %arg12[%c3_67, %c0_68, %c32_69] : memref<8x32x64xbf16, #tpu.memory_space<vmem>>, vector<1x32x32xbf16>
    %157 = vector.shape_cast %156 : vector<1x32x32xbf16> to vector<32x32xbf16>
    %158 = vector.shape_cast %155 : vector<32x32xbf16> to vector<1x32x32xbf16>
    tpu.vector_store %arg12[%c3_67, %c0_68, %c32_69], %158 {strides = array<i32>} : memref<8x32x64xbf16, #tpu.memory_space<vmem>>, vector<1x32x32xbf16>,
    %c3_70 = arith.constant 3 : index
    %c0_71 = arith.constant 0 : index
    %c0_72 = arith.constant 0 : index
    %159 = vector.load %arg12[%c3_70, %c0_71, %c0_72] : memref<8x32x64xbf16, #tpu.memory_space<vmem>>, vector<1x32x64xbf16>
    %160 = vector.shape_cast %159 : vector<1x32x64xbf16> to vector<32x64xbf16>
    %cst_73 = arith.constant dense<0.000000e+00> : vector<32x128xf32>
    %161 = tpu.matmul %160, %41, %cst_73 {dimension_numbers = #tpu.dot_dimension_numbers<[1], [0], [0], [1], [0, 0, 1, 1], [], []>} : vector<32x64xbf16>, vector<64x128xbf16>, vector<32x128xf32> -> vector<32x128xf32>
    %162 = vector.broadcast %42 : vector<1x128xf32> to vector<32x128xf32>
    %163 = arith.addf %161, %162 : vector<32x128xf32>
    %164 = arith.negf %163 : vector<32x128xf32>
    %165 = math.exp %164 : vector<32x128xf32>
    %cst_74 = arith.constant 1.000000e+00 : f32
    %166 = vector.broadcast %cst_74 : f32 to vector<32x128xf32>
    %167 = arith.addf %166, %165 : vector<32x128xf32>
    %168 = arith.divf %166, %167 : vector<32x128xf32>
    %169 = vector.extract_strided_slice %168 {offsets = [0, 0], sizes = [32, 32], strides = [1, 1]} : vector<32x128xf32> to vector<32x32xf32>
    %170 = vector.extract_strided_slice %168 {offsets = [0, 32], sizes = [32, 32], strides = [1, 1]} : vector<32x128xf32> to vector<32x32xf32>
    %171 = vector.extract_strided_slice %168 {offsets = [0, 64], sizes = [32, 32], strides = [1, 1]} : vector<32x128xf32> to vector<32x32xf32>
    %172 = vector.extract_strided_slice %168 {offsets = [0, 96], sizes = [32, 32], strides = [1, 1]} : vector<32x128xf32> to vector<32x32xf32>
    %cst_75 = arith.constant 2.000000e+00 : f32
    %173 = vector.broadcast %cst_75 : f32 to vector<32x32xf32>
    %174 = arith.mulf %173, %172 : vector<32x32xf32>
    %cst_76 = arith.constant 1.000000e+00 : f32
    %175 = vector.broadcast %cst_76 : f32 to vector<32x32xf32>
    %176 = arith.subf %174, %175 : vector<32x32xf32>
    %177 = arith.mulf %170, %143 : vector<32x32xf32>
    %178 = arith.mulf %169, %176 : vector<32x32xf32>
    %179 = arith.addf %177, %178 : vector<32x32xf32>
    %180 = math.tanh %179 : vector<32x32xf32>
    %181 = arith.mulf %171, %180 : vector<32x32xf32>
    %cst_77 = arith.constant dense<0.000000e+00> : vector<32xf32>
    %182 = vector.multi_reduction <add>, %181, %cst_77 [1] : vector<32x32xf32> to vector<32xf32>
    %183 = vector.shape_cast %182 : vector<32xf32> to vector<32x1xf32>
    %cst_78 = arith.constant 3.125000e-02 : f32
    %184 = vector.broadcast %cst_78 : f32 to vector<32x1xf32>
    %185 = arith.mulf %183, %184 : vector<32x1xf32>
    %c3_i32 = arith.constant 3 : i32
    %186 = vector.broadcast %c3_i32 : i32 to vector<32x8xi32>
    %187 = arith.cmpi eq, %45, %186 : vector<32x8xi32>
    %188 = vector.shape_cast %185 : vector<32x1xf32> to vector<32x1xf32>
    %189 = vector.broadcast %188 : vector<32x1xf32> to vector<32x8xf32>
    %190 = arith.select %187, %189, %154 : vector<32x8xi1>, vector<32x8xf32>
    %191 = arith.truncf %181 : vector<32x32xf32> to vector<32x32xbf16>
    %c4_79 = arith.constant 4 : index
    %c0_80 = arith.constant 0 : index
    %c32_81 = arith.constant 32 : index
    %192 = vector.load %arg12[%c4_79, %c0_80, %c32_81] : memref<8x32x64xbf16, #tpu.memory_space<vmem>>, vector<1x32x32xbf16>
    %193 = vector.shape_cast %192 : vector<1x32x32xbf16> to vector<32x32xbf16>
    %194 = vector.shape_cast %191 : vector<32x32xbf16> to vector<1x32x32xbf16>
    tpu.vector_store %arg12[%c4_79, %c0_80, %c32_81], %194 {strides = array<i32>} : memref<8x32x64xbf16, #tpu.memory_space<vmem>>, vector<1x32x32xbf16>,
    %c4_82 = arith.constant 4 : index
    %c0_83 = arith.constant 0 : index
    %c0_84 = arith.constant 0 : index
    %195 = vector.load %arg12[%c4_82, %c0_83, %c0_84] : memref<8x32x64xbf16, #tpu.memory_space<vmem>>, vector<1x32x64xbf16>
    %196 = vector.shape_cast %195 : vector<1x32x64xbf16> to vector<32x64xbf16>
    %cst_85 = arith.constant dense<0.000000e+00> : vector<32x128xf32>
    %197 = tpu.matmul %196, %41, %cst_85 {dimension_numbers = #tpu.dot_dimension_numbers<[1], [0], [0], [1], [0, 0, 1, 1], [], []>} : vector<32x64xbf16>, vector<64x128xbf16>, vector<32x128xf32> -> vector<32x128xf32>
    %198 = vector.broadcast %42 : vector<1x128xf32> to vector<32x128xf32>
    %199 = arith.addf %197, %198 : vector<32x128xf32>
    %200 = arith.negf %199 : vector<32x128xf32>
    %201 = math.exp %200 : vector<32x128xf32>
    %cst_86 = arith.constant 1.000000e+00 : f32
    %202 = vector.broadcast %cst_86 : f32 to vector<32x128xf32>
    %203 = arith.addf %202, %201 : vector<32x128xf32>
    %204 = arith.divf %202, %203 : vector<32x128xf32>
    %205 = vector.extract_strided_slice %204 {offsets = [0, 0], sizes = [32, 32], strides = [1, 1]} : vector<32x128xf32> to vector<32x32xf32>
    %206 = vector.extract_strided_slice %204 {offsets = [0, 32], sizes = [32, 32], strides = [1, 1]} : vector<32x128xf32> to vector<32x32xf32>
    %207 = vector.extract_strided_slice %204 {offsets = [0, 64], sizes = [32, 32], strides = [1, 1]} : vector<32x128xf32> to vector<32x32xf32>
    %208 = vector.extract_strided_slice %204 {offsets = [0, 96], sizes = [32, 32], strides = [1, 1]} : vector<32x128xf32> to vector<32x32xf32>
    %cst_87 = arith.constant 2.000000e+00 : f32
    %209 = vector.broadcast %cst_87 : f32 to vector<32x32xf32>
    %210 = arith.mulf %209, %208 : vector<32x32xf32>
    %cst_88 = arith.constant 1.000000e+00 : f32
    %211 = vector.broadcast %cst_88 : f32 to vector<32x32xf32>
    %212 = arith.subf %210, %211 : vector<32x32xf32>
    %213 = arith.mulf %206, %179 : vector<32x32xf32>
    %214 = arith.mulf %205, %212 : vector<32x32xf32>
    %215 = arith.addf %213, %214 : vector<32x32xf32>
    %216 = math.tanh %215 : vector<32x32xf32>
    %217 = arith.mulf %207, %216 : vector<32x32xf32>
    %cst_89 = arith.constant dense<0.000000e+00> : vector<32xf32>
    %218 = vector.multi_reduction <add>, %217, %cst_89 [1] : vector<32x32xf32> to vector<32xf32>
    %219 = vector.shape_cast %218 : vector<32xf32> to vector<32x1xf32>
    %cst_90 = arith.constant 3.125000e-02 : f32
    %220 = vector.broadcast %cst_90 : f32 to vector<32x1xf32>
    %221 = arith.mulf %219, %220 : vector<32x1xf32>
    %c4_i32 = arith.constant 4 : i32
    %222 = vector.broadcast %c4_i32 : i32 to vector<32x8xi32>
    %223 = arith.cmpi eq, %45, %222 : vector<32x8xi32>
    %224 = vector.shape_cast %221 : vector<32x1xf32> to vector<32x1xf32>
    %225 = vector.broadcast %224 : vector<32x1xf32> to vector<32x8xf32>
    %226 = arith.select %223, %225, %190 : vector<32x8xi1>, vector<32x8xf32>
    %227 = arith.truncf %217 : vector<32x32xf32> to vector<32x32xbf16>
    %c5_91 = arith.constant 5 : index
    %c0_92 = arith.constant 0 : index
    %c32_93 = arith.constant 32 : index
    %228 = vector.load %arg12[%c5_91, %c0_92, %c32_93] : memref<8x32x64xbf16, #tpu.memory_space<vmem>>, vector<1x32x32xbf16>
    %229 = vector.shape_cast %228 : vector<1x32x32xbf16> to vector<32x32xbf16>
    %230 = vector.shape_cast %227 : vector<32x32xbf16> to vector<1x32x32xbf16>
    tpu.vector_store %arg12[%c5_91, %c0_92, %c32_93], %230 {strides = array<i32>} : memref<8x32x64xbf16, #tpu.memory_space<vmem>>, vector<1x32x32xbf16>,
    %c5_94 = arith.constant 5 : index
    %c0_95 = arith.constant 0 : index
    %c0_96 = arith.constant 0 : index
    %231 = vector.load %arg12[%c5_94, %c0_95, %c0_96] : memref<8x32x64xbf16, #tpu.memory_space<vmem>>, vector<1x32x64xbf16>
    %232 = vector.shape_cast %231 : vector<1x32x64xbf16> to vector<32x64xbf16>
    %cst_97 = arith.constant dense<0.000000e+00> : vector<32x128xf32>
    %233 = tpu.matmul %232, %41, %cst_97 {dimension_numbers = #tpu.dot_dimension_numbers<[1], [0], [0], [1], [0, 0, 1, 1], [], []>} : vector<32x64xbf16>, vector<64x128xbf16>, vector<32x128xf32> -> vector<32x128xf32>
    %234 = vector.broadcast %42 : vector<1x128xf32> to vector<32x128xf32>
    %235 = arith.addf %233, %234 : vector<32x128xf32>
    %236 = arith.negf %235 : vector<32x128xf32>
    %237 = math.exp %236 : vector<32x128xf32>
    %cst_98 = arith.constant 1.000000e+00 : f32
    %238 = vector.broadcast %cst_98 : f32 to vector<32x128xf32>
    %239 = arith.addf %238, %237 : vector<32x128xf32>
    %240 = arith.divf %238, %239 : vector<32x128xf32>
    %241 = vector.extract_strided_slice %240 {offsets = [0, 0], sizes = [32, 32], strides = [1, 1]} : vector<32x128xf32> to vector<32x32xf32>
    %242 = vector.extract_strided_slice %240 {offsets = [0, 32], sizes = [32, 32], strides = [1, 1]} : vector<32x128xf32> to vector<32x32xf32>
    %243 = vector.extract_strided_slice %240 {offsets = [0, 64], sizes = [32, 32], strides = [1, 1]} : vector<32x128xf32> to vector<32x32xf32>
    %244 = vector.extract_strided_slice %240 {offsets = [0, 96], sizes = [32, 32], strides = [1, 1]} : vector<32x128xf32> to vector<32x32xf32>
    %cst_99 = arith.constant 2.000000e+00 : f32
    %245 = vector.broadcast %cst_99 : f32 to vector<32x32xf32>
    %246 = arith.mulf %245, %244 : vector<32x32xf32>
    %cst_100 = arith.constant 1.000000e+00 : f32
    %247 = vector.broadcast %cst_100 : f32 to vector<32x32xf32>
    %248 = arith.subf %246, %247 : vector<32x32xf32>
    %249 = arith.mulf %242, %215 : vector<32x32xf32>
    %250 = arith.mulf %241, %248 : vector<32x32xf32>
    %251 = arith.addf %249, %250 : vector<32x32xf32>
    %252 = math.tanh %251 : vector<32x32xf32>
    %253 = arith.mulf %243, %252 : vector<32x32xf32>
    %cst_101 = arith.constant dense<0.000000e+00> : vector<32xf32>
    %254 = vector.multi_reduction <add>, %253, %cst_101 [1] : vector<32x32xf32> to vector<32xf32>
    %255 = vector.shape_cast %254 : vector<32xf32> to vector<32x1xf32>
    %cst_102 = arith.constant 3.125000e-02 : f32
    %256 = vector.broadcast %cst_102 : f32 to vector<32x1xf32>
    %257 = arith.mulf %255, %256 : vector<32x1xf32>
    %c5_i32 = arith.constant 5 : i32
    %258 = vector.broadcast %c5_i32 : i32 to vector<32x8xi32>
    %259 = arith.cmpi eq, %45, %258 : vector<32x8xi32>
    %260 = vector.shape_cast %257 : vector<32x1xf32> to vector<32x1xf32>
    %261 = vector.broadcast %260 : vector<32x1xf32> to vector<32x8xf32>
    %262 = arith.select %259, %261, %226 : vector<32x8xi1>, vector<32x8xf32>
    %263 = arith.truncf %253 : vector<32x32xf32> to vector<32x32xbf16>
    %c6_103 = arith.constant 6 : index
    %c0_104 = arith.constant 0 : index
    %c32_105 = arith.constant 32 : index
    %264 = vector.load %arg12[%c6_103, %c0_104, %c32_105] : memref<8x32x64xbf16, #tpu.memory_space<vmem>>, vector<1x32x32xbf16>
    %265 = vector.shape_cast %264 : vector<1x32x32xbf16> to vector<32x32xbf16>
    %266 = vector.shape_cast %263 : vector<32x32xbf16> to vector<1x32x32xbf16>
    tpu.vector_store %arg12[%c6_103, %c0_104, %c32_105], %266 {strides = array<i32>} : memref<8x32x64xbf16, #tpu.memory_space<vmem>>, vector<1x32x32xbf16>,
    %c6_106 = arith.constant 6 : index
    %c0_107 = arith.constant 0 : index
    %c0_108 = arith.constant 0 : index
    %267 = vector.load %arg12[%c6_106, %c0_107, %c0_108] : memref<8x32x64xbf16, #tpu.memory_space<vmem>>, vector<1x32x64xbf16>
    %268 = vector.shape_cast %267 : vector<1x32x64xbf16> to vector<32x64xbf16>
    %cst_109 = arith.constant dense<0.000000e+00> : vector<32x128xf32>
    %269 = tpu.matmul %268, %41, %cst_109 {dimension_numbers = #tpu.dot_dimension_numbers<[1], [0], [0], [1], [0, 0, 1, 1], [], []>} : vector<32x64xbf16>, vector<64x128xbf16>, vector<32x128xf32> -> vector<32x128xf32>
    %270 = vector.broadcast %42 : vector<1x128xf32> to vector<32x128xf32>
    %271 = arith.addf %269, %270 : vector<32x128xf32>
    %272 = arith.negf %271 : vector<32x128xf32>
    %273 = math.exp %272 : vector<32x128xf32>
    %cst_110 = arith.constant 1.000000e+00 : f32
    %274 = vector.broadcast %cst_110 : f32 to vector<32x128xf32>
    %275 = arith.addf %274, %273 : vector<32x128xf32>
    %276 = arith.divf %274, %275 : vector<32x128xf32>
    %277 = vector.extract_strided_slice %276 {offsets = [0, 0], sizes = [32, 32], strides = [1, 1]} : vector<32x128xf32> to vector<32x32xf32>
    %278 = vector.extract_strided_slice %276 {offsets = [0, 32], sizes = [32, 32], strides = [1, 1]} : vector<32x128xf32> to vector<32x32xf32>
    %279 = vector.extract_strided_slice %276 {offsets = [0, 64], sizes = [32, 32], strides = [1, 1]} : vector<32x128xf32> to vector<32x32xf32>
    %280 = vector.extract_strided_slice %276 {offsets = [0, 96], sizes = [32, 32], strides = [1, 1]} : vector<32x128xf32> to vector<32x32xf32>
    %cst_111 = arith.constant 2.000000e+00 : f32
    %281 = vector.broadcast %cst_111 : f32 to vector<32x32xf32>
    %282 = arith.mulf %281, %280 : vector<32x32xf32>
    %cst_112 = arith.constant 1.000000e+00 : f32
    %283 = vector.broadcast %cst_112 : f32 to vector<32x32xf32>
    %284 = arith.subf %282, %283 : vector<32x32xf32>
    %285 = arith.mulf %278, %251 : vector<32x32xf32>
    %286 = arith.mulf %277, %284 : vector<32x32xf32>
    %287 = arith.addf %285, %286 : vector<32x32xf32>
    %288 = math.tanh %287 : vector<32x32xf32>
    %289 = arith.mulf %279, %288 : vector<32x32xf32>
    %cst_113 = arith.constant dense<0.000000e+00> : vector<32xf32>
    %290 = vector.multi_reduction <add>, %289, %cst_113 [1] : vector<32x32xf32> to vector<32xf32>
    %291 = vector.shape_cast %290 : vector<32xf32> to vector<32x1xf32>
    %cst_114 = arith.constant 3.125000e-02 : f32
    %292 = vector.broadcast %cst_114 : f32 to vector<32x1xf32>
    %293 = arith.mulf %291, %292 : vector<32x1xf32>
    %c6_i32 = arith.constant 6 : i32
    %294 = vector.broadcast %c6_i32 : i32 to vector<32x8xi32>
    %295 = arith.cmpi eq, %45, %294 : vector<32x8xi32>
    %296 = vector.shape_cast %293 : vector<32x1xf32> to vector<32x1xf32>
    %297 = vector.broadcast %296 : vector<32x1xf32> to vector<32x8xf32>
    %298 = arith.select %295, %297, %262 : vector<32x8xi1>, vector<32x8xf32>
    %299 = arith.truncf %289 : vector<32x32xf32> to vector<32x32xbf16>
    %c7_115 = arith.constant 7 : index
    %c0_116 = arith.constant 0 : index
    %c32_117 = arith.constant 32 : index
    %300 = vector.load %arg12[%c7_115, %c0_116, %c32_117] : memref<8x32x64xbf16, #tpu.memory_space<vmem>>, vector<1x32x32xbf16>
    %301 = vector.shape_cast %300 : vector<1x32x32xbf16> to vector<32x32xbf16>
    %302 = vector.shape_cast %299 : vector<32x32xbf16> to vector<1x32x32xbf16>
    tpu.vector_store %arg12[%c7_115, %c0_116, %c32_117], %302 {strides = array<i32>} : memref<8x32x64xbf16, #tpu.memory_space<vmem>>, vector<1x32x32xbf16>,
    %c7_118 = arith.constant 7 : index
    %c0_119 = arith.constant 0 : index
    %c0_120 = arith.constant 0 : index
    %303 = vector.load %arg12[%c7_118, %c0_119, %c0_120] : memref<8x32x64xbf16, #tpu.memory_space<vmem>>, vector<1x32x64xbf16>
    %304 = vector.shape_cast %303 : vector<1x32x64xbf16> to vector<32x64xbf16>
    %cst_121 = arith.constant dense<0.000000e+00> : vector<32x128xf32>
    %305 = tpu.matmul %304, %41, %cst_121 {dimension_numbers = #tpu.dot_dimension_numbers<[1], [0], [0], [1], [0, 0, 1, 1], [], []>} : vector<32x64xbf16>, vector<64x128xbf16>, vector<32x128xf32> -> vector<32x128xf32>
    %306 = vector.broadcast %42 : vector<1x128xf32> to vector<32x128xf32>
    %307 = arith.addf %305, %306 : vector<32x128xf32>
    %308 = arith.negf %307 : vector<32x128xf32>
    %309 = math.exp %308 : vector<32x128xf32>
    %cst_122 = arith.constant 1.000000e+00 : f32
    %310 = vector.broadcast %cst_122 : f32 to vector<32x128xf32>
    %311 = arith.addf %310, %309 : vector<32x128xf32>
    %312 = arith.divf %310, %311 : vector<32x128xf32>
    %313 = vector.extract_strided_slice %312 {offsets = [0, 0], sizes = [32, 32], strides = [1, 1]} : vector<32x128xf32> to vector<32x32xf32>
    %314 = vector.extract_strided_slice %312 {offsets = [0, 32], sizes = [32, 32], strides = [1, 1]} : vector<32x128xf32> to vector<32x32xf32>
    %315 = vector.extract_strided_slice %312 {offsets = [0, 64], sizes = [32, 32], strides = [1, 1]} : vector<32x128xf32> to vector<32x32xf32>
    %316 = vector.extract_strided_slice %312 {offsets = [0, 96], sizes = [32, 32], strides = [1, 1]} : vector<32x128xf32> to vector<32x32xf32>
    %cst_123 = arith.constant 2.000000e+00 : f32
    %317 = vector.broadcast %cst_123 : f32 to vector<32x32xf32>
    %318 = arith.mulf %317, %316 : vector<32x32xf32>
    %cst_124 = arith.constant 1.000000e+00 : f32
    %319 = vector.broadcast %cst_124 : f32 to vector<32x32xf32>
    %320 = arith.subf %318, %319 : vector<32x32xf32>
    %321 = arith.mulf %314, %287 : vector<32x32xf32>
    %322 = arith.mulf %313, %320 : vector<32x32xf32>
    %323 = arith.addf %321, %322 : vector<32x32xf32>
    %324 = math.tanh %323 : vector<32x32xf32>
    %325 = arith.mulf %315, %324 : vector<32x32xf32>
    %cst_125 = arith.constant dense<0.000000e+00> : vector<32xf32>
    %326 = vector.multi_reduction <add>, %325, %cst_125 [1] : vector<32x32xf32> to vector<32xf32>
    %327 = vector.shape_cast %326 : vector<32xf32> to vector<32x1xf32>
    %cst_126 = arith.constant 3.125000e-02 : f32
    %328 = vector.broadcast %cst_126 : f32 to vector<32x1xf32>
    %329 = arith.mulf %327, %328 : vector<32x1xf32>
    %c7_i32 = arith.constant 7 : i32
    %330 = vector.broadcast %c7_i32 : i32 to vector<32x8xi32>
    %331 = arith.cmpi eq, %45, %330 : vector<32x8xi32>
    %332 = vector.shape_cast %329 : vector<32x1xf32> to vector<32x1xf32>
    %333 = vector.broadcast %332 : vector<32x1xf32> to vector<32x8xf32>
    %334 = arith.select %331, %333, %298 : vector<32x8xi1>, vector<32x8xf32>
    %335 = tpu.transpose %334, [1, 0] : vector<32x8xf32> -> vector<8x32xf32>
    %c0_127 = arith.constant 0 : index
    %c0_128 = arith.constant 0 : index
    %336 = vector.load %arg7[%c0_127, %c0_128] : memref<32x16xf32, #tpu.memory_space<vmem>>, vector<32x16xf32>
    %cst_129 = arith.constant dense<0.000000e+00> : vector<8x16xf32>
    %337 = tpu.matmul %335, %336, %cst_129 {dimension_numbers = #tpu.dot_dimension_numbers<[1], [0], [0], [1], [0, 0, 1, 1], [], []>} : vector<8x32xf32>, vector<32x16xf32>, vector<8x16xf32> -> vector<8x16xf32>
    %c0_130 = arith.constant 0 : index
    %c0_131 = arith.constant 0 : index
    %338 = vector.load %arg8[%c0_130, %c0_131] : memref<1x16xf32, #tpu.memory_space<vmem>>, vector<1x16xf32>
    %339 = vector.broadcast %338 : vector<1x16xf32> to vector<8x16xf32>
    %340 = arith.addf %337, %339 : vector<8x16xf32>
    %c0_132 = arith.constant 0 : index
    %c0_133 = arith.constant 0 : index
    %341 = vector.load %arg9[%c0_132, %c0_133] : memref<8x16xf32, #tpu.memory_space<vmem>>, vector<8x16xf32>
    tpu.vector_store %arg9[%c0_132, %c0_133], %340 {strides = array<i32>} : memref<8x16xf32, #tpu.memory_space<vmem>>, vector<8x16xf32>,
    %c0_134 = arith.constant 0 : index
    %c0_135 = arith.constant 0 : index
    %342 = vector.load %arg10[%c0_134, %c0_135] : memref<32x32xf32, #tpu.memory_space<vmem>>, vector<32x32xf32>
    tpu.vector_store %arg10[%c0_134, %c0_135], %325 {strides = array<i32>} : memref<32x32xf32, #tpu.memory_space<vmem>>, vector<32x32xf32>,
    %c0_136 = arith.constant 0 : index
    %c0_137 = arith.constant 0 : index
    %343 = vector.load %arg11[%c0_136, %c0_137] : memref<32x32xf32, #tpu.memory_space<vmem>>, vector<32x32xf32>
    tpu.vector_store %arg11[%c0_136, %c0_137], %323 {strides = array<i32>} : memref<32x32xf32, #tpu.memory_space<vmem>>, vector<32x32xf32>,
    return
  }
}

</mosaic_0001>

<bundles_post_ra>
// kernel: character_network_forward.1
= control target key start
LH: loop header
LB: loop body
LE: loop exit
PB: predicated region body
PF: predicated region fallthrough
CT: control target
= control target key end

     0   :  { %v3030_v25 = vmov 0   ;;  %s4226_s0 = inlined_call_operand.vmem [shape: bf16[128,256], index: 0, kind: input, shape index: {}]   ;;  %s4227_s1 = inlined_call_operand.vmem [shape: bf16[32,128], index: 1, kind: input, shape index: {}]   ;;  %s4228_s2 = inlined_call_operand.vmem [shape: f32[32,1], index: 2, kind: input, shape index: {}]   ;;  %s4229_s3 = inlined_call_operand.vmem [shape: bf16[64,128], index: 3, kind: input, shape index: {}]   ;;  %s4230_s4 = inlined_call_operand.vmem [shape: f32[1,128], index: 4, kind: input, shape index: {}]   ;;  %s4231_s5 = inlined_call_operand.vmem [shape: f32[32,32], index: 5, kind: input, shape index: {}, may-alias: {5,10}]   ;;  %s4232_s6 = inlined_call_operand.vmem [shape: f32[32,32], index: 6, kind: input, shape index: {}, may-alias: {6,11}]   ;;  %s4233_s7 = inlined_call_operand.vmem [shape: f32[32,16], index: 7, kind: input, shape index: {}]   ;;  %s4234_s8 = inlined_call_operand.vmem [shape: f32[1,16], index: 8, kind: input, shape index: {}]   ;;  %s4235_s9 = inlined_call_operand.hbm [shape: f32[8,16], index: 9, kind: output, shape index: {0}]   ;;  %s4236_s10 = inlined_call_operand.vmem [shape: f32[32,32], index: 10, kind: output, shape index: {1}, may-alias: {5,10}]   ;;  %s4237_s11 = inlined_call_operand.vmem [shape: f32[32,32], index: 11, kind: output, shape index: {2}, may-alias: {6,11}]  }
   0x1   :  { %v2595_v0 = vld [vmem:[%s4226_s0 + $0x70] sm:$0xf]  ;;  %v2779_v1 = vld [vmem:[%s4226_s0 + $0x74] sm:$0xf0]  ;;  %v2778_v2 = vld [vmem:[%s4226_s0 + $0x74] sm:$0xf]  ;;  %2806 = vset.pattern.permute.xlu0 %v3030_v25 }
   0x2   :  { %v2596_v3 = vor.u32 %v2779_v1, %v2595_v0  ;;  %v2597_v4 = vld [vmem:[%s4226_s0 + $0x78] sm:$0xf0]  ;;  %v2587_v5 = vld [vmem:[%s4226_s0 + $0x60] sm:$0xf]  ;;  %v2777_v6 = vld [vmem:[%s4226_s0 + $0x64] sm:$0xf0] }
   0x3   :  { %v2600_v7 = vor.u32 %v2778_v2, %v2597_v4  ;;  %v2776_v8 = vld [vmem:[%s4226_s0 + $0x64] sm:$0xf]  ;;  %v2589_v9 = vld [vmem:[%s4226_s0 + $0x68] sm:$0xf0]  ;;  %v2588_v10 = vor.u32 %v2777_v6, %v2587_v5  ;;  %v2579_v12 = vld [vmem:[%s4226_s0 + $0x50] sm:$0xf] }
   0x4   :  { %173 = vmatpush.bf16.msra.mxu0 %v2596_v3  ;;  %v2592_v11 = vor.u32 %v2776_v8, %v2589_v9  ;;  %v2775_v13 = vld [vmem:[%s4226_s0 + $0x54] sm:$0xf0]  ;;  %v2774_v14 = vld [vmem:[%s4226_s0 + $0x54] sm:$0xf]  ;;  %v2581_v15 = vld [vmem:[%s4226_s0 + $0x58] sm:$0xf0] }
   0x5   :  { %192 = vmatpush.bf16.msra.mxu1 %v2600_v7  ;;  %v2580_v16 = vor.u32 %v2775_v13, %v2579_v12  ;;  %v2584_v17 = vor.u32 %v2774_v14, %v2581_v15  ;;  %v2571_v18 = vld [vmem:[%s4226_s0 + $0x40] sm:$0xf]  ;;  %v2773_v19 = vld [vmem:[%s4226_s0 + $0x44] sm:$0xf0]  ;;  %v2772_v20 = vld [vmem:[%s4226_s0 + $0x44] sm:$0xf] }
   0x6   :  { %v2573_v21 = vld [vmem:[%s4226_s0 + $0x48] sm:$0xf0]  ;;  %v2572_v22 = vor.u32 %v2773_v19, %v2571_v18  ;;  %v2563_v23 = vld [vmem:[%s4226_s0 + $0x30] sm:$0xf]  ;;  %v2771_v24 = vld [vmem:[%s4226_s0 + $0x34] sm:$0xf0] }
   0x7   :  { %v57_v26 = vld [vmem:[%s4228_s2] sm:$0xff]  ;;  %v2576_v27 = vor.u32 %v2772_v20, %v2573_v21 }
   0x8   :  { %174 = vmatpush.bf16.msra.mxu0 %v2588_v10  ;;  %63 = vperm.xlu0 %2806, %v57_v26  }
   0x9   :  { %193 = vmatpush.bf16.msra.mxu1 %v2592_v11 }
   0xc   :  { %175 = vmatpush.bf16.msra.mxu0 %v2580_v16 }
   0xd   :  { %194 = vmatpush.bf16.msra.mxu1 %v2584_v17 }
   0xe   :  { %17 = vsyncpa [#allocation4], 0  ;;  %v2770_v28 = vld [vmem:[%s4226_s0 + $0x34] sm:$0xf]  ;;  %v2565_v29 = vld [vmem:[%s4226_s0 + $0x38] sm:$0xf0]  ;;  %2807 = vset.pattern.permute.xlu2 %v3030_v25  ;;  %v2564_v30 = vor.u32 %v2771_v24, %v2563_v23 }
   0xf   :  { %v2568_v31 = vor.u32 %v2770_v28, %v2565_v29  ;;  %v2555_v32 = vld [vmem:[%s4226_s0 + $0x20] sm:$0xf]  ;;  %v2769_v33 = vld [vmem:[%s4226_s0 + $0x24] sm:$0xf0]  ;;  %v2768_v34 = vld [vmem:[%s4226_s0 + $0x24] sm:$0xf] }
  0x10   :  { %176 = vmatpush.bf16.msra.mxu0 %v2572_v22  ;;  %v2557_v35 = vld [vmem:[%s4226_s0 + $0x28] sm:$0xf0]  ;;  %v344_v37 = vld [vmem:[%s4231_s5] sm:$0xff]  ;;  %v2556_v38 = vor.u32 %v2769_v33, %v2555_v32  ;;  %v2547_v41 = vld [vmem:[%s4226_s0 + $0x10] sm:$0xf]  ;;  %s3031_s24 = smov 32  }
  0x11   :  { %195 = vmatpush.bf16.msra.mxu1 %v2576_v27  ;;  %v58_v36 = vld [vmem:[%s4228_s2 + $0x8] sm:$0xff]  ;;  %v354_v39 = vpack.c.bf16 %v344_v37, %v344_v37  ;;  %v2560_v40 = vor.u32 %v2768_v34, %v2557_v35  ;;  %v2767_v42 = vld [vmem:[%s4226_s0 + $0x14] sm:$0xf0]  ;;  %v59_v43 = vld [vmem:[%s4228_s2 + $0x10] sm:$0xff]  ;;  %vm223_vm0 = vcmask 257024   ;;  %vm374_vm1 = vcmask 519424  }
  0x12   :  { %68 = vperm.xlu0 %2806, %v58_v36   ;;  %v2766_v44 = vld [vmem:[%s4226_s0 + $0x14] sm:$0xf]  ;;  %v2549_v45 = vld [vmem:[%s4226_s0 + $0x18] sm:$0xf0]  ;;  %73 = vperm.xlu2 %2807, %v59_v43   ;;  %v345_v47 = vld [vmem:[%s4231_s5 + $0x8] sm:$0xff]  ;;  %v2548_v48 = vor.u32 %v2767_v42, %v2547_v41  ;;  %vm420_vm2 = vcmask 523264  }
  0x13   :  { %362 = vrot.lane.b32.xlu1 %v354_v39, %s3031_s24  ;;  %v346_v46 = vld [vmem:[%s4231_s5 + $0x10] sm:$0xff]  ;;  %v2552_v49 = vor.u32 %v2766_v44, %v2549_v45  ;;  %v2539_v50 = vld [vmem:[%s4226_s0] sm:$0xf]  ;;  %v2765_v51 = vld [vmem:[%s4226_s0 + $0x4] sm:$0xf0]  ;;  %v355_v55 = vpack.c.bf16 %v345_v47, %v345_v47  ;;  %s3033_s21 = smov 64  }
  0x14   :  { %177 = vmatpush.bf16.msra.mxu0 %v2564_v30  ;;  %v356_v52 = vpack.c.bf16 %v346_v46, %v346_v46  ;;  %v2764_v53 = vld [vmem:[%s4226_s0 + $0x4] sm:$0xf]  ;;  %v2541_v54 = vld [vmem:[%s4226_s0 + $0x8] sm:$0xf0]  ;;  %v60_v56 = vld [vmem:[%s4228_s2 + $0x18] sm:$0xff]  ;;  %v2540_v57 = vor.u32 %v2765_v51, %v2539_v50  ;;  %s3034_s2 = smov [#allocation3]  }
  0x15   :  { %196 = vmatpush.bf16.msra.mxu1 %v2568_v31  ;;  %v2544_v58 = vor.u32 %v2764_v53, %v2541_v54  ;;  %v2762_v59 = vld [vmem:[%s4227_s1] sm:$0xff]  ;;  %v347_v60 = vld [vmem:[%s4231_s5 + $0x18] sm:$0xff]  ;;  %v2763_v62 = vld [vmem:[%s4227_s1 + $0x8] sm:$0xff]  ;;  %s2510_s23 = sshll.u32 %s3034_s2, 4  ;;  %s2512_s25 = sshll.u32 %s4235_s9, 4  ;;  %s2511_s23 = int_to_ptr.vmem [resolvable:$true] %s2510_s23  ;;  %s2513_s25 = int_to_ptr.hbm [resolvable:$true] %s2512_s25 }
  0x16   :  { %v357_v61 = vpack.c.bf16 %v347_v60, %v347_v60  ;;  %v3228_v63 = vld [vmem:[%s4229_s3 + $0x18] sm:$0xff]  ;;  %v3237_v0 = vld [vmem:[%s4229_s3 + $0x10] sm:$0xff]  ;;  %v3246_v1 = vld [vmem:[%s4229_s3 + $0x8] sm:$0xff] }
  0x17   :  { %431 = vmatpush.bf16.msra.mxu2 %v3228_v63  ;;  %700 = vmatpush.bf16.msra.mxu3 %v3228_v63  ;;  %v3255_v2 = vld [vmem:[%s4229_s3] sm:$0xff] }
  0x18   :  { %178 = vmatpush.bf16.msra.mxu0 %v2556_v38  ;;  %v3306_v45 = vld [vmem:[%s4230_s4] ss:$0 sm:$0xff] }
  0x19   :  { %197 = vmatpush.bf16.msra.mxu1 %v2560_v40 }
  0x1a   :  { %366 = vrot.lane.b32.xlu0 %v356_v52, %s3031_s24  ;;  %78 = vperm.xlu2 %2807, %v60_v56  }
  0x1b   :  { %364 = vrot.lane.b32.xlu1 %v355_v55, %s3031_s24  ;;  %432 = vmatpush.bf16.msra.mxu2 %v3237_v0 }
  0x1c   :  { %179 = vmatpush.bf16.msra.mxu0 %v2548_v48  ;;  %701 = vmatpush.bf16.msra.mxu3 %v3237_v0 }
  0x1d   :  { %198 = vmatpush.bf16.msra.mxu1 %v2552_v49 }
  0x1f   :  { %433 = vmatpush.bf16.msra.mxu2 %v3246_v1 }
  0x20   :  { %180 = vmatpush.bf16.msra.mxu0 %v2540_v57  ;;  %702 = vmatpush.bf16.msra.mxu3 %v3246_v1 }
  0x21   :  { %199 = vmatpush.bf16.msra.mxu1 %v2544_v58 }
  0x23   :  { %181 = vmatmul.bf16.vlgmr.msra.gmra.mxu0 %v2762_v59  ;;  %368 = vrot.lane.b32.xlu1 %v357_v61, %s3031_s24 }
  0x24   :  { %200 = vmatmul.bf16.vlgmr.msra.gmra.mxu1 %v2762_v59  ;;  %1456 = vmatpush.bf16.msrb.mxu0 %v3228_v63 }
  0x25   :  { %1708 = vmatpush.bf16.msrb.mxu1 %v3228_v63  ;;  %434 = vmatpush.bf16.msra.mxu2 %v3255_v2 }
  0x26   :  { %703 = vmatpush.bf16.msra.mxu3 %v3255_v2 }
  0x28   :  { %1457 = vmatpush.bf16.msrb.mxu0 %v3237_v0 }
  0x29   :  { %1709 = vmatpush.bf16.msrb.mxu1 %v3237_v0  ;;  %952 = vmatpush.bf16.msrb.mxu2 %v3228_v63 }
  0x2a   :  { %1204 = vmatpush.bf16.msrb.mxu3 %v3228_v63 }
  0x2c   :  { %1458 = vmatpush.bf16.msrb.mxu0 %v3246_v1 }
  0x2d   :  { %1710 = vmatpush.bf16.msrb.mxu1 %v3246_v1  ;;  %953 = vmatpush.bf16.msrb.mxu2 %v3237_v0 }
  0x2e   :  { %1205 = vmatpush.bf16.msrb.mxu3 %v3237_v0 }
  0x30   :  { %1459 = vmatpush.bf16.msrb.mxu0 %v3255_v2 }
  0x31   :  { %1711 = vmatpush.bf16.msrb.mxu1 %v3255_v2  ;;  %954 = vmatpush.bf16.msrb.mxu2 %v3246_v1 }
  0x32   :  { %1206 = vmatpush.bf16.msrb.mxu3 %v3246_v1 }
  0x33   :  { %186 = vmatmul.bf16.gmra.mxu0 %v2763_v62 }
  0x34   :  { %205 = vmatmul.bf16.gmra.mxu1 %v2763_v62 }
  0x35   :  { %955 = vmatpush.bf16.msrb.mxu2 %v3255_v2 }
  0x36   :  { %1207 = vmatpush.bf16.msrb.mxu3 %v3255_v2 }
  0x6c   :  { %v74_v20 = vpop.permute.xlu2 %73 }
  0x74   :  { %v79_v31 = vpop.permute.xlu2 %78 }
  0x7a   :  { %v64_v3 = vpop.permute.xlu0 %63 }
  0x84   :  { %v69_v12 = vpop.permute.xlu0 %68 }
  0x85   :  { %v363_v10 = vpop.permute.xlu1 %362 }
  0x8c   :  { %v367_v32 = vpop.permute.xlu0 %366 }
  0x8d   :  { %v365_v22 = vpop.permute.xlu1 %364 }
  0x95   :  { %v369_v42 = vpop.permute.xlu1 %368 }
  0xa0   :  { %v182_v4 = vpop.f32.mrf.mxu0 }
  0xa1   :  { %v183_v5 = vadd.f32 %v182_v4, %v64_v3  ;;  %v201_v6 = vpop.f32.mrf.mxu1 }
  0xa2   :  { %v202_v7 = vadd.f32 %v201_v6, %v64_v3 }
  0xa3   :  { %v211_v8 = vmax.f32 %v183_v5, 0.0 }
  0xa4   :  { %v212_v9 = vmax.f32 %v202_v7, 0.0 }
  0xa6   :  { %v3269_v11 = vpack.c.bf16 %v212_v9, %v211_v8 }
  0xa8   :  { %224 = vst.msk [vmem:[#allocation2] sm:$0xf] %vm223_vm0, %v3269_v11  ;;  %v184_v13 = vpop.f32.mrf.mxu0  ;;  %v283_v14 = vrot.slane %v3269_v11, 4 }
  0xa9   :  { %375 = vst.msk [vmem:[#allocation2] sm:$0xf] %vm374_vm1, %v363_v10  ;;  %v185_v15 = vadd.f32 %v184_v13, %v69_v12  ;;  %v203_v16 = vpop.f32.mrf.mxu1 }
  0xaa   :  { %v204_v17 = vadd.f32 %v203_v16, %v69_v12  ;;  %292 = vst.msk [vmem:[#allocation2 + $0x40] sm:$0xf] %vm223_vm0, %v283_v14 }
  0xab   :  { %v213_v18 = vmax.f32 %v185_v15, 0.0 }
  0xac   :  { %v214_v19 = vmax.f32 %v204_v17, 0.0 }
  0xae   :  { %v3276_v21 = vpack.c.bf16 %v214_v19, %v213_v18 }
  0xb0   :  { %225 = vst.msk [vmem:[#allocation2 + $0x4] sm:$0xf] %vm223_vm0, %v3276_v21  ;;  %v187_v23 = vpop.f32.mrf.mxu0  ;;  %v284_v24 = vrot.slane %v3276_v21, 4 }
  0xb1   :  { %376 = vst.msk [vmem:[#allocation2 + $0x4] sm:$0xf] %vm374_vm1, %v365_v22  ;;  %v188_v25 = vadd.f32 %v187_v23, %v74_v20  ;;  %v206_v26 = vpop.f32.mrf.mxu1 }
  0xb2   :  { %v207_v27 = vadd.f32 %v206_v26, %v74_v20  ;;  %293 = vst.msk [vmem:[#allocation2 + $0x44] sm:$0xf] %vm223_vm0, %v284_v24 }
  0xb3   :  { %v215_v28 = vmax.f32 %v188_v25, 0.0 }
  0xb4   :  { %v216_v29 = vmax.f32 %v207_v27, 0.0 }
  0xb6   :  { %v3283_v30 = vpack.c.bf16 %v216_v29, %v215_v28 }
  0xb8   :  { %226 = vst.msk [vmem:[#allocation2 + $0x8] sm:$0xf] %vm223_vm0, %v3283_v30  ;;  %v189_v33 = vpop.f32.mrf.mxu0  ;;  %v2784_v34 = vld [vmem:[#allocation2] sm:$0xff]  ;;  %v285_v35 = vrot.slane %v3283_v30, 4 }
  0xb9   :  { %v190_v36 = vadd.f32 %v189_v33, %v79_v31  ;;  %v208_v37 = vpop.f32.mrf.mxu1  ;;  %377 = vst.msk [vmem:[#allocation2 + $0x8] sm:$0xf] %vm374_vm1, %v367_v32  ;;  %2625 = vmatmul.msk.bf16.vlgmr.msra.gmra.mxu2 %vm420_vm2, %v2784_v34 }
  0xba   :  { %v209_v38 = vadd.f32 %v208_v37, %v79_v31  ;;  %294 = vst.msk [vmem:[#allocation2 + $0x48] sm:$0xf] %vm223_vm0, %v285_v35  ;;  %1960 = vmatpush.bf16.msra.mxu2 %v3228_v63 }
  0xbb   :  { %v217_v39 = vmax.f32 %v190_v36, 0.0 }
  0xbc   :  { %v218_v40 = vmax.f32 %v209_v38, 0.0 }
  0xbe   :  { %v3292_v41 = vpack.c.bf16 %v218_v40, %v217_v39  ;;  %1961 = vmatpush.bf16.msra.mxu2 %v3237_v0 }
  0xc0   :  { %227 = vst.msk [vmem:[#allocation2 + $0xc] sm:$0xf] %vm223_vm0, %v3292_v41  ;;  %v286_v43 = vrot.slane %v3292_v41, 4 }
  0xc1   :  { %378 = vst.msk [vmem:[#allocation2 + $0xc] sm:$0xf] %vm374_vm1, %v369_v42 }
  0xc2   :  { %295 = vst.msk [vmem:[#allocation2 + $0x4c] sm:$0xf] %vm223_vm0, %v286_v43  ;;  %1962 = vmatpush.bf16.msra.mxu2 %v3246_v1 }
  0xc6   :  { %1963 = vmatpush.bf16.msra.mxu2 %v3255_v2 }
  0xc8   :  { %v2785_v44 = vld [vmem:[#allocation2 + $0x8] sm:$0xff] }
  0xc9   :  { %2626 = vmatmul.msk.bf16.gmra.mxu2 %vm420_vm2, %v2785_v44 }
 0x13c   :  { %v436_v46 = vpop.f32.mrf.mxu2 }
 0x13d   :  { %v437_v47 = vadd.f32 %v3306_v45, %v436_v46 }
 0x13f   :  { %v2627_v48 = vmul.f32 -1.442695, %v437_v47 }
 0x141   :  { %2810 = vpow2.f32 %v2627_v48 }
 0x144   :  { %v438_v49 = vpop.f32.mrf.mxu2 }
 0x145   :  { %v439_v50 = vadd.f32 %v3306_v45, %v438_v49 }
 0x147   :  { %v2811_v51 = vpop.eup %2810  ;;  %v2628_v52 = vmul.f32 -1.442695, %v439_v50 }
 0x148   :  { %v458_v53 = vadd.f32 1.0, %v2811_v51  ;;  %v348_v51 = vld [vmem:[%s4232_s6] sm:$0xff] }
 0x149   :  { %2812 = vpow2.f32 %v2628_v52 }
 0x14a   :  { %2814 = vrcp.f32 %v458_v53  ;;  %v473_v3 = vand.u32 2147483648, %v458_v53  ;;  %v471_v6 = vand.u32 2147483647, %v458_v53  ;;  %vm467_vm4 = vweird.f32 %v458_v53 }
 0x14c   :  { %v441_v54 = vpop.f32.mrf.mxu2  ;;  %v474_v13 = vor.u32 1.1754944e-38, %v473_v3  ;;  %vm472_vm6 = vcmp.eq.f32.partialorder %v471_v6, 8.507059e+37 }
 0x14d   :  { %v442_v55 = vadd.f32 %v3306_v45, %v441_v54 }
 0x14f   :  { %v2813_v56 = vpop.eup %2812  ;;  %v2629_v57 = vmul.f32 -1.442695, %v442_v55 }
 0x150   :  { %v2815_v58 = vpop.eup %2814  ;;  %v459_v59 = vadd.f32 1.0, %v2813_v56 }
 0x151   :  { %v463_v60 = vmul.f32 %v2815_v58, %v458_v53  ;;  %2816 = vpow2.f32 %v2629_v57  ;;  %vm468_vm3 = vweird.f32 %v2815_v58 }
 0x152   :  { %2818 = vrcp.f32 %v459_v59  ;;  %vm469_vm5 = vmor %vm467_vm4, %vm468_vm3  ;;  %v488_v19 = vand.u32 2147483648, %v459_v59  ;;  %v486_v23 = vand.u32 2147483647, %v459_v59  ;;  %vm482_vm8 = vweird.f32 %v459_v59 }
 0x153   :  { %v464_v61 = vsub.f32 1.0, %v463_v60 }
 0x154   :  { %v443_v62 = vpop.f32.mrf.mxu2  ;;  %v489_v28 = vor.u32 1.1754944e-38, %v488_v19  ;;  %vm487_vm10 = vcmp.eq.f32.partialorder %v486_v23, 8.507059e+37 }
 0x155   :  { %v444_v4 = vadd.f32 %v3306_v45, %v443_v62  ;;  %v465_v5 = vmul.f32 %v2815_v58, %v464_v61  ;;  %v350_v61 = vld [vmem:[%s4232_s6 + $0x10] sm:$0xff] }
 0x157   :  { %v2817_v7 = vpop.eup %2816  ;;  %v2630_v8 = vmul.f32 -1.442695, %v444_v4  ;;  %v466_v9 = vadd.f32 %v2815_v58, %v465_v5  ;;  %v351_v4 = vld [vmem:[%s4232_s6 + $0x18] sm:$0xff] }
 0x158   :  { %v2819_v10 = vpop.eup %2818  ;;  %v460_v12 = vadd.f32 1.0, %v2817_v7 }
 0x159   :  { %v478_v14 = vmul.f32 %v2819_v10, %v459_v59  ;;  %2820 = vpow2.f32 %v2630_v8  ;;  %v470_v15 = vsel %vm469_vm5, %v2815_v58, %v466_v9  ;;  %vm483_vm7 = vweird.f32 %v2819_v10  ;;  %v349_v59 = vld [vmem:[%s4232_s6 + $0x8] sm:$0xff]  ;;  %s3032_s6 = smov 96  }
 0x15a   :  { %2822 = vrcp.f32 %v460_v12  ;;  %v3312_v16 = vsel %vm472_vm6, %v474_v13, %v470_v15  ;;  %vm484_vm9 = vmor %vm482_vm8, %vm483_vm7  ;;  %vm497_vm11 = vweird.f32 %v460_v12  ;;  %v503_v33 = vand.u32 2147483648, %v460_v12 }
 0x15b   :  { %v479_v17 = vsub.f32 1.0, %v478_v14  ;;  %v522_v18 = vmul.f32 2.0, %v3312_v16  ;;  %v501_v36 = vand.u32 2147483647, %v460_v12 }
 0x15c   :  { %v504_v39 = vor.u32 1.1754944e-38, %v503_v33 }
 0x15d   :  { %v2631_v20 = vadd.f32 -1.0, %v522_v18  ;;  %v480_v22 = vmul.f32 %v2819_v10, %v479_v17  ;;  %vm502_vm14 = vcmp.eq.f32.partialorder %v501_v36, 8.507059e+37 }
 0x15f   :  { %v2821_v24 = vpop.eup %2820  ;;  %554 = vrot.lane.b32.xlu2 %v2631_v20, %s3031_s24  ;;  %v481_v25 = vadd.f32 %v2819_v10, %v480_v22 }
 0x160   :  { %v2823_v26 = vpop.eup %2822  ;;  %v461_v27 = vadd.f32 1.0, %v2821_v24 }
 0x161   :  { %v493_v29 = vmul.f32 %v2823_v26, %v460_v12  ;;  %v485_v31 = vsel %vm484_vm9, %v2819_v10, %v481_v25  ;;  %vm498_vm12 = vweird.f32 %v2823_v26 }
 0x162   :  { %2824 = vrcp.f32 %v461_v27  ;;  %v3316_v32 = vsel %vm487_vm10, %v489_v28, %v485_v31  ;;  %vm499_vm13 = vmor %vm497_vm11, %vm498_vm12  ;;  %vm512_vm15 = vweird.f32 %v461_v27  ;;  %v518_v47 = vand.u32 2147483648, %v461_v27 }
 0x163   :  { %v494_v34 = vsub.f32 1.0, %v493_v29  ;;  %v523_v35 = vmul.f32 2.0, %v3316_v32  ;;  %v516_v50 = vand.u32 2147483647, %v461_v27 }
 0x164   :  { %v519_v54 = vor.u32 1.1754944e-38, %v518_v47 }
 0x165   :  { %v2632_v37 = vadd.f32 -1.0, %v523_v35  ;;  %v495_v38 = vmul.f32 %v2823_v26, %v494_v34  ;;  %vm517_vm5 = vcmp.eq.f32.partialorder %v516_v50, 8.507059e+37 }
 0x167   :  { %556 = vrot.lane.b32.xlu0 %v2632_v37, %s3031_s24  ;;  %v496_v40 = vadd.f32 %v2823_v26, %v495_v38 }
 0x168   :  { %v2825_v42 = vpop.eup %2824 }
 0x169   :  { %v508_v43 = vmul.f32 %v2825_v42, %v461_v27  ;;  %v500_v44 = vsel %vm499_vm13, %v2823_v26, %v496_v40  ;;  %vm513_vm3 = vweird.f32 %v2825_v42 }
 0x16a   :  { %v3320_v46 = vsel %vm502_vm14, %v504_v39, %v500_v44  ;;  %vm514_vm4 = vmor %vm512_vm15, %vm513_vm3 }
 0x16b   :  { %v509_v48 = vsub.f32 1.0, %v508_v43  ;;  %v524_v49 = vmul.f32 2.0, %v3320_v46 }
 0x16d   :  { %v2633_v52 = vadd.f32 -1.0, %v524_v49  ;;  %v510_v53 = vmul.f32 %v2825_v42, %v509_v48 }
 0x16f   :  { %558 = vrot.lane.b32.xlu1 %v2633_v52, %s3031_s24  ;;  %534 = vrot.lane.b32.xlu0 %v348_v51, %s3031_s24  ;;  %v511_v55 = vadd.f32 %v2825_v42, %v510_v53 }
 0x171   :  { %v515_v56 = vsel %vm514_vm4, %v2825_v42, %v511_v55 }
 0x172   :  { %v520_v57 = vsel %vm517_vm5, %v519_v54, %v515_v56 }
 0x173   :  { %v525_v58 = vmul.f32 2.0, %v520_v57 }
 0x175   :  { %v2634_v60 = vadd.f32 -1.0, %v525_v58 }
 0x177   :  { %536 = vrot.lane.b32.xlu1 %v349_v59, %s3031_s24  ;;  %560 = vrot.lane.b32.xlu2 %v2634_v60, %s3031_s24 }
 0x17f   :  { %538 = vrot.lane.b32.xlu1 %v350_v61, %s3031_s24 }
 0x1b9   :  { %v555_v62 = vpop.permute.xlu2 %554 }
 0x1ba   :  { %v566_v3 = vmul.f32 %v555_v62, %v3312_v16 }
 0x1bc   :  { %574 = vrot.lane.b32.xlu2 %v566_v3, %s3031_s24 }
 0x1c4   :  { %540 = vrot.lane.b32.xlu2 %v351_v4, %s3031_s24 }
 0x1d1   :  { %v561_v5 = vpop.permute.xlu2 %560 }
 0x1d2   :  { %v569_v6 = vmul.f32 %v561_v5, %v520_v57 }
 0x1d4   :  { %580 = vrot.lane.b32.xlu1 %v569_v6, %s3031_s24 }
 0x1d9   :  { %v557_v7 = vpop.permute.xlu0 %556 }
 0x1da   :  { %v567_v8 = vmul.f32 %v557_v7, %v3316_v32 }
 0x1dc   :  { %576 = vrot.lane.b32.xlu0 %v567_v8, %s3031_s24 }
 0x1e1   :  { %v559_v9 = vpop.permute.xlu1 %558  ;;  %v535_v12 = vpop.permute.xlu0 %534 }
 0x1e2   :  { %v568_v10 = vmul.f32 %v559_v9, %v3320_v46  ;;  %v546_v13 = vmul.f32 %v535_v12, %v3312_v16 }
 0x1e4   :  { %578 = vrot.lane.b32.xlu0 %v568_v10, %s3031_s24 }
 0x1e9   :  { %v537_v18 = vpop.permute.xlu1 %536 }
 0x1ea   :  { %v547_v25 = vmul.f32 %v537_v18, %v3316_v32 }
 0x1f1   :  { %v539_v19 = vpop.permute.xlu1 %538 }
 0x1f2   :  { %v548_v29 = vmul.f32 %v539_v19, %v3320_v46 }
 0x216   :  { %v575_v14 = vpop.permute.xlu2 %574 }
 0x217   :  { %v3349_v15 = vadd.f32 %v575_v14, %v546_v13 }
 0x219   :  { %2826 = vtanh.f32 %v3349_v15 }
 0x21e   :  { %v541_v20 = vpop.permute.xlu2 %540 }
 0x21f   :  { %v2827_v17 = vpop.eup %2826  ;;  %v549_v22 = vmul.f32 %v541_v20, %v520_v57 }
 0x220   :  { %598 = vrot.lane.b32.xlu2 %v2827_v17, %s3031_s24 }
 0x246   :  { %v581_v23 = vpop.permute.xlu1 %580 }
 0x247   :  { %v3353_v24 = vadd.f32 %v581_v23, %v549_v22 }
 0x249   :  { %2828 = vtanh.f32 %v3353_v24 }
 0x24e   :  { %v577_v26 = vpop.permute.xlu0 %576 }
 0x24f   :  { %v2829_v27 = vpop.eup %2828  ;;  %v3357_v28 = vadd.f32 %v577_v26, %v547_v25 }
 0x250   :  { %604 = vrot.lane.b32.xlu2 %v2829_v27, %s3031_s24 }
 0x251   :  { %2830 = vtanh.f32 %v3357_v28 }
 0x256   :  { %v579_v31 = vpop.permute.xlu0 %578 }
 0x257   :  { %v2831_v33 = vpop.eup %2830  ;;  %v3362_v34 = vadd.f32 %v579_v31, %v548_v29 }
 0x258   :  { %600 = vrot.lane.b32.xlu0 %v2831_v33, %s3031_s24 }
 0x259   :  { %2832 = vtanh.f32 %v3362_v34 }
 0x25f   :  { %v2833_v35 = vpop.eup %2832 }
 0x260   :  { %232 = vrot.lane.b32.xlu0 %v3269_v11, %s3032_s6  ;;  %602 = vrot.lane.b32.xlu1 %v2833_v35, %s3031_s24 }
 0x268   :  { %234 = vrot.lane.b32.xlu1 %v3276_v21, %s3032_s6 }
 0x270   :  { %236 = vrot.lane.b32.xlu1 %v3283_v30, %s3032_s6 }
 0x27a   :  { %v599_v36 = vpop.permute.xlu2 %598 }
 0x27b   :  { %v3374_v37 = vmul.f32 %v599_v36, %v3312_v16 }
 0x27d   :  { %v652_v38 = vpack.c.bf16 %v3374_v37, %v3374_v37 }
 0x27f   :  { %660 = vrot.lane.b32.xlu2 %v652_v38, %s3032_s6 }
 0x287   :  { %238 = vrot.lane.b32.xlu2 %v3292_v41, %s3032_s6 }
 0x2aa   :  { %v605_v39 = vpop.permute.xlu2 %604 }
 0x2ab   :  { %v3381_v40 = vmul.f32 %v605_v39, %v520_v57 }
 0x2ad   :  { %v655_v42 = vpack.c.bf16 %v3381_v40, %v3381_v40 }
 0x2af   :  { %666 = vrot.lane.b32.xlu1 %v655_v42, %s3032_s6 }
 0x2ca   :  { %v601_v43 = vpop.permute.xlu0 %600 }
 0x2cb   :  { %v3387_v16 = vmul.f32 %v601_v43, %v3316_v32 }
 0x2cd   :  { %v653_v44 = vpack.c.bf16 %v3387_v16, %v3387_v16 }
 0x2cf   :  { %662 = vrot.lane.b32.xlu0 %v653_v44, %s3032_s6 }
 0x2d2   :  { %v233_v47 = vpop.permute.xlu0 %232  ;;  %v603_v48 = vpop.permute.xlu1 %602 }
 0x2d3   :  { %245 = vst.msk [vmem:[#allocation2 + $0x10] sm:$0xf] %vm223_vm0, %v233_v47  ;;  %v296_v49 = vrot.slane %v233_v47, 4  ;;  %v3394_v50 = vmul.f32 %v603_v48, %v3320_v46 }
 0x2d5   :  { %305 = vst.msk [vmem:[#allocation2 + $0x50] sm:$0xf] %vm223_vm0, %v296_v49  ;;  %v654_v51 = vpack.c.bf16 %v3394_v50, %v3394_v50 }
 0x2d7   :  { %664 = vrot.lane.b32.xlu0 %v654_v51, %s3032_s6 }
 0x2d9   :  { %v661_v32 = vpop.permute.xlu2 %660 }
 0x2da   :  { %672 = vst.msk [vmem:[#allocation2 + $0x10] sm:$0xf] %vm374_vm1, %v661_v32  ;;  %v235_v52 = vpop.permute.xlu1 %234 }
 0x2db   :  { %246 = vst.msk [vmem:[#allocation2 + $0x14] sm:$0xf] %vm223_vm0, %v235_v52  ;;  %v297_v53 = vrot.slane %v235_v52, 4 }
 0x2dd   :  { %306 = vst.msk [vmem:[#allocation2 + $0x54] sm:$0xf] %vm223_vm0, %v297_v53 }
 0x2e1   :  { %v239_v54 = vpop.permute.xlu2 %238 }
 0x2e2   :  { %248 = vst.msk [vmem:[#allocation2 + $0x1c] sm:$0xf] %vm223_vm0, %v239_v54  ;;  %v299_v46 = vrot.slane %v239_v54, 4  ;;  %v237_v55 = vpop.permute.xlu1 %236 }
 0x2e3   :  { %247 = vst.msk [vmem:[#allocation2 + $0x18] sm:$0xf] %vm223_vm0, %v237_v55  ;;  %v298_v56 = vrot.slane %v237_v55, 4 }
 0x2e4   :  { %308 = vst.msk [vmem:[#allocation2 + $0x5c] sm:$0xf] %vm223_vm0, %v299_v46 }
 0x2e5   :  { %307 = vst.msk [vmem:[#allocation2 + $0x58] sm:$0xf] %vm223_vm0, %v298_v56 }
 0x321   :  { %v667_v57 = vpop.permute.xlu1 %666 }
 0x322   :  { %675 = vst.msk [vmem:[#allocation2 + $0x1c] sm:$0xf] %vm374_vm1, %v667_v57 }
 0x341   :  { %v663_v58 = vpop.permute.xlu0 %662 }
 0x342   :  { %673 = vst.msk [vmem:[#allocation2 + $0x14] sm:$0xf] %vm374_vm1, %v663_v58 }
 0x349   :  { %v665_v59 = vpop.permute.xlu0 %664  ;;  %v2786_v60 = vld [vmem:[#allocation2 + $0x10] sm:$0xff] }
 0x34a   :  { %674 = vst.msk [vmem:[#allocation2 + $0x18] sm:$0xf] %vm374_vm1, %v665_v59  ;;  %2643 = vmatmul.msk.bf16.vlgmr.msra.gmra.mxu3 %vm420_vm2, %v2786_v60 }
 0x34b   :  { %2212 = vmatpush.bf16.msra.mxu3 %v3228_v63 }
 0x34f   :  { %2213 = vmatpush.bf16.msra.mxu3 %v3237_v0 }
 0x351   :  { %v2787_v61 = vld [vmem:[#allocation2 + $0x18] sm:$0xff] }
 0x353   :  { %2214 = vmatpush.bf16.msra.mxu3 %v3246_v1 }
 0x357   :  { %2215 = vmatpush.bf16.msra.mxu3 %v3255_v2 }
 0x35a   :  { %2644 = vmatmul.msk.bf16.gmra.mxu3 %vm420_vm2, %v2787_v61 }
 0x3cd   :  { %v705_v62 = vpop.f32.mrf.mxu3 }
 0x3ce   :  { %v706_v3 = vadd.f32 %v3306_v45, %v705_v62 }
 0x3d0   :  { %v2645_v4 = vmul.f32 -1.442695, %v706_v3 }
 0x3d2   :  { %2834 = vpow2.f32 %v2645_v4 }
 0x3d5   :  { %v707_v5 = vpop.f32.mrf.mxu3 }
 0x3d6   :  { %v708_v6 = vadd.f32 %v3306_v45, %v707_v5 }
 0x3d8   :  { %v2835_v7 = vpop.eup %2834  ;;  %v2646_v8 = vmul.f32 -1.442695, %v708_v6 }
 0x3d9   :  { %v727_v63 = vadd.f32 1.0, %v2835_v7 }
 0x3da   :  { %2836 = vpow2.f32 %v2646_v8 }
 0x3db   :  { %2838 = vrcp.f32 %v727_v63  ;;  %v742_v18 = vand.u32 2147483648, %v727_v63  ;;  %v740_v22 = vand.u32 2147483647, %v727_v63  ;;  %vm736_vm7 = vweird.f32 %v727_v63 }
 0x3dd   :  { %v710_v0 = vpop.f32.mrf.mxu3  ;;  %v743_v31 = vor.u32 1.1754944e-38, %v742_v18  ;;  %vm741_vm9 = vcmp.eq.f32.partialorder %v740_v22, 8.507059e+37 }
 0x3de   :  { %v711_v1 = vadd.f32 %v3306_v45, %v710_v0 }
 0x3e0   :  { %v2837_v2 = vpop.eup %2836  ;;  %v2647_v9 = vmul.f32 -1.442695, %v711_v1 }
 0x3e1   :  { %v2839_v10 = vpop.eup %2838  ;;  %v728_v12 = vadd.f32 1.0, %v2837_v2 }
 0x3e2   :  { %v732_v13 = vmul.f32 %v2839_v10, %v727_v63  ;;  %2840 = vpow2.f32 %v2647_v9  ;;  %vm737_vm6 = vweird.f32 %v2839_v10 }
 0x3e3   :  { %2842 = vrcp.f32 %v728_v12  ;;  %vm738_vm8 = vmor %vm736_vm7, %vm737_vm6  ;;  %v757_v42 = vand.u32 2147483648, %v728_v12  ;;  %v755_v47 = vand.u32 2147483647, %v728_v12  ;;  %vm751_vm11 = vweird.f32 %v728_v12 }
 0x3e4   :  { %v733_v14 = vsub.f32 1.0, %v732_v13 }
 0x3e5   :  { %v712_v17 = vpop.f32.mrf.mxu3  ;;  %v758_v52 = vor.u32 1.1754944e-38, %v757_v42  ;;  %vm756_vm13 = vcmp.eq.f32.partialorder %v755_v47, 8.507059e+37 }
 0x3e6   :  { %v713_v19 = vadd.f32 %v3306_v45, %v712_v17  ;;  %v734_v20 = vmul.f32 %v2839_v10, %v733_v14 }
 0x3e8   :  { %v2841_v23 = vpop.eup %2840  ;;  %v2648_v25 = vmul.f32 -1.442695, %v713_v19  ;;  %v735_v26 = vadd.f32 %v2839_v10, %v734_v20 }
 0x3e9   :  { %v2843_v27 = vpop.eup %2842  ;;  %v729_v29 = vadd.f32 1.0, %v2841_v23 }
 0x3ea   :  { %v747_v33 = vmul.f32 %v2843_v27, %v728_v12  ;;  %2844 = vpow2.f32 %v2648_v25  ;;  %v739_v35 = vsel %vm738_vm8, %v2839_v10, %v735_v26  ;;  %vm752_vm10 = vweird.f32 %v2843_v27 }
 0x3eb   :  { %2846 = vrcp.f32 %v729_v29  ;;  %v3420_v36 = vsel %vm741_vm9, %v743_v31, %v739_v35  ;;  %vm753_vm12 = vmor %vm751_vm11, %vm752_vm10  ;;  %v772_v57 = vand.u32 2147483648, %v729_v29  ;;  %v770_v60 = vand.u32 2147483647, %v729_v29 }
 0x3ec   :  { %v748_v38 = vsub.f32 1.0, %v747_v33  ;;  %v791_v39 = vmul.f32 2.0, %v3420_v36  ;;  %vm766_vm15 = vweird.f32 %v729_v29 }
 0x3ed   :  { %v773_v3 = vor.u32 1.1754944e-38, %v772_v57  ;;  %vm771_vm4 = vcmp.eq.f32.partialorder %v770_v60, 8.507059e+37 }
 0x3ee   :  { %v2649_v43 = vadd.f32 -1.0, %v791_v39  ;;  %v749_v44 = vmul.f32 %v2843_v27, %v748_v38 }
 0x3f0   :  { %v2845_v48 = vpop.eup %2844  ;;  %807 = vrot.lane.b32.xlu2 %v2649_v43, %s3031_s24  ;;  %v750_v49 = vadd.f32 %v2843_v27, %v749_v44 }
 0x3f1   :  { %v2847_v51 = vpop.eup %2846  ;;  %v730_v32 = vadd.f32 1.0, %v2845_v48 }
 0x3f2   :  { %v762_v53 = vmul.f32 %v2847_v51, %v729_v29  ;;  %v754_v54 = vsel %vm753_vm12, %v2843_v27, %v750_v49  ;;  %vm767_vm14 = vweird.f32 %v2847_v51  ;;  %v799_v29 = vmul.f32 %v3420_v36, %v3349_v15 }
 0x3f3   :  { %2848 = vrcp.f32 %v730_v32  ;;  %v3424_v46 = vsel %vm756_vm13, %v758_v52, %v754_v54  ;;  %vm768_vm3 = vmor %vm766_vm15, %vm767_vm14  ;;  %v787_v63 = vand.u32 2147483648, %v730_v32  ;;  %v785_v2 = vand.u32 2147483647, %v730_v32 }
 0x3f4   :  { %v763_v55 = vsub.f32 1.0, %v762_v53  ;;  %v792_v56 = vmul.f32 2.0, %v3424_v46  ;;  %vm781_vm6 = vweird.f32 %v730_v32  ;;  %v800_v48 = vmul.f32 %v3424_v46, %v3357_v28 }
 0x3f5   :  { %v788_v10 = vor.u32 1.1754944e-38, %v787_v63  ;;  %vm786_vm8 = vcmp.eq.f32.partialorder %v785_v2, 8.507059e+37 }
 0x3f6   :  { %v2650_v58 = vadd.f32 -1.0, %v792_v56  ;;  %v764_v59 = vmul.f32 %v2847_v51, %v763_v55 }
 0x3f8   :  { %809 = vrot.lane.b32.xlu0 %v2650_v58, %s3031_s24  ;;  %v765_v61 = vadd.f32 %v2847_v51, %v764_v59 }
 0x3f9   :  { %v2849_v62 = vpop.eup %2848 }
 0x3fa   :  { %v777_v4 = vmul.f32 %v2849_v62, %v730_v32  ;;  %v769_v5 = vsel %vm768_vm3, %v2847_v51, %v765_v61  ;;  %vm782_vm5 = vweird.f32 %v2849_v62 }
 0x3fb   :  { %v3428_v6 = vsel %vm771_vm4, %v773_v3, %v769_v5  ;;  %vm783_vm7 = vmor %vm781_vm6, %vm782_vm5 }
 0x3fc   :  { %v778_v7 = vsub.f32 1.0, %v777_v4  ;;  %v793_v8 = vmul.f32 2.0, %v3428_v6  ;;  %v801_v38 = vmul.f32 %v3428_v6, %v3362_v34 }
 0x3fe   :  { %v2651_v0 = vadd.f32 -1.0, %v793_v8  ;;  %v779_v1 = vmul.f32 %v2849_v62, %v778_v7 }
 0x400   :  { %811 = vrot.lane.b32.xlu1 %v2651_v0, %s3031_s24  ;;  %v780_v9 = vadd.f32 %v2849_v62, %v779_v1 }
 0x402   :  { %v784_v12 = vsel %vm783_vm7, %v2849_v62, %v780_v9 }
 0x403   :  { %v3432_v13 = vsel %vm786_vm8, %v788_v10, %v784_v12 }
 0x404   :  { %v794_v14 = vmul.f32 2.0, %v3432_v13  ;;  %v802_v43 = vmul.f32 %v3432_v13, %v3353_v24 }
 0x406   :  { %v2652_v17 = vadd.f32 -1.0, %v794_v14 }
 0x408   :  { %813 = vrot.lane.b32.xlu2 %v2652_v17, %s3031_s24 }
 0x44a   :  { %v808_v18 = vpop.permute.xlu2 %807 }
 0x44b   :  { %v819_v19 = vmul.f32 %v808_v18, %v3420_v36 }
 0x44d   :  { %827 = vrot.lane.b32.xlu0 %v819_v19, %s3031_s24 }
 0x462   :  { %v814_v20 = vpop.permute.xlu2 %813 }
 0x463   :  { %v822_v22 = vmul.f32 %v814_v20, %v3432_v13 }
 0x465   :  { %833 = vrot.lane.b32.xlu0 %v822_v22, %s3031_s24 }
 0x46a   :  { %v810_v23 = vpop.permute.xlu0 %809 }
 0x46b   :  { %v820_v25 = vmul.f32 %v810_v23, %v3424_v46 }
 0x46d   :  { %829 = vrot.lane.b32.xlu1 %v820_v25, %s3031_s24 }
 0x472   :  { %v812_v26 = vpop.permute.xlu1 %811 }
 0x473   :  { %v821_v27 = vmul.f32 %v812_v26, %v3428_v6 }
 0x475   :  { %831 = vrot.lane.b32.xlu2 %v821_v27, %s3031_s24 }
 0x4bf   :  { %v828_v31 = vpop.permute.xlu0 %827 }
 0x4c0   :  { %v3446_v33 = vadd.f32 %v828_v31, %v799_v29 }
 0x4c2   :  { %2850 = vtanh.f32 %v3446_v33 }
 0x4c8   :  { %v2851_v35 = vpop.eup %2850 }
 0x4c9   :  { %851 = vrot.lane.b32.xlu1 %v2851_v35, %s3031_s24 }
 0x4cf   :  { %v832_v39 = vpop.permute.xlu2 %831 }
 0x4d0   :  { %v3452_v42 = vadd.f32 %v832_v39, %v801_v38 }
 0x4d2   :  { %2852 = vtanh.f32 %v3452_v42 }
 0x4d7   :  { %v834_v15 = vpop.permute.xlu0 %833 }
 0x4d8   :  { %v2853_v44 = vpop.eup %2852  ;;  %v3457_v47 = vadd.f32 %v834_v15, %v802_v43 }
 0x4d9   :  { %855 = vrot.lane.b32.xlu0 %v2853_v44, %s3031_s24 }
 0x4da   :  { %2854 = vtanh.f32 %v3457_v47 }
 0x4df   :  { %v830_v34 = vpop.permute.xlu1 %829 }
 0x4e0   :  { %v2855_v49 = vpop.eup %2854  ;;  %v3463_v51 = vadd.f32 %v830_v34, %v800_v48 }
 0x4e1   :  { %857 = vrot.lane.b32.xlu1 %v2855_v49, %s3031_s24  ;;  %251 = vrot.lane.b32.xlu0 %v3276_v21, %s3033_s21 }
 0x4e2   :  { %2856 = vtanh.f32 %v3463_v51 }
 0x4e8   :  { %v2857_v24 = vpop.eup %2856 }
 0x4e9   :  { %853 = vrot.lane.b32.xlu2 %v2857_v24, %s3031_s24  ;;  %253 = vrot.lane.b32.xlu0 %v3283_v30, %s3033_s21 }
 0x4f1   :  { %249 = vrot.lane.b32.xlu2 %v3269_v11, %s3033_s21 }
 0x53b   :  { %v852_v28 = vpop.permute.xlu1 %851 }
 0x53c   :  { %v3475_v32 = vmul.f32 %v852_v28, %v3420_v36 }
 0x53e   :  { %v904_v52 = vpack.c.bf16 %v3475_v32, %v3475_v32 }
 0x540   :  { %912 = vrot.lane.b32.xlu1 %v904_v52, %s3032_s6 }
 0x543   :  { %v854_v53 = vpop.permute.xlu2 %853 }
 0x544   :  { %v3481_v54 = vmul.f32 %v854_v53, %v3424_v46 }
 0x546   :  { %v905_v55 = vpack.c.bf16 %v3481_v54, %v3481_v54 }
 0x548   :  { %255 = vrot.lane.b32.xlu1 %v3292_v41, %s3033_s21  ;;  %914 = vrot.lane.b32.xlu2 %v905_v55, %s3032_s6 }
 0x54b   :  { %v856_v56 = vpop.permute.xlu0 %855  ;;  %v250_v36 = vpop.permute.xlu2 %249 }
 0x54c   :  { %v3489_v57 = vmul.f32 %v856_v56, %v3428_v6  ;;  %262 = vst.msk [vmem:[#allocation2 + $0x20] sm:$0xf] %vm223_vm0, %v250_v36  ;;  %v309_v58 = vrot.slane %v250_v36, 4 }
 0x54e   :  { %v906_v46 = vpack.c.bf16 %v3489_v57, %v3489_v57  ;;  %318 = vst.msk [vmem:[#allocation2 + $0x60] sm:$0xf] %vm223_vm0, %v309_v58 }
 0x550   :  { %916 = vrot.lane.b32.xlu2 %v906_v46, %s3032_s6 }
 0x553   :  { %v858_v59 = vpop.permute.xlu1 %857  ;;  %v252_v60 = vpop.permute.xlu0 %251 }
 0x554   :  { %v3497_v61 = vmul.f32 %v858_v59, %v3432_v13  ;;  %263 = vst.msk [vmem:[#allocation2 + $0x24] sm:$0xf] %vm223_vm0, %v252_v60  ;;  %v310_v62 = vrot.slane %v252_v60, 4 }
 0x556   :  { %v907_v3 = vpack.c.bf16 %v3497_v61, %v3497_v61  ;;  %319 = vst.msk [vmem:[#allocation2 + $0x64] sm:$0xf] %vm223_vm0, %v310_v62 }
 0x558   :  { %918 = vrot.lane.b32.xlu0 %v907_v3, %s3032_s6 }
 0x55b   :  { %v254_v4 = vpop.permute.xlu0 %253 }
 0x55c   :  { %264 = vst.msk [vmem:[#allocation2 + $0x28] sm:$0xf] %vm223_vm0, %v254_v4  ;;  %v311_v5 = vrot.slane %v254_v4, 4 }
 0x55e   :  { %320 = vst.msk [vmem:[#allocation2 + $0x68] sm:$0xf] %vm223_vm0, %v311_v5 }
 0x5a2   :  { %v915_v6 = vpop.permute.xlu2 %914 }
 0x5a3   :  { %925 = vst.msk [vmem:[#allocation2 + $0x24] sm:$0xf] %vm374_vm1, %v915_v6 }
 0x5aa   :  { %v917_v7 = vpop.permute.xlu2 %916 }
 0x5ab   :  { %926 = vst.msk [vmem:[#allocation2 + $0x28] sm:$0xf] %vm374_vm1, %v917_v7 }
 0x5b2   :  { %v913_v8 = vpop.permute.xlu1 %912 }
 0x5b3   :  { %924 = vst.msk [vmem:[#allocation2 + $0x20] sm:$0xf] %vm374_vm1, %v913_v8 }
 0x5ba   :  { %v256_v63 = vpop.permute.xlu1 %255  ;;  %v2788_v0 = vld [vmem:[#allocation2 + $0x20] sm:$0xff] }
 0x5bb   :  { %265 = vst.msk [vmem:[#allocation2 + $0x2c] sm:$0xf] %vm223_vm0, %v256_v63  ;;  %v312_v1 = vrot.slane %v256_v63, 4  ;;  %2661 = vmatmul.msk.bf16.vlgmr.msrb.gmra.mxu2 %vm420_vm2, %v2788_v0 }
 0x5bd   :  { %321 = vst.msk [vmem:[#allocation2 + $0x6c] sm:$0xf] %vm223_vm0, %v312_v1 }
 0x5ca   :  { %v919_v2 = vpop.permute.xlu0 %918 }
 0x5cb   :  { %927 = vst.msk [vmem:[#allocation2 + $0x2c] sm:$0xf] %vm374_vm1, %v919_v2 }
 0x5d2   :  { %v2789_v9 = vld [vmem:[#allocation2 + $0x28] sm:$0xff] }
 0x5d3   :  { %2662 = vmatmul.msk.bf16.gmra.mxu2 %vm420_vm2, %v2789_v9 }
 0x63e   :  { %v957_v10 = vpop.f32.mrf.mxu2 }
 0x63f   :  { %v958_v12 = vadd.f32 %v3306_v45, %v957_v10 }
 0x641   :  { %v2663_v13 = vmul.f32 -1.442695, %v958_v12 }
 0x643   :  { %2858 = vpow2.f32 %v2663_v13 }
 0x646   :  { %v959_v14 = vpop.f32.mrf.mxu2 }
 0x647   :  { %v960_v17 = vadd.f32 %v3306_v45, %v959_v14 }
 0x649   :  { %v2859_v18 = vpop.eup %2858  ;;  %v2664_v19 = vmul.f32 -1.442695, %v960_v17 }
 0x64a   :  { %v979_v20 = vadd.f32 1.0, %v2859_v18 }
 0x64b   :  { %2860 = vpow2.f32 %v2664_v19 }
 0x64c   :  { %2862 = vrcp.f32 %v979_v20  ;;  %v994_v31 = vand.u32 2147483648, %v979_v20  ;;  %v992_v39 = vand.u32 2147483647, %v979_v20  ;;  %vm988_vm10 = vweird.f32 %v979_v20 }
 0x64e   :  { %v995_v48 = vor.u32 1.1754944e-38, %v994_v31  ;;  %vm993_vm12 = vcmp.eq.f32.partialorder %v992_v39, 8.507059e+37 }
 0x651   :  { %v2861_v22 = vpop.eup %2860 }
 0x652   :  { %v2863_v23 = vpop.eup %2862  ;;  %v980_v25 = vadd.f32 1.0, %v2861_v22 }
 0x653   :  { %v984_v26 = vmul.f32 %v2863_v23, %v979_v20  ;;  %vm989_vm9 = vweird.f32 %v2863_v23 }
 0x654   :  { %2864 = vrcp.f32 %v980_v25  ;;  %vm990_vm11 = vmor %vm988_vm10, %vm989_vm9  ;;  %v1007_v55 = vand.u32 2147483647, %v980_v25  ;;  %v1009_v56 = vand.u32 2147483648, %v980_v25  ;;  %vm1003_vm14 = vweird.f32 %v980_v25 }
 0x655   :  { %v985_v27 = vsub.f32 1.0, %v984_v26 }
 0x656   :  { %v962_v29 = vpop.f32.mrf.mxu2  ;;  %v1010_v4 = vor.u32 1.1754944e-38, %v1009_v56  ;;  %vm1008_vm3 = vcmp.eq.f32.partialorder %v1007_v55, 8.507059e+37 }
 0x657   :  { %v963_v35 = vadd.f32 %v3306_v45, %v962_v29  ;;  %v986_v38 = vmul.f32 %v2863_v23, %v985_v27 }
 0x659   :  { %v2665_v43 = vmul.f32 -1.442695, %v963_v35  ;;  %v987_v15 = vadd.f32 %v2863_v23, %v986_v38 }
 0x65a   :  { %v2865_v44 = vpop.eup %2864 }
 0x65b   :  { %v999_v34 = vmul.f32 %v2865_v44, %v980_v25  ;;  %2866 = vpow2.f32 %v2665_v43  ;;  %v991_v49 = vsel %vm990_vm11, %v2863_v23, %v987_v15  ;;  %vm1004_vm13 = vweird.f32 %v2865_v44 }
 0x65c   :  { %v3517_v24 = vsel %vm993_vm12, %v995_v48, %v991_v49  ;;  %vm1005_vm15 = vmor %vm1003_vm14, %vm1004_vm13 }
 0x65d   :  { %v1000_v28 = vsub.f32 1.0, %v999_v34  ;;  %v1043_v52 = vmul.f32 2.0, %v3517_v24  ;;  %v1051_v56 = vmul.f32 %v3517_v24, %v3446_v33 }
 0x65e   :  { %v964_v53 = vpop.f32.mrf.mxu2 }
 0x65f   :  { %v965_v36 = vadd.f32 %v3306_v45, %v964_v53  ;;  %v2667_v58 = vadd.f32 -1.0, %v1043_v52  ;;  %v1001_v46 = vmul.f32 %v2865_v44, %v1000_v28 }
 0x661   :  { %v2867_v59 = vpop.eup %2866  ;;  %v2666_v60 = vmul.f32 -1.442695, %v965_v36  ;;  %1059 = vrot.lane.b32.xlu1 %v2667_v58, %s3031_s24  ;;  %v1002_v62 = vadd.f32 %v2865_v44, %v1001_v46 }
 0x662   :  { %v981_v3 = vadd.f32 1.0, %v2867_v59 }
 0x663   :  { %2868 = vpow2.f32 %v2666_v60  ;;  %v1006_v5 = vsel %vm1005_vm15, %v2865_v44, %v1002_v62 }
 0x664   :  { %2870 = vrcp.f32 %v981_v3  ;;  %v3522_v6 = vsel %vm1008_vm3, %v1010_v4, %v1006_v5  ;;  %v1024_v9 = vand.u32 2147483648, %v981_v3  ;;  %v1022_v12 = vand.u32 2147483647, %v981_v3 }
 0x665   :  { %v1044_v45 = vmul.f32 2.0, %v3522_v6  ;;  %vm1018_vm5 = vweird.f32 %v981_v3  ;;  %v1052_v46 = vmul.f32 %v3522_v6, %v3463_v51 }
 0x666   :  { %v1025_v17 = vor.u32 1.1754944e-38, %v1024_v9  ;;  %vm1023_vm7 = vcmp.eq.f32.partialorder %v1022_v12, 8.507059e+37 }
 0x667   :  { %v2668_v7 = vadd.f32 -1.0, %v1044_v45 }
 0x669   :  { %v2869_v8 = vpop.eup %2868  ;;  %1061 = vrot.lane.b32.xlu2 %v2668_v7, %s3031_s24 }
 0x66a   :  { %v2871_v63 = vpop.eup %2870  ;;  %v982_v0 = vadd.f32 1.0, %v2869_v8 }
 0x66b   :  { %v1014_v1 = vmul.f32 %v2871_v63, %v981_v3  ;;  %vm1019_vm4 = vweird.f32 %v2871_v63 }
 0x66c   :  { %2872 = vrcp.f32 %v982_v0  ;;  %vm1020_vm6 = vmor %vm1018_vm5, %vm1019_vm4  ;;  %v1039_v25 = vand.u32 2147483648, %v982_v0  ;;  %v1037_v29 = vand.u32 2147483647, %v982_v0  ;;  %vm1033_vm9 = vweird.f32 %v982_v0 }
 0x66d   :  { %v1015_v2 = vsub.f32 1.0, %v1014_v1 }
 0x66e   :  { %v1040_v35 = vor.u32 1.1754944e-38, %v1039_v25  ;;  %vm1038_vm11 = vcmp.eq.f32.partialorder %v1037_v29, 8.507059e+37 }
 0x66f   :  { %v1016_v10 = vmul.f32 %v2871_v63, %v1015_v2 }
 0x671   :  { %v1017_v13 = vadd.f32 %v2871_v63, %v1016_v10 }
 0x672   :  { %v2873_v14 = vpop.eup %2872 }
 0x673   :  { %v1029_v18 = vmul.f32 %v2873_v14, %v982_v0  ;;  %v1021_v19 = vsel %vm1020_vm6, %v2871_v63, %v1017_v13  ;;  %vm1034_vm8 = vweird.f32 %v2873_v14 }
 0x674   :  { %v3526_v20 = vsel %vm1023_vm7, %v1025_v17, %v1021_v19  ;;  %vm1035_vm10 = vmor %vm1033_vm9, %vm1034_vm8 }
 0x675   :  { %v1030_v22 = vsub.f32 1.0, %v1029_v18  ;;  %v1045_v23 = vmul.f32 2.0, %v3526_v20  ;;  %v1053_v45 = vmul.f32 %v3526_v20, %v3452_v42 }
 0x677   :  { %v2669_v26 = vadd.f32 -1.0, %v1045_v23  ;;  %v1031_v27 = vmul.f32 %v2873_v14, %v1030_v22 }
 0x679   :  { %1063 = vrot.lane.b32.xlu0 %v2669_v26, %s3031_s24  ;;  %v1032_v31 = vadd.f32 %v2873_v14, %v1031_v27 }
 0x67b   :  { %v1036_v38 = vsel %vm1035_vm10, %v2873_v14, %v1032_v31 }
 0x67c   :  { %v1041_v39 = vsel %vm1038_vm11, %v1040_v35, %v1036_v38  ;;  %v3609_v35 = vld [vmem:[%s4230_s4] ss:$0 sm:$0xff] }
 0x67d   :  { %v1046_v43 = vmul.f32 2.0, %v1041_v39  ;;  %v1054_v33 = vmul.f32 %v1041_v39, %v3457_v47 }
 0x67f   :  { %v2670_v15 = vadd.f32 -1.0, %v1046_v43 }
 0x681   :  { %1065 = vrot.lane.b32.xlu1 %v2670_v15, %s3031_s24 }
 0x6c3   :  { %v1062_v44 = vpop.permute.xlu2 %1061 }
 0x6c4   :  { %v1072_v48 = vmul.f32 %v1062_v44, %v3522_v6 }
 0x6c6   :  { %1081 = vrot.lane.b32.xlu0 %v1072_v48, %s3031_s24 }
 0x6d3   :  { %v1060_v34 = vpop.permute.xlu1 %1059 }
 0x6d4   :  { %v1071_v49 = vmul.f32 %v1060_v34, %v3517_v24 }
 0x6d6   :  { %1079 = vrot.lane.b32.xlu2 %v1071_v49, %s3031_s24 }
 0x6eb   :  { %v1064_v28 = vpop.permute.xlu0 %1063 }
 0x6ec   :  { %v1073_v52 = vmul.f32 %v1064_v28, %v3526_v20 }
 0x6ee   :  { %1083 = vrot.lane.b32.xlu1 %v1073_v52, %s3031_s24 }
 0x6f3   :  { %v1066_v53 = vpop.permute.xlu1 %1065 }
 0x6f4   :  { %v1074_v55 = vmul.f32 %v1066_v53, %v1041_v39 }
 0x6f6   :  { %1085 = vrot.lane.b32.xlu2 %v1074_v55, %s3031_s24 }
 0x730   :  { %v1080_v36 = vpop.permute.xlu2 %1079 }
 0x731   :  { %v3540_v58 = vadd.f32 %v1080_v36, %v1051_v56 }
 0x733   :  { %2874 = vtanh.f32 %v3540_v58 }
 0x738   :  { %v1082_v59 = vpop.permute.xlu0 %1081 }
 0x739   :  { %v2875_v60 = vpop.eup %2874  ;;  %v3545_v62 = vadd.f32 %v1082_v59, %v1052_v46 }
 0x73a   :  { %1103 = vrot.lane.b32.xlu0 %v2875_v60, %s3031_s24 }
 0x73b   :  { %2876 = vtanh.f32 %v3545_v62 }
 0x741   :  { %v2877_v3 = vpop.eup %2876 }
 0x742   :  { %1105 = vrot.lane.b32.xlu1 %v2877_v3, %s3031_s24 }
 0x74a   :  { %266 = vrot.lane.b32.xlu1 %v3269_v11, %s3031_s24 }
 0x750   :  { %v1086_v4 = vpop.permute.xlu2 %1085 }
 0x751   :  { %v3553_v5 = vadd.f32 %v1086_v4, %v1054_v33 }
 0x753   :  { %2878 = vtanh.f32 %v3553_v5 }
 0x759   :  { %v2879_v51 = vpop.eup %2878 }
 0x75a   :  { %1109 = vrot.lane.b32.xlu0 %v2879_v51, %s3031_s24 }
 0x760   :  { %v1084_v7 = vpop.permute.xlu1 %1083 }
 0x761   :  { %v3559_v8 = vadd.f32 %v1084_v7, %v1053_v45 }
 0x763   :  { %2880 = vtanh.f32 %v3559_v8 }
 0x769   :  { %v2881_v63 = vpop.eup %2880 }
 0x76a   :  { %1107 = vrot.lane.b32.xlu2 %v2881_v63, %s3031_s24 }
 0x772   :  { %268 = vrot.lane.b32.xlu2 %v3276_v21, %s3031_s24 }
 0x77a   :  { %270 = vrot.lane.b32.xlu2 %v3283_v30, %s3031_s24 }
 0x7ac   :  { %v1104_v11 = vpop.permute.xlu0 %1103 }
 0x7ad   :  { %v3568_v47 = vmul.f32 %v1104_v11, %v3517_v24 }
 0x7af   :  { %v1156_v42 = vpack.c.bf16 %v3568_v47, %v3568_v47 }
 0x7b1   :  { %1164 = vrot.lane.b32.xlu0 %v1156_v42, %s3032_s6 }
 0x7b4   :  { %v1106_v0 = vpop.permute.xlu1 %1105 }
 0x7b5   :  { %v3574_v1 = vmul.f32 %v1106_v0, %v3522_v6 }
 0x7b7   :  { %v1157_v2 = vpack.c.bf16 %v3574_v1, %v3574_v1 }
 0x7b9   :  { %1166 = vrot.lane.b32.xlu1 %v1157_v2, %s3032_s6  ;;  %272 = vrot.lane.b32.xlu0 %v3292_v41, %s3031_s24 }
 0x7bc   :  { %v267_v21 = vpop.permute.xlu1 %266 }
 0x7bd   :  { %279 = vst.msk [vmem:[#allocation2 + $0x30] sm:$0xf] %vm223_vm0, %v267_v21  ;;  %v322_v30 = vrot.slane %v267_v21, 4 }
 0x7bf   :  { %331 = vst.msk [vmem:[#allocation2 + $0x70] sm:$0xf] %vm223_vm0, %v322_v30 }
 0x7c4   :  { %v1108_v24 = vpop.permute.xlu2 %1107 }
 0x7c5   :  { %v3584_v9 = vmul.f32 %v1108_v24, %v3526_v20 }
 0x7c7   :  { %v1158_v6 = vpack.c.bf16 %v3584_v9, %v3584_v9 }
 0x7c9   :  { %1168 = vrot.lane.b32.xlu1 %v1158_v6, %s3032_s6 }
 0x7cc   :  { %v1110_v10 = vpop.permute.xlu0 %1109  ;;  %v269_v12 = vpop.permute.xlu2 %268 }
 0x7cd   :  { %v3589_v13 = vmul.f32 %v1110_v10, %v1041_v39  ;;  %280 = vst.msk [vmem:[#allocation2 + $0x34] sm:$0xf] %vm223_vm0, %v269_v12  ;;  %v323_v41 = vrot.slane %v269_v12, 4 }
 0x7cf   :  { %v1159_v14 = vpack.c.bf16 %v3589_v13, %v3589_v13  ;;  %332 = vst.msk [vmem:[#allocation2 + $0x74] sm:$0xf] %vm223_vm0, %v323_v41 }
 0x7d1   :  { %1170 = vrot.lane.b32.xlu2 %v1159_v14, %s3032_s6 }
 0x7d4   :  { %v271_v17 = vpop.permute.xlu2 %270 }
 0x7d5   :  { %281 = vst.msk [vmem:[#allocation2 + $0x38] sm:$0xf] %vm223_vm0, %v271_v17  ;;  %v324_v18 = vrot.slane %v271_v17, 4 }
 0x7d7   :  { %333 = vst.msk [vmem:[#allocation2 + $0x78] sm:$0xf] %vm223_vm0, %v324_v18 }
 0x823   :  { %v1165_v19 = vpop.permute.xlu0 %1164 }
 0x824   :  { %1176 = vst.msk [vmem:[#allocation2 + $0x30] sm:$0xf] %vm374_vm1, %v1165_v19 }
 0x82b   :  { %v1167_v20 = vpop.permute.xlu1 %1166  ;;  %v273_v22 = vpop.permute.xlu0 %272 }
 0x82c   :  { %1177 = vst.msk [vmem:[#allocation2 + $0x34] sm:$0xf] %vm374_vm1, %v1167_v20  ;;  %v325_v23 = vrot.slane %v273_v22, 4  ;;  %v1171_v25 = vpop.permute.xlu2 %1170 }
 0x82d   :  { %282 = vst.msk [vmem:[#allocation2 + $0x3c] sm:$0xf] %vm223_vm0, %v273_v22 }
 0x82e   :  { %334 = vst.msk [vmem:[#allocation2 + $0x7c] sm:$0xf] %vm223_vm0, %v325_v23 }
 0x82f   :  { %1179 = vst.msk [vmem:[#allocation2 + $0x3c] sm:$0xf] %vm374_vm1, %v1171_v25 }
 0x833   :  { %v2790_v26 = vld [vmem:[#allocation2 + $0x30] sm:$0xff] }
 0x834   :  { %2679 = vmatmul.msk.bf16.vlgmr.msrb.gmra.mxu3 %vm420_vm2, %v2790_v26 }
 0x83b   :  { %v1169_v27 = vpop.permute.xlu1 %1168 }
 0x83c   :  { %1178 = vst.msk [vmem:[#allocation2 + $0x38] sm:$0xf] %vm374_vm1, %v1169_v27 }
 0x843   :  { %v2791_v29 = vld [vmem:[#allocation2 + $0x38] sm:$0xff] }
 0x844   :  { %2680 = vmatmul.msk.bf16.gmra.mxu3 %vm420_vm2, %v2791_v29 }
 0x8b7   :  { %v1209_v31 = vpop.f32.mrf.mxu3 }
 0x8b8   :  { %v1210_v38 = vadd.f32 %v3609_v35, %v1209_v31 }
 0x8ba   :  { %v2681_v39 = vmul.f32 -1.442695, %v1210_v38 }
 0x8bc   :  { %2882 = vpow2.f32 %v2681_v39 }
 0x8bf   :  { %v1211_v43 = vpop.f32.mrf.mxu3 }
 0x8c0   :  { %v1212_v15 = vadd.f32 %v3609_v35, %v1211_v43 }
 0x8c2   :  { %v2883_v44 = vpop.eup %2882  ;;  %v2682_v48 = vmul.f32 -1.442695, %v1212_v15 }
 0x8c3   :  { %v1231_v34 = vadd.f32 1.0, %v2883_v44 }
 0x8c4   :  { %2884 = vpow2.f32 %v2682_v48 }
 0x8c5   :  { %2886 = vrcp.f32 %v1231_v34  ;;  %v1246_v60 = vand.u32 2147483648, %v1231_v34  ;;  %v1244_v4 = vand.u32 2147483647, %v1231_v34  ;;  %vm1240_vm12 = vweird.f32 %v1231_v34 }
 0x8c7   :  { %v1214_v49 = vpop.f32.mrf.mxu3  ;;  %v1247_v42 = vor.u32 1.1754944e-38, %v1246_v60  ;;  %vm1245_vm14 = vcmp.eq.f32.partialorder %v1244_v4, 8.507059e+37 }
 0x8c8   :  { %v1215_v28 = vadd.f32 %v3609_v35, %v1214_v49 }
 0x8ca   :  { %v2885_v52 = vpop.eup %2884  ;;  %v2683_v53 = vmul.f32 -1.442695, %v1215_v28 }
 0x8cb   :  { %v2887_v55 = vpop.eup %2886  ;;  %v1232_v56 = vadd.f32 1.0, %v2885_v52 }
 0x8cc   :  { %v1236_v36 = vmul.f32 %v2887_v55, %v1231_v34  ;;  %2888 = vpow2.f32 %v2683_v53  ;;  %vm1241_vm0 = vweird.f32 %v2887_v55 }
 0x8cd   :  { %2890 = vrcp.f32 %v1232_v56  ;;  %vm1242_vm13 = vmor %vm1240_vm12, %vm1241_vm0  ;;  %v1261_v6 = vand.u32 2147483648, %v1232_v56  ;;  %v1259_v41 = vand.u32 2147483647, %v1232_v56  ;;  %vm1255_vm3 = vweird.f32 %v1232_v56 }
 0x8ce   :  { %v1237_v46 = vsub.f32 1.0, %v1236_v36 }
 0x8cf   :  { %v1216_v59 = vpop.f32.mrf.mxu3  ;;  %v1262_v20 = vor.u32 1.1754944e-38, %v1261_v6  ;;  %vm1260_vm5 = vcmp.eq.f32.partialorder %v1259_v41, 8.507059e+37 }
 0x8d0   :  { %v1217_v3 = vadd.f32 %v3609_v35, %v1216_v59  ;;  %v1238_v33 = vmul.f32 %v2887_v55, %v1237_v46 }
 0x8d2   :  { %v2889_v51 = vpop.eup %2888  ;;  %v2684_v45 = vmul.f32 -1.442695, %v1217_v3  ;;  %v1239_v7 = vadd.f32 %v2887_v55, %v1238_v33 }
 0x8d3   :  { %v2891_v63 = vpop.eup %2890  ;;  %v1233_v11 = vadd.f32 1.0, %v2889_v51 }
 0x8d4   :  { %v1251_v0 = vmul.f32 %v2891_v63, %v1232_v56  ;;  %2892 = vpow2.f32 %v2684_v45  ;;  %v1243_v2 = vsel %vm1242_vm13, %v2887_v55, %v1239_v7  ;;  %vm1256_vm15 = vweird.f32 %v2891_v63 }
 0x8d5   :  { %2894 = vrcp.f32 %v1233_v11  ;;  %v3615_v21 = vsel %vm1245_vm14, %v1247_v42, %v1243_v2  ;;  %vm1257_vm4 = vmor %vm1255_vm3, %vm1256_vm15  ;;  %v1276_v29 = vand.u32 2147483648, %v1233_v11  ;;  %v1274_v39 = vand.u32 2147483647, %v1233_v11 }
 0x8d6   :  { %v1252_v30 = vsub.f32 1.0, %v1251_v0  ;;  %v1295_v24 = vmul.f32 2.0, %v3615_v21  ;;  %vm1270_vm7 = vweird.f32 %v1233_v11 }
 0x8d7   :  { %v1277_v44 = vor.u32 1.1754944e-38, %v1276_v29  ;;  %vm1275_vm9 = vcmp.eq.f32.partialorder %v1274_v39, 8.507059e+37 }
 0x8d8   :  { %v2685_v10 = vadd.f32 -1.0, %v1295_v24  ;;  %v1253_v12 = vmul.f32 %v2891_v63, %v1252_v30 }
 0x8da   :  { %v2893_v14 = vpop.eup %2892  ;;  %1311 = vrot.lane.b32.xlu0 %v2685_v10, %s3031_s24  ;;  %v1254_v17 = vadd.f32 %v2891_v63, %v1253_v12 }
 0x8db   :  { %v2895_v18 = vpop.eup %2894  ;;  %v1234_v19 = vadd.f32 1.0, %v2893_v14 }
 0x8dc   :  { %v1266_v22 = vmul.f32 %v2895_v18, %v1233_v11  ;;  %v1258_v23 = vsel %vm1257_vm4, %v2891_v63, %v1254_v17  ;;  %vm1271_vm6 = vweird.f32 %v2895_v18  ;;  %v1303_v17 = vmul.f32 %v3615_v21, %v3540_v58 }
 0x8dd   :  { %2896 = vrcp.f32 %v1234_v19  ;;  %v3619_v25 = vsel %vm1260_vm5, %v1262_v20, %v1258_v23  ;;  %vm1272_vm8 = vmor %vm1270_vm7, %vm1271_vm6  ;;  %v1291_v53 = vand.u32 2147483648, %v1234_v19  ;;  %v1289_v36 = vand.u32 2147483647, %v1234_v19 }
 0x8de   :  { %v1267_v26 = vsub.f32 1.0, %v1266_v22  ;;  %v1296_v27 = vmul.f32 2.0, %v3619_v25  ;;  %vm1285_vm11 = vweird.f32 %v1234_v19  ;;  %v1304_v30 = vmul.f32 %v3619_v25, %v3545_v62 }
 0x8df   :  { %v1292_v59 = vor.u32 1.1754944e-38, %v1291_v53  ;;  %vm1290_vm12 = vcmp.eq.f32.partialorder %v1289_v36, 8.507059e+37 }
 0x8e0   :  { %v2686_v31 = vadd.f32 -1.0, %v1296_v27  ;;  %v1268_v38 = vmul.f32 %v2895_v18, %v1267_v26 }
 0x8e2   :  { %1313 = vrot.lane.b32.xlu1 %v2686_v31, %s3031_s24  ;;  %v1269_v43 = vadd.f32 %v2895_v18, %v1268_v38 }
 0x8e3   :  { %v2897_v15 = vpop.eup %2896 }
 0x8e4   :  { %v1281_v48 = vmul.f32 %v2897_v15, %v1234_v19  ;;  %v1273_v34 = vsel %vm1272_vm8, %v2895_v18, %v1269_v43  ;;  %vm1286_vm10 = vweird.f32 %v2897_v15 }
 0x8e5   :  { %v3623_v49 = vsel %vm1275_vm9, %v1277_v44, %v1273_v34  ;;  %vm1287_vm0 = vmor %vm1285_vm11, %vm1286_vm10 }
 0x8e6   :  { %v1282_v28 = vsub.f32 1.0, %v1281_v48  ;;  %v1297_v52 = vmul.f32 2.0, %v3623_v49  ;;  %v1305_v10 = vmul.f32 %v3623_v49, %v3559_v8 }
 0x8e8   :  { %v2687_v55 = vadd.f32 -1.0, %v1297_v52  ;;  %v1283_v56 = vmul.f32 %v2897_v15, %v1282_v28 }
 0x8ea   :  { %1315 = vrot.lane.b32.xlu2 %v2687_v55, %s3031_s24  ;;  %v1284_v46 = vadd.f32 %v2897_v15, %v1283_v56 }
 0x8ec   :  { %v1288_v60 = vsel %vm1287_vm0, %v2897_v15, %v1284_v46 }
 0x8ed   :  { %v1293_v3 = vsel %vm1290_vm12, %v1292_v59, %v1288_v60 }
 0x8ee   :  { %v1298_v33 = vmul.f32 2.0, %v1293_v3  ;;  %v1306_v20 = vmul.f32 %v1293_v3, %v3553_v5 }
 0x8f0   :  { %v2688_v4 = vadd.f32 -1.0, %v1298_v33 }
 0x8f2   :  { %1317 = vrot.lane.b32.xlu0 %v2688_v4, %s3031_s24 }
 0x944   :  { %v1316_v51 = vpop.permute.xlu2 %1315 }
 0x945   :  { %v1325_v45 = vmul.f32 %v1316_v51, %v3623_v49 }
 0x947   :  { %1335 = vrot.lane.b32.xlu0 %v1325_v45, %s3031_s24 }
 0x94c   :  { %v1312_v7 = vpop.permute.xlu0 %1311 }
 0x94d   :  { %v1323_v63 = vmul.f32 %v1312_v7, %v3615_v21 }
 0x94f   :  { %1331 = vrot.lane.b32.xlu1 %v1323_v63, %s3031_s24 }
 0x954   :  { %v1314_v11 = vpop.permute.xlu1 %1313 }
 0x955   :  { %v1324_v42 = vmul.f32 %v1314_v11, %v3619_v25 }
 0x957   :  { %1333 = vrot.lane.b32.xlu2 %v1324_v42, %s3031_s24 }
 0x964   :  { %v1318_v0 = vpop.permute.xlu0 %1317 }
 0x965   :  { %v1326_v2 = vmul.f32 %v1318_v0, %v1293_v3 }
 0x967   :  { %1337 = vrot.lane.b32.xlu1 %v1326_v2, %s3031_s24 }
 0x9b1   :  { %v1334_v24 = vpop.permute.xlu2 %1333 }
 0x9b2   :  { %v3637_v6 = vadd.f32 %v1334_v24, %v1304_v30 }
 0x9b4   :  { %2898 = vtanh.f32 %v3637_v6 }
 0x9b9   :  { %v1336_v12 = vpop.permute.xlu0 %1335 }
 0x9ba   :  { %v2899_v41 = vpop.eup %2898  ;;  %v3642_v14 = vadd.f32 %v1336_v12, %v1305_v10 }
 0x9bb   :  { %1357 = vrot.lane.b32.xlu0 %v2899_v41, %s3031_s24 }
 0x9bc   :  { %2900 = vtanh.f32 %v3642_v14 }
 0x9c1   :  { %v1332_v62 = vpop.permute.xlu1 %1331 }
 0x9c2   :  { %v2901_v18 = vpop.eup %2900  ;;  %v3648_v19 = vadd.f32 %v1332_v62, %v1303_v17 }
 0x9c3   :  { %1359 = vrot.lane.b32.xlu1 %v2901_v18, %s3031_s24 }
 0x9c4   :  { %2902 = vtanh.f32 %v3648_v19 }
 0x9ca   :  { %v2903_v8 = vpop.eup %2902 }
 0x9cb   :  { %1355 = vrot.lane.b32.xlu2 %v2903_v8, %s3031_s24 }
 0x9d9   :  { %v1338_v22 = vpop.permute.xlu1 %1337 }
 0x9da   :  { %v3654_v23 = vadd.f32 %v1338_v22, %v1306_v20 }
 0x9dc   :  { %2904 = vtanh.f32 %v3654_v23 }
 0x9e2   :  { %v2905_v26 = vpop.eup %2904 }
 0x9e3   :  { %1361 = vrot.lane.b32.xlu2 %v2905_v26, %s3031_s24 }
 0xa25   :  { %v1356_v58 = vpop.permute.xlu2 %1355 }
 0xa26   :  { %v3659_v27 = vmul.f32 %v1356_v58, %v3615_v21 }
 0xa28   :  { %v1408_v29 = vpack.c.bf16 %v3659_v27, %v3659_v27 }
 0xa2a   :  { %1416 = vrot.lane.b32.xlu0 %v1408_v29, %s3032_s6 }
 0xa2d   :  { %v1358_v31 = vpop.permute.xlu0 %1357 }
 0xa2e   :  { %v3665_v5 = vmul.f32 %v1358_v31, %v3619_v25 }
 0xa30   :  { %v1409_v38 = vpack.c.bf16 %v3665_v5, %v3665_v5 }
 0xa32   :  { %1418 = vrot.lane.b32.xlu1 %v1409_v38, %s3032_s6 }
 0xa35   :  { %v1360_v39 = vpop.permute.xlu1 %1359 }
 0xa36   :  { %v3671_v43 = vmul.f32 %v1360_v39, %v3623_v49 }
 0xa38   :  { %v1410_v21 = vpack.c.bf16 %v3671_v43, %v3671_v43 }
 0xa3a   :  { %1420 = vrot.lane.b32.xlu2 %v1410_v21, %s3032_s6 }
 0xa3d   :  { %v1362_v15 = vpop.permute.xlu2 %1361 }
 0xa3e   :  { %v3676_v44 = vmul.f32 %v1362_v15, %v1293_v3 }
 0xa40   :  { %v1411_v25 = vpack.c.bf16 %v3676_v44, %v3676_v44 }
 0xa42   :  { %1422 = vrot.lane.b32.xlu0 %v1411_v25, %s3032_s6 }
 0xa94   :  { %v1421_v48 = vpop.permute.xlu2 %1420 }
 0xa95   :  { %1430 = vst.msk [vmem:[#allocation2 + $0x48] sm:$0xf] %vm374_vm1, %v1421_v48 }
 0xa9c   :  { %v1417_v34 = vpop.permute.xlu0 %1416 }
 0xa9d   :  { %1428 = vst.msk [vmem:[#allocation2 + $0x40] sm:$0xf] %vm374_vm1, %v1417_v34 }
 0xaa4   :  { %v1419_v49 = vpop.permute.xlu1 %1418 }
 0xaa5   :  { %1429 = vst.msk [vmem:[#allocation2 + $0x44] sm:$0xf] %vm374_vm1, %v1419_v49 }
 0xaac   :  { %v2792_v28 = vld [vmem:[#allocation2 + $0x40] sm:$0xff] }
 0xaad   :  { %2697 = vmatmul.msk.bf16.vlgmr.msrb.gmra.mxu0 %vm420_vm2, %v2792_v28 }
 0xab4   :  { %v1423_v52 = vpop.permute.xlu0 %1422 }
 0xab5   :  { %1431 = vst.msk [vmem:[#allocation2 + $0x4c] sm:$0xf] %vm374_vm1, %v1423_v52 }
 0xabc   :  { %v2793_v53 = vld [vmem:[#allocation2 + $0x48] sm:$0xff] }
 0xabd   :  { %2698 = vmatmul.msk.bf16.gmra.mxu0 %vm420_vm2, %v2793_v53 }
 0xb2a   :  { %v1461_v55 = vpop.f32.mrf.mxu0 }
 0xb2b   :  { %v1462_v56 = vadd.f32 %v3609_v35, %v1461_v55 }
 0xb2d   :  { %v2699_v36 = vmul.f32 -1.442695, %v1462_v56 }
 0xb2f   :  { %2906 = vpow2.f32 %v2699_v36 }
 0xb32   :  { %v1463_v46 = vpop.f32.mrf.mxu0 }
 0xb33   :  { %v1464_v59 = vadd.f32 %v3609_v35, %v1463_v46 }
 0xb35   :  { %v2907_v60 = vpop.eup %2906  ;;  %v2700_v3 = vmul.f32 -1.442695, %v1464_v59 }
 0xb36   :  { %v1483_v33 = vadd.f32 1.0, %v2907_v60 }
 0xb37   :  { %2908 = vpow2.f32 %v2700_v3 }
 0xb38   :  { %2910 = vrcp.f32 %v1483_v33  ;;  %v1498_v30 = vand.u32 2147483648, %v1483_v33  ;;  %v1496_v12 = vand.u32 2147483647, %v1483_v33  ;;  %vm1492_vm14 = vweird.f32 %v1483_v33 }
 0xb3a   :  { %v1466_v4 = vpop.f32.mrf.mxu0  ;;  %v1499_v20 = vor.u32 1.1754944e-38, %v1498_v30  ;;  %vm1497_vm3 = vcmp.eq.f32.partialorder %v1496_v12, 8.507059e+37 }
 0xb3b   :  { %v1467_v51 = vadd.f32 %v3609_v35, %v1466_v4 }
 0xb3d   :  { %v2909_v45 = vpop.eup %2908  ;;  %v2701_v7 = vmul.f32 -1.442695, %v1467_v51 }
 0xb3e   :  { %v2911_v63 = vpop.eup %2910  ;;  %v1484_v11 = vadd.f32 1.0, %v2909_v45 }
 0xb3f   :  { %v1488_v42 = vmul.f32 %v2911_v63, %v1483_v33  ;;  %2912 = vpow2.f32 %v2701_v7  ;;  %vm1493_vm13 = vweird.f32 %v2911_v63 }
 0xb40   :  { %2914 = vrcp.f32 %v1484_v11  ;;  %vm1494_vm15 = vmor %vm1492_vm14, %vm1493_vm13  ;;  %v1513_v38 = vand.u32 2147483648, %v1484_v11  ;;  %v1511_v15 = vand.u32 2147483647, %v1484_v11  ;;  %vm1507_vm5 = vweird.f32 %v1484_v11 }
 0xb41   :  { %v1489_v0 = vsub.f32 1.0, %v1488_v42 }
 0xb42   :  { %v1468_v2 = vpop.f32.mrf.mxu0  ;;  %v1514_v28 = vor.u32 1.1754944e-38, %v1513_v38  ;;  %vm1512_vm7 = vcmp.eq.f32.partialorder %v1511_v15, 8.507059e+37 }
 0xb43   :  { %v1469_v24 = vadd.f32 %v3609_v35, %v1468_v2  ;;  %v1490_v10 = vmul.f32 %v2911_v63, %v1489_v0 }
 0xb45   :  { %v2913_v41 = vpop.eup %2912  ;;  %v2702_v17 = vmul.f32 -1.442695, %v1469_v24  ;;  %v1491_v62 = vadd.f32 %v2911_v63, %v1490_v10 }
 0xb46   :  { %v2915_v18 = vpop.eup %2914  ;;  %v1485_v8 = vadd.f32 1.0, %v2913_v41 }
 0xb47   :  { %v1503_v22 = vmul.f32 %v2915_v18, %v1484_v11  ;;  %2916 = vpow2.f32 %v2702_v17  ;;  %v1495_v26 = vsel %vm1494_vm15, %v2911_v63, %v1491_v62  ;;  %vm1508_vm4 = vweird.f32 %v2915_v18 }
 0xb48   :  { %2918 = vrcp.f32 %v1485_v8  ;;  %v3691_v58 = vsel %vm1497_vm3, %v1499_v20, %v1495_v26  ;;  %vm1509_vm6 = vmor %vm1507_vm5, %vm1508_vm4  ;;  %v1528_v46 = vand.u32 2147483648, %v1485_v8  ;;  %v1526_v3 = vand.u32 2147483647, %v1485_v8 }
 0xb49   :  { %v1504_v29 = vsub.f32 1.0, %v1503_v22  ;;  %v1547_v31 = vmul.f32 2.0, %v3691_v58  ;;  %vm1522_vm9 = vweird.f32 %v1485_v8 }
 0xb4a   :  { %v1529_v51 = vor.u32 1.1754944e-38, %v1528_v46  ;;  %vm1527_vm11 = vcmp.eq.f32.partialorder %v1526_v3, 8.507059e+37 }
 0xb4b   :  { %v2703_v39 = vadd.f32 -1.0, %v1547_v31  ;;  %v1505_v21 = vmul.f32 %v2915_v18, %v1504_v29 }
 0xb4d   :  { %v2917_v25 = vpop.eup %2916  ;;  %1563 = vrot.lane.b32.xlu1 %v2703_v39, %s3031_s24  ;;  %v1506_v48 = vadd.f32 %v2915_v18, %v1505_v21  ;;  %v1555_v21 = vmul.f32 %v3691_v58, %v3648_v19 }
 0xb4e   :  { %v2919_v34 = vpop.eup %2918  ;;  %v1486_v49 = vadd.f32 1.0, %v2917_v25 }
 0xb4f   :  { %v1518_v52 = vmul.f32 %v2919_v34, %v1485_v8  ;;  %v1510_v53 = vsel %vm1509_vm6, %v2915_v18, %v1506_v48  ;;  %vm1523_vm8 = vweird.f32 %v2919_v34 }
 0xb50   :  { %2920 = vrcp.f32 %v1486_v49  ;;  %v3695_v55 = vsel %vm1512_vm7, %v1514_v28, %v1510_v53  ;;  %vm1524_vm10 = vmor %vm1522_vm9, %vm1523_vm8  ;;  %v1543_v0 = vand.u32 2147483648, %v1486_v49  ;;  %v1541_v24 = vand.u32 2147483647, %v1486_v49 }
 0xb51   :  { %v1519_v56 = vsub.f32 1.0, %v1518_v52  ;;  %v1548_v36 = vmul.f32 2.0, %v3695_v55  ;;  %vm1537_vm12 = vweird.f32 %v1486_v49  ;;  %v1556_v48 = vmul.f32 %v3695_v55, %v3637_v6 }
 0xb52   :  { %v1544_v12 = vor.u32 1.1754944e-38, %v1543_v0  ;;  %vm1542_vm14 = vcmp.eq.f32.partialorder %v1541_v24, 8.507059e+37 }
 0xb53   :  { %v2704_v59 = vadd.f32 -1.0, %v1548_v36  ;;  %v1520_v60 = vmul.f32 %v2919_v34, %v1519_v56 }
 0xb55   :  { %1565 = vrot.lane.b32.xlu2 %v2704_v59, %s3031_s24  ;;  %v1521_v33 = vadd.f32 %v2919_v34, %v1520_v60 }
 0xb56   :  { %v2921_v4 = vpop.eup %2920 }
 0xb57   :  { %v1533_v45 = vmul.f32 %v2921_v4, %v1486_v49  ;;  %v1525_v7 = vsel %vm1524_vm10, %v2919_v34, %v1521_v33  ;;  %vm1538_vm0 = vweird.f32 %v2921_v4 }
 0xb58   :  { %v3699_v63 = vsel %vm1527_vm11, %v1529_v51, %v1525_v7  ;;  %vm1539_vm13 = vmor %vm1537_vm12, %vm1538_vm0 }
 0xb59   :  { %v1534_v11 = vsub.f32 1.0, %v1533_v45  ;;  %v1549_v42 = vmul.f32 2.0, %v3699_v63  ;;  %v1557_v6 = vmul.f32 %v3699_v63, %v3642_v14 }
 0xb5b   :  { %v2705_v2 = vadd.f32 -1.0, %v1549_v42  ;;  %v1535_v30 = vmul.f32 %v2921_v4, %v1534_v11 }
 0xb5d   :  { %1567 = vrot.lane.b32.xlu0 %v2705_v2, %s3031_s24  ;;  %v1536_v10 = vadd.f32 %v2921_v4, %v1535_v30 }
 0xb5f   :  { %v1540_v41 = vsel %vm1539_vm13, %v2921_v4, %v1536_v10 }
 0xb60   :  { %v1545_v17 = vsel %vm1542_vm14, %v1544_v12, %v1540_v41 }
 0xb61   :  { %v1550_v62 = vmul.f32 2.0, %v1545_v17  ;;  %v1558_v19 = vmul.f32 %v1545_v17, %v3654_v23 }
 0xb63   :  { %v2706_v18 = vadd.f32 -1.0, %v1550_v62 }
 0xb65   :  { %1569 = vrot.lane.b32.xlu1 %v2706_v18, %s3031_s24 }
 0xbaf   :  { %v1566_v8 = vpop.permute.xlu2 %1565 }
 0xbb0   :  { %v1576_v20 = vmul.f32 %v1566_v8, %v3695_v55 }
 0xbb2   :  { %1585 = vrot.lane.b32.xlu0 %v1576_v20, %s3031_s24 }
 0xbbf   :  { %v1564_v22 = vpop.permute.xlu1 %1563 }
 0xbc0   :  { %v1575_v26 = vmul.f32 %v1564_v22, %v3691_v58 }
 0xbc2   :  { %1583 = vrot.lane.b32.xlu2 %v1575_v26, %s3031_s24 }
 0xbcf   :  { %v1568_v29 = vpop.permute.xlu0 %1567 }
 0xbd0   :  { %v1577_v31 = vmul.f32 %v1568_v29, %v3699_v63 }
 0xbd2   :  { %1587 = vrot.lane.b32.xlu1 %v1577_v31, %s3031_s24 }
 0xbd7   :  { %v1570_v38 = vpop.permute.xlu1 %1569 }
 0xbd8   :  { %v1578_v39 = vmul.f32 %v1570_v38, %v1545_v17 }
 0xbda   :  { %1589 = vrot.lane.b32.xlu2 %v1578_v39, %s3031_s24 }
 0xc1c   :  { %v1584_v15 = vpop.permute.xlu2 %1583 }
 0xc1d   :  { %v3713_v25 = vadd.f32 %v1584_v15, %v1555_v21 }
 0xc1f   :  { %2922 = vtanh.f32 %v3713_v25 }
 0xc24   :  { %v1586_v34 = vpop.permute.xlu0 %1585 }
 0xc25   :  { %v2923_v49 = vpop.eup %2922  ;;  %v3718_v28 = vadd.f32 %v1586_v34, %v1556_v48 }
 0xc26   :  { %1607 = vrot.lane.b32.xlu0 %v2923_v49, %s3031_s24 }
 0xc27   :  { %2924 = vtanh.f32 %v3718_v28 }
 0xc2d   :  { %v2925_v52 = vpop.eup %2924 }
 0xc2e   :  { %1609 = vrot.lane.b32.xlu1 %v2925_v52, %s3031_s24 }
 0xc34   :  { %v1590_v53 = vpop.permute.xlu2 %1589 }
 0xc35   :  { %v3724_v56 = vadd.f32 %v1590_v53, %v1558_v19 }
 0xc37   :  { %2926 = vtanh.f32 %v3724_v56 }
 0xc3d   :  { %v2927_v36 = vpop.eup %2926 }
 0xc3e   :  { %1613 = vrot.lane.b32.xlu0 %v2927_v36, %s3031_s24 }
 0xc44   :  { %v1588_v46 = vpop.permute.xlu1 %1587 }
 0xc45   :  { %v3730_v59 = vadd.f32 %v1588_v46, %v1557_v6 }
 0xc47   :  { %2928 = vtanh.f32 %v3730_v59 }
 0xc4d   :  { %v2929_v60 = vpop.eup %2928 }
 0xc4e   :  { %1611 = vrot.lane.b32.xlu2 %v2929_v60, %s3031_s24 }
 0xc98   :  { %v1608_v23 = vpop.permute.xlu0 %1607 }
 0xc99   :  { %v3735_v3 = vmul.f32 %v1608_v23, %v3691_v58 }
 0xc9b   :  { %v1660_v33 = vpack.c.bf16 %v3735_v3, %v3735_v3 }
 0xc9d   :  { %1668 = vrot.lane.b32.xlu1 %v1660_v33, %s3032_s6 }
 0xca0   :  { %v1610_v4 = vpop.permute.xlu1 %1609 }
 0xca1   :  { %v3741_v14 = vmul.f32 %v1610_v4, %v3695_v55 }
 0xca3   :  { %v1661_v51 = vpack.c.bf16 %v3741_v14, %v3741_v14 }
 0xca5   :  { %1670 = vrot.lane.b32.xlu2 %v1661_v51, %s3032_s6 }
 0xca8   :  { %v1612_v45 = vpop.permute.xlu2 %1611 }
 0xca9   :  { %v3747_v7 = vmul.f32 %v1612_v45, %v3699_v63 }
 0xcab   :  { %v1662_v58 = vpack.c.bf16 %v3747_v7, %v3747_v7 }
 0xcad   :  { %1672 = vrot.lane.b32.xlu0 %v1662_v58, %s3032_s6 }
 0xcb0   :  { %v1614_v11 = vpop.permute.xlu0 %1613 }
 0xcb1   :  { %v3752_v42 = vmul.f32 %v1614_v11, %v1545_v17 }
 0xcb3   :  { %v1663_v55 = vpack.c.bf16 %v3752_v42, %v3752_v42 }
 0xcb5   :  { %1674 = vrot.lane.b32.xlu1 %v1663_v55, %s3032_s6 }
 0xcff   :  { %v1671_v0 = vpop.permute.xlu2 %1670 }
 0xd00   :  { %1681 = vst.msk [vmem:[#allocation2 + $0x54] sm:$0xf] %vm374_vm1, %v1671_v0 }
 0xd0f   :  { %v1669_v2 = vpop.permute.xlu1 %1668 }
 0xd10   :  { %1680 = vst.msk [vmem:[#allocation2 + $0x50] sm:$0xf] %vm374_vm1, %v1669_v2 }
 0xd17   :  { %v2794_v63 = vld [vmem:[#allocation2 + $0x50] sm:$0xff] }
 0xd18   :  { %2715 = vmatmul.msk.bf16.vlgmr.msrb.gmra.mxu1 %vm420_vm2, %v2794_v63 }
 0xd1f   :  { %v1673_v30 = vpop.permute.xlu0 %1672 }
 0xd20   :  { %1682 = vst.msk [vmem:[#allocation2 + $0x58] sm:$0xf] %vm374_vm1, %v1673_v30 }
 0xd27   :  { %v1675_v24 = vpop.permute.xlu1 %1674 }
 0xd28   :  { %1683 = vst.msk [vmem:[#allocation2 + $0x5c] sm:$0xf] %vm374_vm1, %v1675_v24 }
 0xd2f   :  { %v2795_v10 = vld [vmem:[#allocation2 + $0x58] sm:$0xff] }
 0xd30   :  { %2716 = vmatmul.msk.bf16.gmra.mxu1 %vm420_vm2, %v2795_v10 }
 0xd95   :  { %v1713_v12 = vpop.f32.mrf.mxu1 }
 0xd96   :  { %v1714_v41 = vadd.f32 %v3609_v35, %v1713_v12 }
 0xd98   :  { %v2717_v17 = vmul.f32 -1.442695, %v1714_v41 }
 0xd9a   :  { %2930 = vpow2.f32 %v2717_v17 }
 0xd9d   :  { %v1715_v62 = vpop.f32.mrf.mxu1 }
 0xd9e   :  { %v1716_v18 = vadd.f32 %v3609_v35, %v1715_v62 }
 0xda0   :  { %v2931_v8 = vpop.eup %2930  ;;  %v2718_v20 = vmul.f32 -1.442695, %v1716_v18 }
 0xda1   :  { %v1735_v22 = vadd.f32 1.0, %v2931_v8 }
 0xda2   :  { %2932 = vpow2.f32 %v2718_v20 }
 0xda3   :  { %2934 = vrcp.f32 %v1735_v22  ;;  %v1750_v15 = vand.u32 2147483648, %v1735_v22  ;;  %v1748_v49 = vand.u32 2147483647, %v1735_v22  ;;  %vm1744_vm3 = vweird.f32 %v1735_v22 }
 0xda5   :  { %v1751_v36 = vor.u32 1.1754944e-38, %v1750_v15  ;;  %vm1749_vm5 = vcmp.eq.f32.partialorder %v1748_v49, 8.507059e+37 }
 0xda8   :  { %v2933_v26 = vpop.eup %2932 }
 0xda9   :  { %v2935_v29 = vpop.eup %2934  ;;  %v1736_v31 = vadd.f32 1.0, %v2933_v26 }
 0xdaa   :  { %v1740_v38 = vmul.f32 %v2935_v29, %v1735_v22  ;;  %vm1745_vm15 = vweird.f32 %v2935_v29 }
 0xdab   :  { %2936 = vrcp.f32 %v1736_v31  ;;  %vm1746_vm4 = vmor %vm1744_vm3, %vm1745_vm15  ;;  %v1763_v51 = vand.u32 2147483647, %v1736_v31  ;;  %v1765_v45 = vand.u32 2147483648, %v1736_v31  ;;  %vm1759_vm7 = vweird.f32 %v1736_v31 }
 0xdac   :  { %v1741_v39 = vsub.f32 1.0, %v1740_v38 }
 0xdad   :  { %v1718_v21 = vpop.f32.mrf.mxu1  ;;  %v1766_v24 = vor.u32 1.1754944e-38, %v1765_v45  ;;  %vm1764_vm9 = vcmp.eq.f32.partialorder %v1763_v51, 8.507059e+37 }
 0xdae   :  { %v1719_v48 = vadd.f32 %v3609_v35, %v1718_v21  ;;  %v1742_v34 = vmul.f32 %v2935_v29, %v1741_v39 }
 0xdb0   :  { %v2719_v52 = vmul.f32 -1.442695, %v1719_v48  ;;  %v1743_v19 = vadd.f32 %v2935_v29, %v1742_v34 }
 0xdb1   :  { %v2937_v53 = vpop.eup %2936 }
 0xdb2   :  { %v1755_v6 = vmul.f32 %v2937_v53, %v1736_v31  ;;  %2938 = vpow2.f32 %v2719_v52  ;;  %v1747_v46 = vsel %vm1746_vm4, %v2935_v29, %v1743_v19  ;;  %vm1760_vm6 = vweird.f32 %v2937_v53 }
 0xdb3   :  { %v3766_v60 = vsel %vm1749_vm5, %v1751_v36, %v1747_v46  ;;  %vm1761_vm8 = vmor %vm1759_vm7, %vm1760_vm6 }
 0xdb4   :  { %v1756_v23 = vsub.f32 1.0, %v1755_v6  ;;  %v1799_v33 = vmul.f32 2.0, %v3766_v60 }
 0xdb5   :  { %v1720_v4 = vpop.f32.mrf.mxu1 }
 0xdb6   :  { %v1721_v58 = vadd.f32 %v3609_v35, %v1720_v4  ;;  %v2721_v11 = vadd.f32 -1.0, %v1799_v33  ;;  %v1757_v55 = vmul.f32 %v2937_v53, %v1756_v23 }
 0xdb8   :  { %v2939_v0 = vpop.eup %2938  ;;  %v2720_v2 = vmul.f32 -1.442695, %v1721_v58  ;;  %1815 = vrot.lane.b32.xlu2 %v2721_v11, %s3031_s24  ;;  %v1758_v63 = vadd.f32 %v2937_v53, %v1757_v55 }
 0xdb9   :  { %v1737_v30 = vadd.f32 1.0, %v2939_v0 }
 0xdba   :  { %2940 = vpow2.f32 %v2720_v2  ;;  %v1762_v10 = vsel %vm1761_vm8, %v2937_v53, %v1758_v63 }
 0xdbb   :  { %2942 = vrcp.f32 %v1737_v30  ;;  %v3771_v12 = vsel %vm1764_vm9, %v1766_v24, %v1762_v10  ;;  %v1780_v26 = vand.u32 2147483648, %v1737_v30  ;;  %v1778_v31 = vand.u32 2147483647, %v1737_v30 }
 0xdbc   :  { %v1800_v41 = vmul.f32 2.0, %v3771_v12  ;;  %vm1774_vm11 = vweird.f32 %v1737_v30  ;;  %v1807_v10 = vmul.f32 %v3766_v60, %v3713_v25 }
 0xdbd   :  { %v1781_v21 = vor.u32 1.1754944e-38, %v1780_v26  ;;  %vm1779_vm12 = vcmp.eq.f32.partialorder %v1778_v31, 8.507059e+37 }
 0xdbe   :  { %v2722_v17 = vadd.f32 -1.0, %v1800_v41 }
 0xdc0   :  { %v2941_v62 = vpop.eup %2940  ;;  %1817 = vrot.lane.b32.xlu0 %v2722_v17, %s3031_s24 }
 0xdc1   :  { %v2943_v18 = vpop.eup %2942  ;;  %v1738_v8 = vadd.f32 1.0, %v2941_v62 }
 0xdc2   :  { %v1770_v20 = vmul.f32 %v2943_v18, %v1737_v30  ;;  %vm1775_vm10 = vweird.f32 %v2943_v18 }
 0xdc3   :  { %2944 = vrcp.f32 %v1738_v8  ;;  %vm1776_vm0 = vmor %vm1774_vm11, %vm1775_vm10  ;;  %v1795_v19 = vand.u32 2147483648, %v1738_v8  ;;  %v1793_v6 = vand.u32 2147483647, %v1738_v8  ;;  %vm1789_vm14 = vweird.f32 %v1738_v8 }
 0xdc4   :  { %v1771_v22 = vsub.f32 1.0, %v1770_v20 }
 0xdc5   :  { %v1796_v23 = vor.u32 1.1754944e-38, %v1795_v19  ;;  %vm1794_vm3 = vcmp.eq.f32.partialorder %v1793_v6, 8.507059e+37 }
 0xdc6   :  { %v1772_v29 = vmul.f32 %v2943_v18, %v1771_v22  ;;  %v1808_v22 = vmul.f32 %v3771_v12, %v3718_v28 }
 0xdc8   :  { %v1773_v38 = vadd.f32 %v2943_v18, %v1772_v29 }
 0xdc9   :  { %v2945_v39 = vpop.eup %2944 }
 0xdca   :  { %v1785_v15 = vmul.f32 %v2945_v39, %v1738_v8  ;;  %v1777_v48 = vsel %vm1776_vm0, %v2943_v18, %v1773_v38  ;;  %vm1790_vm13 = vweird.f32 %v2945_v39 }
 0xdcb   :  { %v3775_v34 = vsel %vm1779_vm12, %v1781_v21, %v1777_v48  ;;  %vm1791_vm15 = vmor %vm1789_vm14, %vm1790_vm13 }
 0xdcc   :  { %v1786_v49 = vsub.f32 1.0, %v1785_v15  ;;  %v1801_v52 = vmul.f32 2.0, %v3775_v34  ;;  %v1809_v18 = vmul.f32 %v3775_v34, %v3730_v59 }
 0xdce   :  { %v2723_v53 = vadd.f32 -1.0, %v1801_v52  ;;  %v1787_v36 = vmul.f32 %v2945_v39, %v1786_v49 }
 0xdd0   :  { %1819 = vrot.lane.b32.xlu1 %v2723_v53, %s3031_s24  ;;  %v1788_v46 = vadd.f32 %v2945_v39, %v1787_v36 }
 0xdd2   :  { %v1792_v33 = vsel %vm1791_vm15, %v2945_v39, %v1788_v46 }
 0xdd3   :  { %v1797_v4 = vsel %vm1794_vm3, %v1796_v23, %v1792_v33 }
 0xdd4   :  { %v1802_v51 = vmul.f32 2.0, %v1797_v4  ;;  %v1810_v25 = vmul.f32 %v1797_v4, %v3724_v56 }
 0xdd6   :  { %v2724_v45 = vadd.f32 -1.0, %v1802_v51 }
 0xdd8   :  { %1821 = vrot.lane.b32.xlu2 %v2724_v45, %s3031_s24 }
 0xe12   :  { %v1816_v58 = vpop.permute.xlu2 %1815 }
 0xe13   :  { %v1827_v11 = vmul.f32 %v1816_v58, %v3766_v60 }
 0xe15   :  { %1835 = vrot.lane.b32.xlu0 %v1827_v11, %s3031_s24 }
 0xe32   :  { %v1818_v55 = vpop.permute.xlu0 %1817  ;;  %v1822_v0 = vpop.permute.xlu2 %1821 }
 0xe33   :  { %v1828_v2 = vmul.f32 %v1818_v55, %v3771_v12  ;;  %v1830_v63 = vmul.f32 %v1822_v0, %v1797_v4 }
 0xe35   :  { %1837 = vrot.lane.b32.xlu1 %v1828_v2, %s3031_s24  ;;  %1841 = vrot.lane.b32.xlu0 %v1830_v63, %s3031_s24 }
 0xe42   :  { %v1820_v30 = vpop.permute.xlu1 %1819 }
 0xe43   :  { %v1829_v24 = vmul.f32 %v1820_v30, %v3775_v34 }
 0xe45   :  { %1839 = vrot.lane.b32.xlu2 %v1829_v24, %s3031_s24 }
 0xe87   :  { %v1836_v41 = vpop.permute.xlu0 %1835 }
 0xe88   :  { %v3789_v17 = vadd.f32 %v1836_v41, %v1807_v10 }
 0xe8a   :  { %2946 = vtanh.f32 %v3789_v17 }
 0xe90   :  { %v2947_v62 = vpop.eup %2946 }
 0xe91   :  { %1859 = vrot.lane.b32.xlu1 %v2947_v62, %s3031_s24 }
 0xe9f   :  { %v1840_v8 = vpop.permute.xlu2 %1839 }
 0xea0   :  { %v3795_v20 = vadd.f32 %v1840_v8, %v1809_v18 }
 0xea2   :  { %2948 = vtanh.f32 %v3795_v20 }
 0xea7   :  { %v1838_v26 = vpop.permute.xlu1 %1837  ;;  %v1842_v29 = vpop.permute.xlu0 %1841 }
 0xea8   :  { %v2949_v31 = vpop.eup %2948  ;;  %v3801_v38 = vadd.f32 %v1838_v26, %v1808_v22  ;;  %v3803_v39 = vadd.f32 %v1842_v29, %v1810_v25 }
 0xea9   :  { %1863 = vrot.lane.b32.xlu0 %v2949_v31, %s3031_s24 }
 0xeaa   :  { %2950 = vtanh.f32 %v3801_v38 }
 0xeab   :  { %2952 = vtanh.f32 %v3803_v39 }
 0xeb0   :  { %v2951_v59 = vpop.eup %2950 }
 0xeb1   :  { %v2953_v21 = vpop.eup %2952  ;;  %1861 = vrot.lane.b32.xlu2 %v2951_v59, %s3031_s24 }
 0xeb2   :  { %1865 = vrot.lane.b32.xlu1 %v2953_v21, %s3031_s24 }
 0xf03   :  { %v1860_v28 = vpop.permute.xlu1 %1859 }
 0xf04   :  { %v3811_v56 = vmul.f32 %v1860_v28, %v3766_v60 }
 0xf06   :  { %v1912_v15 = vpack.c.bf16 %v3811_v56, %v3811_v56 }
 0xf08   :  { %1920 = vrot.lane.b32.xlu2 %v1912_v15, %s3032_s6 }
 0xf0b   :  { %v1862_v48 = vpop.permute.xlu2 %1861 }
 0xf0c   :  { %v3817_v49 = vmul.f32 %v1862_v48, %v3771_v12 }
 0xf0e   :  { %v1913_v52 = vpack.c.bf16 %v3817_v49, %v3817_v49 }
 0xf10   :  { %1922 = vrot.lane.b32.xlu0 %v1913_v52, %s3032_s6 }
 0xf1b   :  { %v1864_v19 = vpop.permute.xlu0 %1863 }
 0xf1c   :  { %v3823_v53 = vmul.f32 %v1864_v19, %v3775_v34 }
 0xf1e   :  { %v1914_v60 = vpack.c.bf16 %v3823_v53, %v3823_v53 }
 0xf20   :  { %1924 = vrot.lane.b32.xlu1 %v1914_v60, %s3032_s6 }
 0xf24   :  { %v1866_v36 = vpop.permute.xlu1 %1865 }
 0xf25   :  { %v3828_v6 = vmul.f32 %v1866_v36, %v1797_v4 }
 0xf27   :  { %v1915_v12 = vpack.c.bf16 %v3828_v6, %v3828_v6 }
 0xf29   :  { %1926 = vrot.lane.b32.xlu2 %v1915_v12, %s3032_s6 }
 0xf62   :  { %v1921_v46 = vpop.permute.xlu2 %1920 }
 0xf63   :  { %1932 = vst.msk [vmem:[#allocation2 + $0x60] sm:$0xf] %vm374_vm1, %v1921_v46 }
 0xf82   :  { %v1923_v23 = vpop.permute.xlu0 %1922 }
 0xf83   :  { %1933 = vst.msk [vmem:[#allocation2 + $0x64] sm:$0xf] %vm374_vm1, %v1923_v23  ;;  %v1927_v34 = vpop.permute.xlu2 %1926 }
 0xf84   :  { %1935 = vst.msk [vmem:[#allocation2 + $0x6c] sm:$0xf] %vm374_vm1, %v1927_v34 }
 0xf8a   :  { %v2796_v33 = vld [vmem:[#allocation2 + $0x60] sm:$0xff] }
 0xf8b   :  { %2733 = vmatmul.msk.bf16.vlgmr.msra.gmra.mxu2 %vm420_vm2, %v2796_v33 }
 0xf92   :  { %v1925_v51 = vpop.permute.xlu1 %1924 }
 0xf93   :  { %1934 = vst.msk [vmem:[#allocation2 + $0x68] sm:$0xf] %vm374_vm1, %v1925_v51 }
 0xf9a   :  { %v2797_v4 = vld [vmem:[#allocation2 + $0x68] sm:$0xff] }
 0xf9b   :  { %2734 = vmatmul.msk.bf16.gmra.mxu2 %vm420_vm2, %v2797_v4 }
0x100e   :  { %v1965_v45 = vpop.f32.mrf.mxu2 }
0x100f   :  { %v1966_v58 = vadd.f32 %v3609_v35, %v1965_v45 }
0x1011   :  { %v2735_v11 = vmul.f32 -1.442695, %v1966_v58 }
0x1013   :  { %2954 = vpow2.f32 %v2735_v11 }
0x1016   :  { %v1967_v55 = vpop.f32.mrf.mxu2 }
0x1017   :  { %v1968_v0 = vadd.f32 %v3609_v35, %v1967_v55 }
0x1019   :  { %v2955_v2 = vpop.eup %2954  ;;  %v2736_v63 = vmul.f32 -1.442695, %v1968_v0 }
0x101a   :  { %v1987_v30 = vadd.f32 1.0, %v2955_v2 }
0x101b   :  { %2956 = vpow2.f32 %v2736_v63 }
0x101c   :  { %2958 = vrcp.f32 %v1987_v30  ;;  %v2002_v29 = vand.u32 2147483648, %v1987_v30  ;;  %v2000_v21 = vand.u32 2147483647, %v1987_v30  ;;  %vm1996_vm5 = vweird.f32 %v1987_v30 }
0x101e   :  { %v1970_v24 = vpop.f32.mrf.mxu2  ;;  %v2003_v60 = vor.u32 1.1754944e-38, %v2002_v29  ;;  %vm2001_vm7 = vcmp.eq.f32.partialorder %v2000_v21, 8.507059e+37 }
0x101f   :  { %v1971_v10 = vadd.f32 %v3609_v35, %v1970_v24 }
0x1021   :  { %v2957_v41 = vpop.eup %2956  ;;  %v2737_v62 = vmul.f32 -1.442695, %v1971_v10 }
0x1022   :  { %v2959_v18 = vpop.eup %2958  ;;  %v1988_v8 = vadd.f32 1.0, %v2957_v41 }
0x1023   :  { %v1992_v22 = vmul.f32 %v2959_v18, %v1987_v30  ;;  %2960 = vpow2.f32 %v2737_v62  ;;  %vm1997_vm4 = vweird.f32 %v2959_v18 }
0x1024   :  { %2962 = vrcp.f32 %v1988_v8  ;;  %vm1998_vm6 = vmor %vm1996_vm5, %vm1997_vm4  ;;  %v2017_v34 = vand.u32 2147483648, %v1988_v8  ;;  %v2015_v4 = vand.u32 2147483647, %v1988_v8  ;;  %vm2011_vm9 = vweird.f32 %v1988_v8 }
0x1025   :  { %v1993_v25 = vsub.f32 1.0, %v1992_v22 }
0x1026   :  { %v1972_v26 = vpop.f32.mrf.mxu2  ;;  %v2018_v0 = vor.u32 1.1754944e-38, %v2017_v34  ;;  %vm2016_vm11 = vcmp.eq.f32.partialorder %v2015_v4, 8.507059e+37 }
0x1027   :  { %v1973_v31 = vadd.f32 %v3609_v35, %v1972_v26  ;;  %v1994_v59 = vmul.f32 %v2959_v18, %v1993_v25 }
0x1029   :  { %v2961_v28 = vpop.eup %2960  ;;  %v2738_v15 = vmul.f32 -1.442695, %v1973_v31  ;;  %v1995_v48 = vadd.f32 %v2959_v18, %v1994_v59 }
0x102a   :  { %v2963_v52 = vpop.eup %2962  ;;  %v1989_v19 = vadd.f32 1.0, %v2961_v28 }
0x102b   :  { %v2007_v36 = vmul.f32 %v2963_v52, %v1988_v8  ;;  %2964 = vpow2.f32 %v2738_v15  ;;  %v1999_v12 = vsel %vm1998_vm6, %v2959_v18, %v1995_v48  ;;  %vm2012_vm8 = vweird.f32 %v2963_v52 }
0x102c   :  { %2966 = vrcp.f32 %v1989_v19  ;;  %v3843_v46 = vsel %vm2001_vm7, %v2003_v60, %v1999_v12  ;;  %vm2013_vm10 = vmor %vm2011_vm9, %vm2012_vm8  ;;  %v2032_v41 = vand.u32 2147483648, %v1989_v19  ;;  %v2030_v22 = vand.u32 2147483647, %v1989_v19 }
0x102d   :  { %v2008_v23 = vsub.f32 1.0, %v2007_v36  ;;  %v2051_v35 = vmul.f32 2.0, %v3843_v46  ;;  %vm2026_vm12 = vweird.f32 %v1989_v19  ;;  %vm630_vm6 = vcmask 261120  }
0x102e   :  { %v2033_v26 = vor.u32 1.1754944e-38, %v2032_v41  ;;  %vm2031_vm14 = vcmp.eq.f32.partialorder %v2030_v22, 8.507059e+37  ;;  %v2059_v22 = vmul.f32 %v3843_v46, %v3789_v17 }
0x102f   :  { %v2739_v33 = vadd.f32 -1.0, %v2051_v35  ;;  %v2009_v51 = vmul.f32 %v2963_v52, %v2008_v23 }
0x1031   :  { %v2965_v45 = vpop.eup %2964  ;;  %2067 = vrot.lane.b32.xlu0 %v2739_v33, %s3031_s24  ;;  %v2010_v58 = vadd.f32 %v2963_v52, %v2009_v51 }
0x1032   :  { %v2967_v11 = vpop.eup %2966  ;;  %v1990_v55 = vadd.f32 1.0, %v2965_v45 }
0x1033   :  { %v2022_v2 = vmul.f32 %v2967_v11, %v1989_v19  ;;  %v2014_v63 = vsel %vm2013_vm10, %v2963_v52, %v2010_v58  ;;  %vm2027_vm0 = vweird.f32 %v2967_v11 }
0x1034   :  { %2968 = vrcp.f32 %v1990_v55  ;;  %v3847_v30 = vsel %vm2016_vm11, %v2018_v0, %v2014_v63  ;;  %vm2028_vm13 = vmor %vm2026_vm12, %vm2027_vm0  ;;  %v2047_v15 = vand.u32 2147483648, %v1990_v55  ;;  %v2045_v60 = vand.u32 2147483647, %v1990_v55 }
0x1035   :  { %v2023_v24 = vsub.f32 1.0, %v2022_v2  ;;  %v2052_v10 = vmul.f32 2.0, %v3847_v30  ;;  %vm2041_vm3 = vweird.f32 %v1990_v55  ;;  %v2060_v2 = vmul.f32 %v3847_v30, %v3801_v38 }
0x1036   :  { %v2048_v19 = vor.u32 1.1754944e-38, %v2047_v15  ;;  %vm2046_vm5 = vcmp.eq.f32.partialorder %v2045_v60, 8.507059e+37 }
0x1037   :  { %v2740_v62 = vadd.f32 -1.0, %v2052_v10  ;;  %v2024_v18 = vmul.f32 %v2967_v11, %v2023_v24 }
0x1039   :  { %2069 = vrot.lane.b32.xlu1 %v2740_v62, %s3031_s24  ;;  %v2025_v8 = vadd.f32 %v2967_v11, %v2024_v18 }
0x103a   :  { %v2969_v25 = vpop.eup %2968 }
0x103b   :  { %v2037_v29 = vmul.f32 %v2969_v25, %v1990_v55  ;;  %v2029_v31 = vsel %vm2028_vm13, %v2967_v11, %v2025_v8  ;;  %vm2042_vm15 = vweird.f32 %v2969_v25 }
0x103c   :  { %v3851_v59 = vsel %vm2031_vm14, %v2033_v26, %v2029_v31  ;;  %vm2043_vm4 = vmor %vm2041_vm3, %vm2042_vm15 }
0x103d   :  { %v2038_v21 = vsub.f32 1.0, %v2037_v29  ;;  %v2053_v28 = vmul.f32 2.0, %v3851_v59  ;;  %v2061_v10 = vmul.f32 %v3851_v59, %v3795_v20 }
0x103f   :  { %v2741_v48 = vadd.f32 -1.0, %v2053_v28  ;;  %v2039_v52 = vmul.f32 %v2969_v25, %v2038_v21 }
0x1041   :  { %2071 = vrot.lane.b32.xlu2 %v2741_v48, %s3031_s24  ;;  %v2040_v36 = vadd.f32 %v2969_v25, %v2039_v52 }
0x1043   :  { %v2044_v12 = vsel %vm2043_vm4, %v2969_v25, %v2040_v36 }
0x1044   :  { %v3855_v23 = vsel %vm2046_vm5, %v2048_v19, %v2044_v12 }
0x1045   :  { %v2054_v35 = vmul.f32 2.0, %v3855_v23  ;;  %v2062_v17 = vmul.f32 %v3855_v23, %v3803_v39 }
0x1047   :  { %v2742_v34 = vadd.f32 -1.0, %v2054_v35 }
0x1049   :  { %2073 = vrot.lane.b32.xlu0 %v2742_v34, %s3031_s24 }
0x109b   :  { %v2072_v33 = vpop.permute.xlu2 %2071 }
0x109c   :  { %v2081_v51 = vmul.f32 %v2072_v33, %v3851_v59 }
0x109e   :  { %2091 = vrot.lane.b32.xlu0 %v2081_v51, %s3031_s24 }
0x10a3   :  { %v2068_v4 = vpop.permute.xlu0 %2067 }
0x10a4   :  { %v2079_v45 = vmul.f32 %v2068_v4, %v3843_v46 }
0x10a6   :  { %2087 = vrot.lane.b32.xlu1 %v2079_v45, %s3031_s24 }
0x10ab   :  { %v2070_v58 = vpop.permute.xlu1 %2069 }
0x10ac   :  { %v2080_v11 = vmul.f32 %v2070_v58, %v3847_v30  ;;  %v352_v58 = vlaneseq }
0x10ae   :  { %2089 = vrot.lane.b32.xlu2 %v2080_v11, %s3031_s24 }
0x10bb   :  { %v2074_v55 = vpop.permute.xlu0 %2073 }
0x10bc   :  { %v2082_v0 = vmul.f32 %v2074_v55, %v3855_v23  ;;  %v3940_v55 = vand.u32 127, %v352_v58 }
0x10be   :  { %2093 = vrot.lane.b32.xlu1 %v2082_v0, %s3031_s24  ;;  %vm647_vm7 = vcmp.eq.s32.totalorder %v3940_v55, 0 }
0x1108   :  { %v2090_v63 = vpop.permute.xlu2 %2089 }
0x1109   :  { %v3869_v24 = vadd.f32 %v2090_v63, %v2060_v2 }
0x110b   :  { %2970 = vtanh.f32 %v3869_v24 }
0x1110   :  { %v2092_v41 = vpop.permute.xlu0 %2091 }
0x1111   :  { %v2971_v62 = vpop.eup %2970  ;;  %v3874_v18 = vadd.f32 %v2092_v41, %v2061_v10 }
0x1112   :  { %2113 = vrot.lane.b32.xlu0 %v2971_v62, %s3031_s24 }
0x1113   :  { %2972 = vtanh.f32 %v3874_v18 }
0x1118   :  { %v2088_v38 = vpop.permute.xlu1 %2087 }
0x1119   :  { %v2973_v8 = vpop.eup %2972  ;;  %v3880_v25 = vadd.f32 %v2088_v38, %v2059_v22 }
0x111a   :  { %2115 = vrot.lane.b32.xlu1 %v2973_v8, %s3031_s24  ;;  %622 = vrot.lane.b32.xlu0 %v3394_v50, %s3033_s21 }
0x111b   :  { %2974 = vtanh.f32 %v3880_v25 }
0x1121   :  { %v2975_v20 = vpop.eup %2974 }
0x1122   :  { %2111 = vrot.lane.b32.xlu2 %v2975_v20, %s3031_s24  ;;  %618 = vrot.lane.b32.xlu1 %v3374_v37, %s3033_s21 }
0x112a   :  { %624 = vrot.lane.b32.xlu1 %v3381_v40, %s3033_s21 }
0x1130   :  { %v2094_v26 = vpop.permute.xlu1 %2093 }
0x1131   :  { %v3893_v29 = vadd.f32 %v2094_v26, %v2062_v17 }
0x1133   :  { %2976 = vtanh.f32 %v3893_v29 }
0x1139   :  { %v2977_v50 = vpop.eup %2976 }
0x113a   :  { %2117 = vrot.lane.b32.xlu2 %v2977_v50, %s3031_s24 }
0x1142   :  { %620 = vrot.lane.b32.xlu2 %v3387_v16, %s3033_s21 }
0x117c   :  { %v2112_v31 = vpop.permute.xlu2 %2111 }
0x117d   :  { %v3900_v37 = vmul.f32 %v2112_v31, %v3843_v46  ;;  %v3003_v31 = vld [vmem:[%s4230_s4] ss:$0 sm:$0xff] }
0x117f   :  { %v2164_v40 = vpack.c.bf16 %v3900_v37, %v3900_v37 }
0x1181   :  { %2172 = vrot.lane.b32.xlu0 %v2164_v40, %s3032_s6 }
0x1184   :  { %v2114_v39 = vpop.permute.xlu0 %2113 }
0x1185   :  { %v3906_v21 = vmul.f32 %v2114_v39, %v3847_v30 }
0x1187   :  { %v2165_v28 = vpack.c.bf16 %v3906_v21, %v3906_v21 }
0x1189   :  { %2174 = vrot.lane.b32.xlu1 %v2165_v28, %s3032_s6 }
0x118c   :  { %v2116_v15 = vpop.permute.xlu1 %2115  ;;  %v623_v60 = vpop.permute.xlu0 %622 }
0x118d   :  { %v3912_v16 = vmul.f32 %v2116_v15, %v3851_v59  ;;  %v637_v36 = vsel %vm630_vm6, %v623_v60, 0.0 }
0x118f   :  { %v2166_v46 = vpack.c.bf16 %v3912_v16, %v3912_v16 }
0x1191   :  { %2176 = vrot.lane.b32.xlu2 %v2166_v46, %s3032_s6 }
0x1194   :  { %v2118_v48 = vpop.permute.xlu2 %2117  ;;  %v619_v19 = vpop.permute.xlu1 %618 }
0x1195   :  { %v631_v12 = vsel %vm630_vm6, %v619_v19, 0.0  ;;  %v3923_v35 = vmul.f32 %v2118_v48, %v3855_v23 }
0x1197   :  { %v2167_v33 = vpack.c.bf16 %v3923_v35, %v3923_v35 }
0x119c   :  { %v621_v52 = vpop.permute.xlu2 %620  ;;  %v625_v59 = vpop.permute.xlu1 %624 }
0x119d   :  { %v634_v30 = vsel %vm630_vm6, %v621_v52, 0.0  ;;  %v640_v34 = vsel %vm630_vm6, %v625_v59, 0.0 }
0x11ab   :  { %635 = vadd.xlane.f32.xlu0 %v634_v30 }
0x11b3   :  { %638 = vadd.xlane.f32.xlu1 %v637_v36 }
0x11ba   :  { %632 = vadd.xlane.f32.xlu2 %v631_v12 }
0x11bf   :  { %873 = vrot.lane.b32.xlu0 %v3481_v54, %s3033_s21 }
0x11c2   :  { %641 = vadd.xlane.f32.xlu2 %v640_v34 }
0x11c7   :  { %2178 = vrot.lane.b32.xlu0 %v2167_v33, %s3032_s6 }
0x11cc   :  { %875 = vrot.lane.b32.xlu1 %v3489_v57, %s3033_s21 }
0x11da   :  { %871 = vrot.lane.b32.xlu2 %v3475_v32, %s3033_s21 }
0x11e2   :  { %877 = vrot.lane.b32.xlu2 %v3497_v61, %s3033_s21 }
0x11eb   :  { %v2177_v54 = vpop.permute.xlu2 %2176 }
0x11ec   :  { %2186 = vst.msk [vmem:[#allocation2 + $0x78] sm:$0xf] %vm374_vm1, %v2177_v54 }
0x11f3   :  { %v2173_v23 = vpop.permute.xlu0 %2172 }
0x11f4   :  { %2184 = vst.msk [vmem:[#allocation2 + $0x70] sm:$0xf] %vm374_vm1, %v2173_v23 }
0x11fb   :  { %v2175_v51 = vpop.permute.xlu1 %2174 }
0x11fc   :  { %2185 = vst.msk [vmem:[#allocation2 + $0x74] sm:$0xf] %vm374_vm1, %v2175_v51 }
0x1203   :  { %v2798_v4 = vld [vmem:[#allocation2 + $0x70] sm:$0xff] }
0x1204   :  { %2751 = vmatmul.msk.bf16.vlgmr.msra.gmra.mxu3 %vm420_vm2, %v2798_v4 }
0x121e   :  { %v636_v45 = vpop.xlane.xlu0 %635 }
0x121f   :  { %v644_v50 = vmul.f32 0.03125, %v636_v45 }
0x1226   :  { %v639_v0 = vpop.xlane.xlu1 %638 }
0x1227   :  { %v645_v46 = vmul.f32 0.03125, %v639_v0 }
0x1229   :  { %v650_v59 = vsel %vm647_vm7, %v645_v46, 0.0 }
0x122d   :  { %v633_v57 = vpop.xlane.xlu2 %632 }
0x122e   :  { %v643_v15 = vmul.f32 0.03125, %v633_v57 }
0x1230   :  { %v648_v19 = vsel %vm647_vm7, %v643_v15, 0.0 }
0x1231   :  { %v874_v11 = vpop.permute.xlu0 %873 }
0x1232   :  { %v886_v32 = vsel %vm630_vm6, %v874_v11, 0.0 }
0x1233   :  { %887 = vadd.xlane.f32.xlu0 %v886_v32 }
0x1235   :  { %v642_v61 = vpop.xlane.xlu2 %641 }
0x1236   :  { %v646_v2 = vmul.f32 0.03125, %v642_v61 }
0x1238   :  { %v651_v63 = vsel %vm647_vm7, %v646_v2, 0.0 }
0x1239   :  { %v2179_v10 = vpop.permute.xlu0 %2178 }
0x123a   :  { %2187 = vst.msk [vmem:[#allocation2 + $0x7c] sm:$0xf] %vm374_vm1, %v2179_v10  ;;  %vm899_vm1 = vcmp.eq.s32.totalorder %v3940_v55, 1 }
0x123d   :  { %v872_v41 = vpop.permute.xlu2 %871 }
0x123e   :  { %v883_v62 = vsel %vm630_vm6, %v872_v41, 0.0  ;;  %v876_v22 = vpop.permute.xlu1 %875 }
0x123f   :  { %v889_v38 = vsel %vm630_vm6, %v876_v22, 0.0  ;;  %884 = vadd.xlane.f32.xlu1 %v883_v62 }
0x1240   :  { %890 = vadd.xlane.f32.xlu2 %v889_v38 }
0x1241   :  { %v2799_v8 = vld [vmem:[#allocation2 + $0x78] sm:$0xff] }
0x1242   :  { %2752 = vmatmul.msk.bf16.gmra.mxu3 %vm420_vm2, %v2799_v8 }
0x1245   :  { %v878_v20 = vpop.permute.xlu2 %877 }
0x1246   :  { %v892_v17 = vsel %vm630_vm6, %v878_v20, 0.0 }
0x1247   :  { %1123 = vrot.lane.b32.xlu0 %v3568_v47, %s3033_s21  ;;  %893 = vadd.xlane.f32.xlu1 %v892_v17 }
0x124f   :  { %1125 = vrot.lane.b32.xlu0 %v3574_v1, %s3033_s21  ;;  %v649_v1 = vsel %vm647_vm7, %v644_v50, 0.0 }
0x1258   :  { %1129 = vrot.lane.b32.xlu2 %v3589_v13, %s3033_s21 }
0x1260   :  { %1127 = vrot.lane.b32.xlu1 %v3584_v9, %s3033_s21 }
0x1287   :  { %v2217_v26 = vpop.f32.mrf.mxu3 }
0x1288   :  { %v2218_v40 = vadd.f32 %v3003_v31, %v2217_v26 }
0x128a   :  { %v2753_v28 = vmul.f32 -1.442695, %v2218_v40 }
0x128c   :  { %2978 = vpow2.f32 %v2753_v28 }
0x128f   :  { %v2219_v9 = vpop.f32.mrf.mxu3 }
0x1290   :  { %v2220_v48 = vadd.f32 %v3003_v31, %v2219_v9 }
0x1292   :  { %v2979_v30 = vpop.eup %2978  ;;  %v2754_v34 = vmul.f32 -1.442695, %v2220_v48 }
0x1293   :  { %v2239_v54 = vadd.f32 1.0, %v2979_v30 }
0x1294   :  { %2980 = vpow2.f32 %v2754_v34 }
0x1295   :  { %2982 = vrcp.f32 %v2239_v54  ;;  %vm2248_vm8 = vweird.f32 %v2239_v54  ;;  %v2252_v9 = vand.u32 2147483647, %v2239_v54 }
0x1297   :  { %vm2253_vm10 = vcmp.eq.f32.partialorder %v2252_v9, 8.507059e+37 }
0x129a   :  { %v2981_v11 = vpop.eup %2980 }
0x129b   :  { %v2983_v61 = vpop.eup %2982  ;;  %v2240_v62 = vadd.f32 1.0, %v2981_v11 }
0x129c   :  { %v2244_v41 = vmul.f32 %v2983_v61, %v2239_v54  ;;  %vm2249_vm2 = vweird.f32 %v2983_v61 }
0x129d   :  { %2984 = vrcp.f32 %v2240_v62  ;;  %vm2250_vm9 = vmor %vm2248_vm8, %vm2249_vm2  ;;  %vm2263_vm0 = vweird.f32 %v2240_v62  ;;  %vm1151_vm8 = vcmp.eq.s32.totalorder %v3940_v55, 2 }
0x129e   :  { %v2245_v38 = vsub.f32 1.0, %v2244_v41 }
0x12a0   :  { %v2246_v17 = vmul.f32 %v2983_v61, %v2245_v38 }
0x12a2   :  { %v2247_v40 = vadd.f32 %v2983_v61, %v2246_v17 }
0x12a6   :  { %v888_v47 = vpop.xlane.xlu0 %887 }
0x12a7   :  { %v896_v39 = vmul.f32 0.03125, %v888_v47  ;;  %v2254_v47 = vand.u32 2147483648, %v2239_v54 }
0x12a9   :  { %v3966_v13 = vsel %vm899_vm1, %v896_v39, %v649_v1  ;;  %v2255_v30 = vor.u32 1.1754944e-38, %v2254_v47 }
0x12b2   :  { %v885_v52 = vpop.xlane.xlu1 %884 }
0x12b3   :  { %v895_v60 = vmul.f32 0.03125, %v885_v52  ;;  %v891_v36 = vpop.xlane.xlu2 %890  ;;  %v2251_v52 = vsel %vm2250_vm9, %v2983_v61, %v2247_v40  ;;  %vm1403_vm9 = vcmp.eq.s32.totalorder %v3940_v55, 3 }
0x12b4   :  { %v897_v12 = vmul.f32 0.03125, %v891_v36 }
0x12b5   :  { %v3974_v33 = vsel %vm899_vm1, %v895_v60, %v648_v19 }
0x12b6   :  { %v3978_v23 = vsel %vm899_vm1, %v897_v12, %v650_v59 }
0x12b9   :  { %v1124_v51 = vpop.permute.xlu0 %1123 }
0x12ba   :  { %v1135_v4 = vsel %vm630_vm6, %v1124_v51, 0.0  ;;  %v894_v45 = vpop.xlane.xlu1 %893 }
0x12bb   :  { %v898_v57 = vmul.f32 0.03125, %v894_v45  ;;  %1136 = vadd.xlane.f32.xlu0 %v1135_v4  ;;  %v1130_v32 = vpop.permute.xlu2 %1129  ;;  %v2269_v4 = vand.u32 2147483648, %v2240_v62 }
0x12bc   :  { %v1144_v2 = vsel %vm630_vm6, %v1130_v32, 0.0  ;;  %v2267_v32 = vand.u32 2147483647, %v2240_v62 }
0x12bd   :  { %v3983_v58 = vsel %vm899_vm1, %v898_v57, %v651_v63  ;;  %v2985_v63 = vpop.eup %2984 }
0x12be   :  { %v2259_v39 = vmul.f32 %v2985_v63, %v2240_v62  ;;  %vm2264_vm11 = vweird.f32 %v2985_v63  ;;  %vm2268_vm3 = vcmp.eq.f32.partialorder %v2267_v32, 8.507059e+37 }
0x12bf   :  { %vm2265_vm13 = vmor %vm2263_vm0, %vm2264_vm11  ;;  %vm1907_vm11 = vcmp.eq.s32.totalorder %v3940_v55, 5  ;;  %vm2159_vm0 = vcmp.eq.s32.totalorder %v3940_v55, 6 }
0x12c0   :  { %v2260_v60 = vsub.f32 1.0, %v2259_v39 }
0x12c1   :  { %v1126_v0 = vpop.permute.xlu0 %1125 }
0x12c2   :  { %v1138_v10 = vsel %vm630_vm6, %v1126_v0, 0.0  ;;  %v2261_v36 = vmul.f32 %v2985_v63, %v2260_v60 }
0x12c3   :  { %1139 = vadd.xlane.f32.xlu1 %v1138_v10  ;;  %1145 = vadd.xlane.f32.xlu0 %v1144_v2  ;;  %v2270_v2 = vor.u32 1.1754944e-38, %v2269_v4 }
0x12c4   :  { %v2262_v51 = vadd.f32 %v2985_v63, %v2261_v36 }
0x12c5   :  { %v2222_v22 = vpop.f32.mrf.mxu3 }
0x12c6   :  { %v2223_v8 = vadd.f32 %v3003_v31, %v2222_v22  ;;  %v2266_v0 = vsel %vm2265_vm13, %v2985_v63, %v2262_v51  ;;  %vm2479_vm13 = vcmask 130048  }
0x12c8   :  { %v2755_v20 = vmul.f32 -1.442695, %v2223_v8  ;;  %v3996_v8 = vsel %vm2268_vm3, %v2270_v2, %v2266_v0 }
0x12c9   :  { %v2304_v63 = vmul.f32 2.0, %v3996_v8 }
0x12ca   :  { %2986 = vpow2.f32 %v2755_v20 }
0x12cd   :  { %v2224_v26 = vpop.f32.mrf.mxu3 }
0x12ce   :  { %v2225_v50 = vadd.f32 %v3003_v31, %v2224_v26  ;;  %v3988_v31 = vsel %vm2253_vm10, %v2255_v30, %v2251_v52  ;;  %vm1655_vm10 = vcmp.eq.s32.totalorder %v3940_v55, 4 }
0x12cf   :  { %v2303_v12 = vmul.f32 2.0, %v3988_v31 }
0x12d0   :  { %v2987_v1 = vpop.eup %2986  ;;  %v2756_v28 = vmul.f32 -1.442695, %v2225_v50 }
0x12d1   :  { %v2241_v15 = vadd.f32 1.0, %v2987_v1  ;;  %v2757_v57 = vadd.f32 -1.0, %v2303_v12 }
0x12d2   :  { %v1128_v46 = vpop.permute.xlu1 %1127  ;;  %2988 = vpow2.f32 %v2756_v28  ;;  %v2758_v28 = vadd.f32 -1.0, %v2304_v63 }
0x12d3   :  { %v1141_v48 = vsel %vm630_vm6, %v1128_v46, 0.0  ;;  %2990 = vrcp.f32 %v2241_v15  ;;  %v2284_v11 = vand.u32 2147483648, %v2241_v15  ;;  %v2282_v61 = vand.u32 2147483647, %v2241_v15 }
0x12d4   :  { %1142 = vadd.xlane.f32.xlu2 %v1141_v48  ;;  %vm2278_vm14 = vweird.f32 %v2241_v15 }
0x12d5   :  { %vm2283_vm4 = vcmp.eq.f32.partialorder %v2282_v61, 8.507059e+37 }
0x12d7   :  { %1375 = vrot.lane.b32.xlu0 %v3659_v27, %s3033_s21 }
0x12d8   :  { %v2989_v19 = vpop.eup %2988 }
0x12d9   :  { %v2991_v59 = vpop.eup %2990  ;;  %v2242_v34 = vadd.f32 1.0, %v2989_v19 }
0x12da   :  { %v2274_v54 = vmul.f32 %v2991_v59, %v2241_v15  ;;  %vm2279_vm12 = vweird.f32 %v2991_v59 }
0x12db   :  { %2992 = vrcp.f32 %v2242_v34  ;;  %vm2280_vm15 = vmor %vm2278_vm14, %vm2279_vm12  ;;  %v2299_v26 = vand.u32 2147483648, %v2242_v34  ;;  %v2297_v47 = vand.u32 2147483647, %v2242_v34  ;;  %vm2293_vm7 = vweird.f32 %v2242_v34 }
0x12dc   :  { %1379 = vrot.lane.b32.xlu1 %v3671_v43, %s3033_s21  ;;  %v2275_v45 = vsub.f32 1.0, %v2274_v54  ;;  %v2285_v43 = vor.u32 1.1754944e-38, %v2284_v11  ;;  %vm2411_vm12 = vcmp.eq.s32.totalorder %v3940_v55, 7  ;;  %v2809_v55 = vld [vmem:[%s4234_s8] ss:$0 sm:$0xff] }
0x12dd   :  { %v2300_v1 = vor.u32 1.1754944e-38, %v2299_v26  ;;  %vm2298_vm2 = vcmp.eq.f32.partialorder %v2297_v47, 8.507059e+37 }
0x12de   :  { %v2276_v27 = vmul.f32 %v2991_v59, %v2275_v45 }
0x12df   :  { %2319 = vrot.lane.b32.xlu0 %v2757_v57, %s3031_s24 }
0x12e0   :  { %v2277_v10 = vadd.f32 %v2991_v59, %v2276_v27 }
0x12e1   :  { %v2993_v41 = vpop.eup %2992 }
0x12e2   :  { %v2289_v22 = vmul.f32 %v2993_v41, %v2242_v34  ;;  %v2281_v38 = vsel %vm2280_vm15, %v2991_v59, %v2277_v10  ;;  %vm2294_vm5 = vweird.f32 %v2993_v41 }
0x12e3   :  { %v3998_v62 = vsel %vm2283_vm4, %v2285_v43, %v2281_v38  ;;  %vm2295_vm1 = vmor %vm2293_vm7, %vm2294_vm5 }
0x12e4   :  { %v2290_v20 = vsub.f32 1.0, %v2289_v22  ;;  %v2305_v17 = vmul.f32 2.0, %v3998_v62 }
0x12e6   :  { %v2291_v50 = vmul.f32 %v2993_v41, %v2290_v20  ;;  %v2759_v40 = vadd.f32 -1.0, %v2305_v17 }
0x12e7   :  { %1381 = vrot.lane.b32.xlu0 %v3676_v44, %s3033_s21 }
0x12e8   :  { %2323 = vrot.lane.b32.xlu1 %v2759_v40, %s3031_s24  ;;  %v2292_v39 = vadd.f32 %v2993_v41, %v2291_v50 }
0x12ea   :  { %v2296_v9 = vsel %vm2295_vm1, %v2993_v41, %v2292_v39  ;;  %v2313_v41 = vmul.f32 %v3998_v62, %v3874_v18 }
0x12eb   :  { %v4006_v15 = vsel %vm2298_vm2, %v2300_v1, %v2296_v9 }
0x12ec   :  { %2321 = vrot.lane.b32.xlu2 %v2758_v28, %s3031_s24  ;;  %v2306_v46 = vmul.f32 2.0, %v4006_v15  ;;  %v2314_v47 = vmul.f32 %v4006_v15, %v3893_v29 }
0x12ee   :  { %v2760_v48 = vadd.f32 -1.0, %v2306_v46 }
0x12f0   :  { %2325 = vrot.lane.b32.xlu0 %v2760_v48, %s3031_s24 }
0x12f4   :  { %1377 = vrot.lane.b32.xlu2 %v3665_v5, %s3033_s21 }
0x132e   :  { %v1137_v44 = vpop.xlane.xlu0 %1136 }
0x132f   :  { %v1147_v52 = vmul.f32 0.03125, %v1137_v44 }
0x1331   :  { %v4014_v30 = vsel %vm1151_vm8, %v1147_v52, %v3974_v33 }
0x1336   :  { %v1140_v60 = vpop.xlane.xlu1 %1139  ;;  %v1146_v36 = vpop.xlane.xlu0 %1145 }
0x1337   :  { %v1148_v19 = vmul.f32 0.03125, %v1140_v60  ;;  %v1150_v12 = vmul.f32 0.03125, %v1146_v36 }
0x1339   :  { %v4017_v59 = vsel %vm1151_vm8, %v1148_v19, %v3966_v13  ;;  %v4020_v34 = vsel %vm1151_vm8, %v1150_v12, %v3983_v58 }
0x1347   :  { %v1143_v54 = vpop.xlane.xlu2 %1142 }
0x1348   :  { %v1149_v51 = vmul.f32 0.03125, %v1143_v54 }
0x1349   :  { %v1376_v5 = vpop.permute.xlu0 %1375 }
0x134a   :  { %v4023_v4 = vsel %vm1151_vm8, %v1149_v51, %v3978_v23 }
0x134e   :  { %v4028_v32 = vpop.permute.xlu1 %1379 }
0x134f   :  { %v2322_v45 = vpop.permute.xlu2 %2321  ;;  %v1393_v28 = vsel %vm630_vm6, %v4028_v32, 0.0 }
0x1350   :  { %v2332_v33 = vmul.f32 %v2322_v45, %v3996_v8 }
0x1351   :  { %v2320_v57 = vpop.permute.xlu0 %2319 }
0x1352   :  { %v2331_v11 = vmul.f32 %v2320_v57, %v3988_v31  ;;  %2341 = vrot.lane.b32.xlu1 %v2332_v33, %s3031_s24 }
0x1354   :  { %2339 = vrot.lane.b32.xlu2 %v2331_v11, %s3031_s24 }
0x1359   :  { %v4033_v13 = vpop.permute.xlu0 %1381 }
0x135a   :  { %1627 = vrot.lane.b32.xlu1 %v3735_v3, %s3033_s21  ;;  %v2324_v58 = vpop.permute.xlu1 %2323  ;;  %v1387_v3 = vsel %vm630_vm6, %v1376_v5, 0.0 }
0x135b   :  { %v2333_v23 = vmul.f32 %v2324_v58, %v3998_v62 }
0x135d   :  { %2343 = vrot.lane.b32.xlu0 %v2333_v23, %s3031_s24 }
0x1362   :  { %2131 = vrot.lane.b32.xlu1 %v3900_v37, %s3033_s21  ;;  %v2326_v27 = vpop.permute.xlu0 %2325  ;;  %v2311_v37 = vmul.f32 %v3988_v31, %v3880_v25 }
0x1363   :  { %v2334_v61 = vmul.f32 %v2326_v27, %v4006_v15 }
0x1365   :  { %1879 = vrot.lane.b32.xlu0 %v3811_v56, %s3033_s21  ;;  %2345 = vrot.lane.b32.xlu2 %v2334_v61, %s3031_s24  ;;  %v1378_v56 = vpop.permute.xlu2 %1377 }
0x1366   :  { %v1390_v22 = vsel %vm630_vm6, %v1378_v56, 0.0 }
0x136a   :  { %2133 = vrot.lane.b32.xlu1 %v3906_v21, %s3033_s21 }
0x136d   :  { %1629 = vrot.lane.b32.xlu0 %v3741_v14, %s3033_s21 }
0x1375   :  { %1881 = vrot.lane.b32.xlu0 %v3817_v49, %s3033_s21 }
0x137d   :  { %1631 = vrot.lane.b32.xlu0 %v3747_v7, %s3033_s21  ;;  %v2312_v7 = vmul.f32 %v3996_v8, %v3869_v24 }
0x1385   :  { %1883 = vrot.lane.b32.xlu0 %v3823_v53, %s3033_s21 }
0x138d   :  { %2137 = vrot.lane.b32.xlu0 %v3923_v35, %s3033_s21 }
0x138e   :  { %1388 = vadd.xlane.f32.xlu2 %v1387_v3 }
0x13ae   :  { %v2340_v14 = vpop.permute.xlu2 %2339 }
0x13af   :  { %v4058_v21 = vadd.f32 %v2340_v14, %v2311_v37 }
0x13b1   :  { %2994 = vtanh.f32 %v4058_v21 }
0x13b7   :  { %v2995_v49 = vpop.eup %2994 }
0x13b8   :  { %2363 = vrot.lane.b32.xlu1 %v2995_v49, %s3031_s24 }
0x13c0   :  { %1633 = vrot.lane.b32.xlu1 %v3752_v42, %s3033_s21 }
0x13c4   :  { %v2342_v53 = vpop.permute.xlu1 %2341 }
0x13c5   :  { %v4066_v35 = vadd.f32 %v2342_v53, %v2312_v7 }
0x13c7   :  { %2996 = vtanh.f32 %v4066_v35 }
0x13c8   :  { %1885 = vrot.lane.b32.xlu1 %v3828_v6, %s3033_s21 }
0x13cc   :  { %v1628_v25 = vpop.permute.xlu1 %1627 }
0x13cd   :  { %v2997_v0 = vpop.eup %2996  ;;  %v1639_v2 = vsel %vm630_vm6, %v1628_v25, 0.0 }
0x13ce   :  { %2365 = vrot.lane.b32.xlu2 %v2997_v0, %s3031_s24  ;;  %1640 = vadd.xlane.f32.xlu0 %v1639_v2 }
0x13cf   :  { %v2344_v24 = vpop.permute.xlu0 %2343 }
0x13d0   :  { %v4078_v43 = vadd.f32 %v2344_v24, %v2313_v41 }
0x13d2   :  { %2998 = vtanh.f32 %v4078_v43 }
0x13d4   :  { %v2132_v10 = vpop.permute.xlu1 %2131 }
0x13d5   :  { %v2143_v42 = vsel %vm630_vm6, %v2132_v10, 0.0 }
0x13d6   :  { %2135 = vrot.lane.b32.xlu2 %v3912_v16, %s3033_s21  ;;  %2144 = vadd.xlane.f32.xlu0 %v2143_v42  ;;  %v2346_v16 = vpop.permute.xlu2 %2345 }
0x13d7   :  { %v1880_v20 = vpop.permute.xlu0 %1879  ;;  %v4092_v1 = vadd.f32 %v2346_v16, %v2314_v47 }
0x13d8   :  { %v2999_v6 = vpop.eup %2998  ;;  %v1891_v26 = vsel %vm630_vm6, %v1880_v20, 0.0 }
0x13d9   :  { %3000 = vtanh.f32 %v4092_v1 }
0x13dc   :  { %v2134_v38 = vpop.permute.xlu1 %2133 }
0x13dd   :  { %v2146_v17 = vsel %vm630_vm6, %v2134_v38, 0.0 }
0x13df   :  { %v1630_v63 = vpop.permute.xlu0 %1629  ;;  %v3001_v46 = vpop.eup %3000 }
0x13e0   :  { %v1642_v39 = vsel %vm630_vm6, %v1630_v63, 0.0 }
0x13e7   :  { %v1882_v9 = vpop.permute.xlu0 %1881 }
0x13e8   :  { %v1894_v48 = vsel %vm630_vm6, %v1882_v9, 0.0 }
0x13ea   :  { %2367 = vrot.lane.b32.xlu0 %v2999_v6, %s3031_s24 }
0x13ef   :  { %v1632_v44 = vpop.permute.xlu0 %1631 }
0x13f0   :  { %v1645_v2 = vsel %vm630_vm6, %v1632_v44, 0.0 }
0x13f2   :  { %1391 = vadd.xlane.f32.xlu1 %v1390_v22 }
0x13f7   :  { %v1884_v60 = vpop.permute.xlu0 %1883 }
0x13fa   :  { %2147 = vadd.xlane.f32.xlu1 %v2146_v17 }
0x13ff   :  { %1892 = vadd.xlane.f32.xlu2 %v1891_v26  ;;  %v2138_v51 = vpop.permute.xlu0 %2137 }
0x1400   :  { %v2152_v16 = vsel %vm630_vm6, %v2138_v51, 0.0 }
0x1401   :  { %v1389_v18 = vpop.xlane.xlu2 %1388 }
0x1402   :  { %v1399_v50 = vmul.f32 0.03125, %v1389_v18 }
0x1404   :  { %v1404_v40 = vsel %vm1403_vm9, %v1399_v50, %v4014_v30 }
0x1407   :  { %1643 = vadd.xlane.f32.xlu2 %v1642_v39 }
0x140f   :  { %1394 = vadd.xlane.f32.xlu2 %v1393_v28 }
0x1413   :  { %2369 = vrot.lane.b32.xlu1 %v3001_v46, %s3031_s24 }
0x1414   :  { %1895 = vadd.xlane.f32.xlu0 %v1894_v48 }
0x1428   :  { %v2366_v29 = vpop.permute.xlu2 %2365 }
0x1429   :  { %v2376_v54 = vmul.f32 %v2366_v29, %v3996_v8  ;;  %v1897_v8 = vsel %vm630_vm6, %v1884_v60, 0.0 }
0x142a   :  { %v2364_v52 = vpop.permute.xlu1 %2363 }
0x142b   :  { %v2375_v30 = vmul.f32 %v2364_v52, %v3988_v31 }
0x142d   :  { %2383 = vrot.lane.b32.xlu1 %v2375_v30, %s3033_s21 }
0x1430   :  { %v2136_v36 = vpop.permute.xlu2 %2135 }
0x1431   :  { %v2149_v19 = vsel %vm630_vm6, %v2136_v36, 0.0 }
0x1432   :  { %v1634_v12 = vpop.permute.xlu1 %1633  ;;  %2150 = vadd.xlane.f32.xlu2 %v2149_v19 }
0x1433   :  { %v1648_v17 = vsel %vm630_vm6, %v1634_v12, 0.0 }
0x1435   :  { %2385 = vrot.lane.b32.xlu1 %v2376_v54, %s3033_s21 }
0x143a   :  { %v1886_v5 = vpop.permute.xlu1 %1885 }
0x143b   :  { %v1900_v45 = vsel %vm630_vm6, %v1886_v5, 0.0 }
0x143c   :  { %1901 = vadd.xlane.f32.xlu2 %v1900_v45 }
0x1441   :  { %v1641_v31 = vpop.xlane.xlu0 %1640 }
0x1442   :  { %v1651_v33 = vmul.f32 0.03125, %v1641_v31 }
0x1444   :  { %v1656_v57 = vsel %vm1655_vm10, %v1651_v33, %v1404_v40 }
0x1449   :  { %v2145_v11 = vpop.xlane.xlu0 %2144 }
0x144a   :  { %v2155_v37 = vmul.f32 0.03125, %v2145_v11 }
0x145c   :  { %v2368_v32 = vpop.permute.xlu0 %2367 }
0x145d   :  { %v2377_v58 = vmul.f32 %v2368_v32, %v3998_v62 }
0x145f   :  { %2387 = vrot.lane.b32.xlu0 %v2377_v58, %s3033_s21  ;;  %1898 = vadd.xlane.f32.xlu1 %v1897_v8 }
0x1465   :  { %v1392_v23 = vpop.xlane.xlu1 %1391 }
0x1466   :  { %v1400_v27 = vmul.f32 0.03125, %v1392_v23 }
0x1468   :  { %v1405_v61 = vsel %vm1403_vm9, %v1400_v27, %v4017_v59  ;;  %v2451_v27 = vld [vmem:[%s4233_s7 + $0x18] sm:$0xff] }
0x1469   :  { %2471 = vmatpush.msra.mxu0 %v2451_v27 }
0x146d   :  { %v2148_v49 = vpop.xlane.xlu1 %2147 }
0x146e   :  { %v2156_v42 = vmul.f32 0.03125, %v2148_v49 }
0x1472   :  { %v1893_v3 = vpop.xlane.xlu2 %1892 }
0x1473   :  { %v1903_v56 = vmul.f32 0.03125, %v1893_v3 }
0x1475   :  { %v1908_v62 = vsel %vm1907_vm11, %v1903_v56, %v1656_v57  ;;  %v2449_v56 = vld [vmem:[%s4233_s7 + $0x8] sm:$0xff] }
0x1476   :  { %v4120_v14 = vsel %vm2159_vm0, %v2155_v37, %v1908_v62  ;;  %v2448_v62 = vld [vmem:[%s4233_s7] sm:$0xff] }
0x147a   :  { %v1644_v7 = vpop.xlane.xlu2 %1643 }
0x147b   :  { %v1652_v53 = vmul.f32 0.03125, %v1644_v7 }
0x147d   :  { %v1657_v24 = vsel %vm1655_vm10, %v1652_v53, %v1405_v61  ;;  %v2450_v61 = vld [vmem:[%s4233_s7 + $0x10] sm:$0xff] }
0x147e   :  { %2472 = vmatpush.msra.mxu0 %v2450_v61 }
0x1480   :  { %2473 = vmatpush.msra.mxu0 %v2449_v56 }
0x1482   :  { %v1395_v50 = vpop.xlane.xlu2 %1394  ;;  %2474 = vmatpush.msra.mxu0 %v2448_v62 }
0x1483   :  { %v1401_v40 = vmul.f32 0.03125, %v1395_v50 }
0x1485   :  { %v2370_v25 = vpop.permute.xlu1 %2369 }
0x1486   :  { %v2378_v59 = vmul.f32 %v2370_v25, %v4006_v15  ;;  %v1396_v15 = vsel %vm630_vm6, %v4033_v13, 0.0 }
0x1487   :  { %v1896_v0 = vpop.xlane.xlu0 %1895 }
0x1488   :  { %v1904_v10 = vmul.f32 0.03125, %v1896_v0  ;;  %2389 = vrot.lane.b32.xlu1 %v2378_v59, %s3033_s21 }
0x1489   :  { %1646 = vadd.xlane.f32.xlu0 %v1645_v2 }
0x148a   :  { %v1909_v41 = vsel %vm1907_vm11, %v1904_v10, %v1657_v24 }
0x148b   :  { %v2161_v6 = vsel %vm2159_vm0, %v2156_v42, %v1909_v41 }
0x1491   :  { %1397 = vadd.xlane.f32.xlu0 %v1396_v15 }
0x149f   :  { %v2384_v22 = vpop.permute.xlu1 %2383 }
0x14a0   :  { %2481 = vst.msk [vmem:[%s4236_s10] sm:$0xff] %vm630_vm6, %v2384_v22  ;;  %v2395_v13 = vsel %vm630_vm6, %v2384_v22, 0.0 }
0x14a5   :  { %v2151_v44 = vpop.xlane.xlu2 %2150 }
0x14a6   :  { %v2157_v33 = vmul.f32 0.03125, %v2151_v44 }
0x14a7   :  { %v2386_v38 = vpop.permute.xlu1 %2385 }
0x14a8   :  { %2482 = vst.msk [vmem:[%s4236_s10 + $0x8] sm:$0xff] %vm630_vm6, %v2386_v38  ;;  %v2398_v20 = vsel %vm630_vm6, %v2386_v38, 0.0 }
0x14a9   :  { %2399 = vadd.xlane.f32.xlu2 %v2398_v20 }
0x14af   :  { %v1902_v30 = vpop.xlane.xlu2 %1901 }
0x14b2   :  { %1649 = vadd.xlane.f32.xlu1 %v1648_v17 }
0x14ba   :  { %2396 = vadd.xlane.f32.xlu1 %v2395_v13 }
0x14c2   :  { %2153 = vadd.xlane.f32.xlu1 %v2152_v16 }
0x14d1   :  { %v2388_v26 = vpop.permute.xlu0 %2387 }
0x14d2   :  { %2483 = vst.msk [vmem:[%s4236_s10 + $0x10] sm:$0xff] %vm630_vm6, %v2388_v26  ;;  %v2401_v18 = vsel %vm630_vm6, %v2388_v26, 0.0  ;;  %v1899_v63 = vpop.xlane.xlu1 %1898 }
0x14d3   :  { %2402 = vadd.xlane.f32.xlu0 %v2401_v18  ;;  %v1905_v46 = vmul.f32 0.03125, %v1899_v63 }
0x14db   :  { %2489 = vrot.lane.b32.xlu1 %v4058_v21, %s3032_s6  ;;  %v1406_v21 = vsel %vm1403_vm9, %v1401_v40, %v4023_v4  ;;  %v1906_v4 = vmul.f32 0.03125, %v1902_v30 }
0x14e3   :  { %2495 = vrot.lane.b32.xlu1 %v4092_v1, %s3032_s6 }
0x14fa   :  { %v2390_v47 = vpop.permute.xlu1 %2389 }
0x14fb   :  { %2484 = vst.msk [vmem:[%s4236_s10 + $0x18] sm:$0xff] %vm630_vm6, %v2390_v47  ;;  %v2404_v39 = vsel %vm630_vm6, %v2390_v47, 0.0 }
0x14fc   :  { %v1647_v28 = vpop.xlane.xlu0 %1646  ;;  %2405 = vadd.xlane.f32.xlu0 %v2404_v39 }
0x14fd   :  { %v1653_v9 = vmul.f32 0.03125, %v1647_v28 }
0x14ff   :  { %v1658_v1 = vsel %vm1655_vm10, %v1653_v9, %v1406_v21 }
0x1500   :  { %v1910_v48 = vsel %vm1907_vm11, %v1905_v46, %v1658_v1 }
0x1501   :  { %v2162_v32 = vsel %vm2159_vm0, %v2157_v33, %v1910_v48 }
0x1504   :  { %v1398_v29 = vpop.xlane.xlu0 %1397 }
0x1505   :  { %v1402_v52 = vmul.f32 0.03125, %v1398_v29 }
0x1507   :  { %v1407_v19 = vsel %vm1403_vm9, %v1402_v52, %v4020_v34 }
0x1510   :  { %2491 = vrot.lane.b32.xlu0 %v4066_v35, %s3032_s6 }
0x1518   :  { %2493 = vrot.lane.b32.xlu0 %v4078_v43, %s3032_s6 }
0x151c   :  { %v2400_v5 = vpop.xlane.xlu2 %2399 }
0x151d   :  { %v2408_v45 = vmul.f32 0.03125, %v2400_v5 }
0x151f   :  { %v2413_v34 = vsel %vm2411_vm12, %v2408_v45, %v2161_v6 }
0x1525   :  { %v1650_v60 = vpop.xlane.xlu1 %1649 }
0x1526   :  { %v1654_v36 = vmul.f32 0.03125, %v1650_v60 }
0x1528   :  { %v1659_v12 = vsel %vm1655_vm10, %v1654_v36, %v1407_v19 }
0x1529   :  { %v1911_v35 = vsel %vm1907_vm11, %v1906_v4, %v1659_v12 }
0x152d   :  { %v2397_v54 = vpop.xlane.xlu1 %2396 }
0x152e   :  { %v2407_v51 = vmul.f32 0.03125, %v2397_v54 }
0x1530   :  { %v2412_v43 = vsel %vm2411_vm12, %v2407_v51, %v4120_v14 }
0x1531   :  { %2416 = vxpose.xlu2.b32.start [1/4] (short) (narrow) %v2412_v43, 8 }
0x1535   :  { %v2154_v31 = vpop.xlane.xlu1 %2153 }
0x1536   :  { %v2158_v3 = vmul.f32 0.03125, %v2154_v31 }
0x1538   :  { %v2163_v49 = vsel %vm2159_vm0, %v2158_v3, %v1911_v35 }
0x1539   :  { %2417 = vxpose.xlu2.b32.cont [2/4] (short) (narrow) %v2413_v34, 8 }
0x1546   :  { %v2403_v57 = vpop.xlane.xlu0 %2402 }
0x1547   :  { %v2409_v11 = vmul.f32 0.03125, %v2403_v57 }
0x1549   :  { %v2414_v58 = vsel %vm2411_vm12, %v2409_v11, %v2162_v32 }
0x154a   :  { %2418 = vxpose.xlu2.b32.cont [3/4] (short) (narrow) %v2414_v58, 8 }
0x154d   :  { %v2490_v8 = vpop.permute.xlu1 %2489 }
0x154e   :  { %2501 = vst.msk [vmem:[%s4237_s11] sm:$0xff] %vm630_vm6, %v2490_v8 }
0x1555   :  { %v2496_v23 = vpop.permute.xlu1 %2495 }
0x1556   :  { %2504 = vst.msk [vmem:[%s4237_s11 + $0x18] sm:$0xff] %vm630_vm6, %v2496_v23 }
0x156f   :  { %v2406_v37 = vpop.xlane.xlu0 %2405 }
0x1570   :  { %v2410_v14 = vmul.f32 0.03125, %v2406_v37 }
0x1572   :  { %v2415_v7 = vsel %vm2411_vm12, %v2410_v14, %v2163_v49 }
0x1573   :  { %2419 = vxpose.xlu2.b32.end [4/4] (short) (narrow) %v2415_v7, 8 }
0x1582   :  { %v2492_v53 = vpop.permute.xlu0 %2491 }
0x1583   :  { %2502 = vst.msk [vmem:[%s4237_s11 + $0x8] sm:$0xff] %vm630_vm6, %v2492_v53 }
0x158a   :  { %v2494_v25 = vpop.permute.xlu0 %2493 }
0x158b   :  { %2503 = vst.msk [vmem:[%s4237_s11 + $0x10] sm:$0xff] %vm630_vm6, %v2494_v25 }
0x15f4   :  { %v2432_v59 = vpop.trf.xlu2 }
0x15f5   :  { %2761 = vmatmul.msk.f32.vlgmr.msra.gmra.mxu0 %vm630_vm6, %v2432_v59 }
0x1672   :  { %v2476_v0 = vpop.f32.mrf.mxu0 }
0x1673   :  { %v2477_v2 = vadd.f32 %v2809_v55, %v2476_v0 }
0x1675   :  { %2480 = vst.msk [vmem:[#allocation3] sm:$0xff] %vm2479_vm13, %v2477_v2 }
0x1676   :  { %2515 = dma.vmem_to_hbm [thread:$0]  %s2511_s23, 128, %s2513_s25, [#allocation4]  }
0x1677   :  { %3028 = dma.done.wait [#allocation4], 128  }
0x1678   :  { %3029 = vsyncadd [#allocation4], 4294967168 }
0x1679   :  { %2528 = vsyncpa [#allocation4], 1 }

</bundles_post_ra>
